<compile_context>
chip_gen: v7x
topology: tpu7x:2x2x1
jax: 0.10.0
libtpu: 0.0.40
codegen_flags: <defaults>
</compile_context>

<pallas_src>
import functools

import jax
import jax.numpy as jnp
from jax.experimental import pallas as pl
from jax.experimental.pallas import tpu as pltpu

BN_MOMENTUM = 0.1   # running-stat momentum; does not affect the forward output
BN_EPS = 1e-5
LANE = 128          # Cout is padded to this only for MXU/VMEM tiles, not for HBM


def _fused_conv_bn_relu_kernel(x_ref, w_ref, g_ref, b_ref, o_ref,
                               dense_ref, sum_ref, ssq_ref, *,
                               k, wp, m_rows, h_out, w_out, stride, cout,
                               inv_count, eps):
    """One grid step = one image.

    x_ref:     (1, Lp, Cin)          padded image, spatially flattened (+ k-1 pad rows)
    w_ref:     (k*k, Cin, Cpad)      per-tap weights, Cout zero-padded to Cpad lanes
    g_ref:     (1, Cpad)             gamma (zero padded)
    b_ref:     (1, Cpad)             beta  (zero padded)
    o_ref:     (N, Hout, Wout, Cout) whole output, VMEM-resident across the grid
    dense_ref: (m_rows, Cpad)        per-image dense (stride-1) conv scratch
    sum_ref:   (1, Cpad)             per-channel sum over all valid output pixels
    ssq_ref:   (1, Cpad)             per-channel sum of squares
    """
    i = pl.program_id(0)

    @pl.when(i == 0)
    def _init():
        sum_ref[...] = jnp.zeros_like(sum_ref)
        ssq_ref[...] = jnp.zeros_like(ssq_ref)

    cpad = dense_ref.shape[-1]

    # ---- convolution: k*k shifted matmuls over the flattened padded image ----
    # GEMM row m = hd*wp + wd; tap (ih, iw) reads flat row m + ih*wp + iw, so
    # every tap is one contiguous shifted slice of the image (no im2col in HBM).
    acc = jnp.zeros((m_rows, cpad), jnp.float32)
    for ih in range(k):
        for iw in range(k):
            off = ih * wp + iw
            acc += jnp.dot(x_ref[0, off:off + m_rows, :], w_ref[ih * k + iw],
                           preferred_element_type=jnp.float32)
    dense_ref[...] = acc

    # ---- extract valid (strided) output pixels row by row, accumulate the ----
    # ---- BatchNorm batch statistics from exactly those pixels.            ----
    part_sum = jnp.zeros((1, cpad), jnp.float32)
    part_ssq = jnp.zeros((1, cpad), jnp.float32)
    for ho in range(h_out):
        start = ho * stride * wp
        if stride == 1:
            row = dense_ref[start:start + w_out, :]                 # contiguous
        else:
            row = dense_ref[pl.ds(start, w_out, stride=stride), :]  # strided cols
        part_sum += jnp.sum(row, axis=0, keepdims=True)
        part_ssq += jnp.sum(row * row, axis=0, keepdims=True)
        o_ref[i, ho] = row[:, :cout]         # compact store: real channels only
    sum_ref[...] += part_sum
    ssq_ref[...] += part_ssq

    # ---- last image: fold BN into one scale/bias and apply BN + ReLU in place ----
    @pl.when(i == pl.num_programs(0) - 1)
    def _finalize():
        mean = sum_ref[...] * inv_count
        # One-pass variance (E[x^2] - E[x]^2) in f32.  Fine at these scales;
        # a Welford/mean-shifted combine would be needed only for |mean|>>std.
        var = ssq_ref[...] * inv_count - mean * mean
        scale = g_ref[...] * jax.lax.rsqrt(var + eps)
        bias = b_ref[...] - mean * scale
        y = o_ref[...] * scale[:, :cout] + bias[:, :cout]
        o_ref[...] = jnp.maximum(y, 0.0).astype(o_ref.dtype)


def conv_batchnorm_relu_nhwc(x_nhwc, w_oihw, gamma, beta, *, stride=1,
                             padding=None, eps=BN_EPS,
                             compute_dtype=jnp.float32):
    """NHWC core.  compute_dtype=jnp.bfloat16 halves matmul-input bytes on
    v6e/v7x (accumulation and BN statistics stay f32), at the cost of conv-input
    rounding; the f32 default matches the PyTorch reference tolerance."""
    n, h, w, cin = x_nhwc.shape
    cout, cin_w, kh, kw = w_oihw.shape
    assert cin == cin_w and kh == kw
    k = kh
    pad = padding if padding is not None else int(k / 2)

    h_out = (h + 2 * pad - k) // stride + 1
    w_out = (w + 2 * pad - k) // stride + 1
    hp, wp = h + 2 * pad, w + 2 * pad
    h_dense = hp - k + 1                  # stride-1 (dense) output height
    m_rows = h_dense * wp                 # dense GEMM rows per image
    lp = hp * wp + (k - 1)                # + (k-1) rows so every tap slice fits
    cpad = ((cout + LANE - 1) // LANE) * LANE

    # ---- host glue: cheap pads / reshapes only (no im2col expansion) --------
    x_pad = jnp.pad(x_nhwc.astype(compute_dtype),
                    ((0, 0), (pad, pad), (pad, pad), (0, 0)))
    x_flat = x_pad.reshape(n, hp * wp, cin)
    x_flat = jnp.pad(x_flat, ((0, 0), (0, k - 1), (0, 0)))

    # OIHW -> (kH*kW, Cin, Cpad); tap index t = ih*k + iw.
    w_taps = jnp.transpose(w_oihw, (2, 3, 1, 0)).reshape(k * k, cin, cout)
    w_taps = jnp.pad(w_taps, ((0, 0), (0, 0), (0, cpad - cout)))
    w_taps = w_taps.astype(compute_dtype)

    g = jnp.pad(gamma.astype(jnp.float32), (0, cpad - cout)).reshape(1, cpad)
    b = jnp.pad(beta.astype(jnp.float32), (0, cpad - cout)).reshape(1, cpad)

    kernel = functools.partial(
        _fused_conv_bn_relu_kernel, k=k, wp=wp, m_rows=m_rows, h_out=h_out,
        w_out=w_out, stride=stride, cout=cout,
        inv_count=1.0 / float(n * h_out * w_out), eps=float(eps))

    # TODO(synk): the whole (N, Hout, Wout, Cout) output stays VMEM-resident
    # here (16 KiB at this config); very large N*H*W would need a fallback to a
    # two-pass structure with M-tiling (<=~48 MiB budget on v7x).
    y = pl.pallas_call(
        kernel,
        out_shape=jax.ShapeDtypeStruct((n, h_out, w_out, cout), jnp.float32),
        grid=(n,),
        in_specs=[
            pl.BlockSpec((1, lp, cin), lambda i: (i, 0, 0)),
            pl.BlockSpec((k * k, cin, cpad), lambda i: (0, 0, 0)),
            pl.BlockSpec((1, cpad), lambda i: (0, 0)),
            pl.BlockSpec((1, cpad), lambda i: (0, 0)),
        ],
        out_specs=pl.BlockSpec((n, h_out, w_out, cout),
                               lambda i: (0, 0, 0, 0)),
        scratch_shapes=[
            pltpu.VMEM((m_rows, cpad), jnp.float32),   # dense per-image conv
            pltpu.VMEM((1, cpad), jnp.float32),        # channel sum
            pltpu.VMEM((1, cpad), jnp.float32),        # channel sum of squares
        ],
        compiler_params=pltpu.CompilerParams(
            # Batch statistics (and the resident output block) accumulate across
            # the grid, so the image axis must stay "arbitrary" (serial).
            # TODO(synk): a megacore-parallel variant would emit per-image
            # partial sums and reduce them in a tiny second kernel.
            dimension_semantics=("arbitrary",),
            vmem_limit_bytes=32 * 1024 * 1024),
    )(x_flat, w_taps, g, b)

    return y   # NHWC, already compact / strided / cout channels


def conv_batchnorm_relu(x_nchw, w_oihw, gamma, beta, *, stride=1, padding=None,
                        eps=BN_EPS, compute_dtype=jnp.float32):
    """NCHW boundary for PyTorch parity; the core runs NHWC internally (an
    NHWC-boundary caller can use conv_batchnorm_relu_nhwc and skip both
    transposes entirely)."""
    x_nhwc = jnp.transpose(x_nchw, (0, 2, 3, 1))
    y_nhwc = conv_batchnorm_relu_nhwc(x_nhwc, w_oihw, gamma, beta,
                                      stride=stride, padding=padding, eps=eps,
                                      compute_dtype=compute_dtype)
    return jnp.transpose(y_nhwc, (0, 3, 1, 2))


def _reference(x_nchw, w_oihw, gamma, beta, *, stride, padding, eps=BN_EPS):
    """Pure-JAX reference matching PyTorch training-mode forward."""
    conv = jax.lax.conv_general_dilated(
        x_nchw, w_oihw, window_strides=(stride, stride),
        padding=[(padding, padding), (padding, padding)],
        dimension_numbers=("NCHW", "OIHW", "NCHW"),
        precision=jax.lax.Precision.HIGHEST)
    mean = conv.mean(axis=(0, 2, 3), keepdims=True)
    var = ((conv - mean) ** 2).mean(axis=(0, 2, 3), keepdims=True)
    xhat = (conv - mean) / jnp.sqrt(var + eps)
    y = xhat * gamma.reshape(1, -1, 1, 1) + beta.reshape(1, -1, 1, 1)
    return jnp.maximum(y, 0.0)


if __name__ == "__main__":
    # Module config: nIn=4, nOut=8, kSize=3, stride=1, padding=None -> 1
    N, CIN, H, W = 2, 4, 16, 16
    COUT, K, STRIDE = 8, 3, 1
    PAD = int(K / 2)

    key = jax.random.PRNGKey(0)
    kx, kw_, kg, kb = jax.random.split(key, 4)

    x = jax.random.normal(kx, (N, CIN, H, W), dtype=jnp.float32)
    weight = 0.1 * jax.random.normal(kw_, (COUT, CIN, K, K), dtype=jnp.float32)
    gamma = 1.0 + 0.1 * jax.random.normal(kg, (COUT,), dtype=jnp.float32)
    beta = 0.1 * jax.random.normal(kb, (COUT,), dtype=jnp.float32)
    # TODO(synk): BatchNorm running_mean/running_var momentum updates are
    # training-time state mutations and do not affect the returned tensor;
    # they are not modeled here.

    out = conv_batchnorm_relu(x, weight, gamma, beta, stride=STRIDE, padding=PAD)
    out = jax.block_until_ready(out)

    ref = _reference(x, weight, gamma, beta, stride=STRIDE, padding=PAD)
    assert out.shape == (N, COUT, H, W), out.shape
    assert jnp.allclose(out, ref, atol=1e-3, rtol=1e-3), float(
        jnp.max(jnp.abs(out - ref)))

    print("KERNEL_OK")
</pallas_src>

<mosaic_0001>
module attributes {stable_mosaic.version = 11 : i64} {
  func.func @_fused_conv_bn_relu_kernel(%arg0: i32, %arg1: memref<1x326x4xf32, #tpu.memory_space<vmem>>, %arg2: memref<9x4x128xf32, #tpu.memory_space<vmem>>, %arg3: memref<1x128xf32, #tpu.memory_space<vmem>>, %arg4: memref<1x128xf32, #tpu.memory_space<vmem>>, %arg5: memref<2x16x16x8xf32, #tpu.memory_space<vmem>>, %arg6: memref<288x128xf32, #tpu.memory_space<vmem>>, %arg7: memref<1x128xf32, #tpu.memory_space<vmem>>, %arg8: memref<1x128xf32, #tpu.memory_space<vmem>>) attributes {dimension_semantics = [#tpu.dimension_semantics<arbitrary>], iteration_bounds = array<i64: 2>, scalar_prefetch = 0 : i64, scratch_operands = 3 : i64, tpu.core_type = #tpu.core_type<tc>, window_params = [{transform_indices = @transform_0, window_bounds = array<i64: 1, 326, 4>}, {pipeline_mode = #tpu.pipeline_mode<synchronous>, transform_indices = @transform_1, window_bounds = array<i64: 9, 4, 128>}, {pipeline_mode = #tpu.pipeline_mode<synchronous>, transform_indices = @transform_2, window_bounds = array<i64: 1, 128>}, {pipeline_mode = #tpu.pipeline_mode<synchronous>, transform_indices = @transform_3, window_bounds = array<i64: 1, 128>}, {pipeline_mode = #tpu.pipeline_mode<synchronous>, transform_indices = @transform_4, window_bounds = array<i64: 2, 16, 16, 8>}]} {
    %c0_i32 = arith.constant 0 : i32
    %0 = arith.cmpi eq, %arg0, %c0_i32 : i32
    %1 = arith.extui %0 : i1 to i32
    %c0_i32_0 = arith.constant 0 : i32
    %2 = arith.cmpi ne, %1, %c0_i32_0 : i32
    scf.if %2 {
      %cst_154 = arith.constant 0.000000e+00 : f32
      %278 = vector.broadcast %cst_154 : f32 to vector<1x128xf32>
      %c0_155 = arith.constant 0 : index
      %c0_156 = arith.constant 0 : index
      %279 = vector.load %arg7[%c0_155, %c0_156] : memref<1x128xf32, #tpu.memory_space<vmem>>, vector<1x128xf32>
      tpu.vector_store %arg7[%c0_155, %c0_156], %278 {strides = array<i32>} : memref<1x128xf32, #tpu.memory_space<vmem>>, vector<1x128xf32>,
      %cst_157 = arith.constant 0.000000e+00 : f32
      %280 = vector.broadcast %cst_157 : f32 to vector<1x128xf32>
      %c0_158 = arith.constant 0 : index
      %c0_159 = arith.constant 0 : index
      %281 = vector.load %arg8[%c0_158, %c0_159] : memref<1x128xf32, #tpu.memory_space<vmem>>, vector<1x128xf32>
      tpu.vector_store %arg8[%c0_158, %c0_159], %280 {strides = array<i32>} : memref<1x128xf32, #tpu.memory_space<vmem>>, vector<1x128xf32>,
    } else {
    }
    %cst = arith.constant 0.000000e+00 : f32
    %3 = vector.broadcast %cst : f32 to vector<288x128xf32>
    %c0 = arith.constant 0 : index
    %c0_1 = arith.constant 0 : index
    %c0_2 = arith.constant 0 : index
    %4 = vector.load %arg1[%c0, %c0_1, %c0_2] : memref<1x326x4xf32, #tpu.memory_space<vmem>>, vector<1x288x4xf32>
    %5 = vector.shape_cast %4 : vector<1x288x4xf32> to vector<288x4xf32>
    %c0_3 = arith.constant 0 : index
    %c0_4 = arith.constant 0 : index
    %c0_5 = arith.constant 0 : index
    %6 = vector.load %arg2[%c0_3, %c0_4, %c0_5] : memref<9x4x128xf32, #tpu.memory_space<vmem>>, vector<1x4x128xf32>
    %7 = vector.shape_cast %6 : vector<1x4x128xf32> to vector<4x128xf32>
    %cst_6 = arith.constant dense<0.000000e+00> : vector<288x128xf32>
    %8 = tpu.matmul %5, %7, %cst_6 {dimension_numbers = #tpu.dot_dimension_numbers<[1], [0], [0], [1], [0, 0, 1, 1], [], []>} : vector<288x4xf32>, vector<4x128xf32>, vector<288x128xf32> -> vector<288x128xf32>
    %9 = arith.addf %3, %8 : vector<288x128xf32>
    %c0_7 = arith.constant 0 : index
    %c1 = arith.constant 1 : index
    %c0_8 = arith.constant 0 : index
    %10 = vector.load %arg1[%c0_7, %c1, %c0_8] : memref<1x326x4xf32, #tpu.memory_space<vmem>>, vector<1x288x4xf32>
    %11 = vector.shape_cast %10 : vector<1x288x4xf32> to vector<288x4xf32>
    %c1_9 = arith.constant 1 : index
    %c0_10 = arith.constant 0 : index
    %c0_11 = arith.constant 0 : index
    %12 = vector.load %arg2[%c1_9, %c0_10, %c0_11] : memref<9x4x128xf32, #tpu.memory_space<vmem>>, vector<1x4x128xf32>
    %13 = vector.shape_cast %12 : vector<1x4x128xf32> to vector<4x128xf32>
    %cst_12 = arith.constant dense<0.000000e+00> : vector<288x128xf32>
    %14 = tpu.matmul %11, %13, %cst_12 {dimension_numbers = #tpu.dot_dimension_numbers<[1], [0], [0], [1], [0, 0, 1, 1], [], []>} : vector<288x4xf32>, vector<4x128xf32>, vector<288x128xf32> -> vector<288x128xf32>
    %15 = arith.addf %9, %14 : vector<288x128xf32>
    %c0_13 = arith.constant 0 : index
    %c2 = arith.constant 2 : index
    %c0_14 = arith.constant 0 : index
    %16 = vector.load %arg1[%c0_13, %c2, %c0_14] : memref<1x326x4xf32, #tpu.memory_space<vmem>>, vector<1x288x4xf32>
    %17 = vector.shape_cast %16 : vector<1x288x4xf32> to vector<288x4xf32>
    %c2_15 = arith.constant 2 : index
    %c0_16 = arith.constant 0 : index
    %c0_17 = arith.constant 0 : index
    %18 = vector.load %arg2[%c2_15, %c0_16, %c0_17] : memref<9x4x128xf32, #tpu.memory_space<vmem>>, vector<1x4x128xf32>
    %19 = vector.shape_cast %18 : vector<1x4x128xf32> to vector<4x128xf32>
    %cst_18 = arith.constant dense<0.000000e+00> : vector<288x128xf32>
    %20 = tpu.matmul %17, %19, %cst_18 {dimension_numbers = #tpu.dot_dimension_numbers<[1], [0], [0], [1], [0, 0, 1, 1], [], []>} : vector<288x4xf32>, vector<4x128xf32>, vector<288x128xf32> -> vector<288x128xf32>
    %21 = arith.addf %15, %20 : vector<288x128xf32>
    %c0_19 = arith.constant 0 : index
    %c18 = arith.constant 18 : index
    %c0_20 = arith.constant 0 : index
    %22 = vector.load %arg1[%c0_19, %c18, %c0_20] : memref<1x326x4xf32, #tpu.memory_space<vmem>>, vector<1x288x4xf32>
    %23 = vector.shape_cast %22 : vector<1x288x4xf32> to vector<288x4xf32>
    %c3 = arith.constant 3 : index
    %c0_21 = arith.constant 0 : index
    %c0_22 = arith.constant 0 : index
    %24 = vector.load %arg2[%c3, %c0_21, %c0_22] : memref<9x4x128xf32, #tpu.memory_space<vmem>>, vector<1x4x128xf32>
    %25 = vector.shape_cast %24 : vector<1x4x128xf32> to vector<4x128xf32>
    %cst_23 = arith.constant dense<0.000000e+00> : vector<288x128xf32>
    %26 = tpu.matmul %23, %25, %cst_23 {dimension_numbers = #tpu.dot_dimension_numbers<[1], [0], [0], [1], [0, 0, 1, 1], [], []>} : vector<288x4xf32>, vector<4x128xf32>, vector<288x128xf32> -> vector<288x128xf32>
    %27 = arith.addf %21, %26 : vector<288x128xf32>
    %c0_24 = arith.constant 0 : index
    %c19 = arith.constant 19 : index
    %c0_25 = arith.constant 0 : index
    %28 = vector.load %arg1[%c0_24, %c19, %c0_25] : memref<1x326x4xf32, #tpu.memory_space<vmem>>, vector<1x288x4xf32>
    %29 = vector.shape_cast %28 : vector<1x288x4xf32> to vector<288x4xf32>
    %c4 = arith.constant 4 : index
    %c0_26 = arith.constant 0 : index
    %c0_27 = arith.constant 0 : index
    %30 = vector.load %arg2[%c4, %c0_26, %c0_27] : memref<9x4x128xf32, #tpu.memory_space<vmem>>, vector<1x4x128xf32>
    %31 = vector.shape_cast %30 : vector<1x4x128xf32> to vector<4x128xf32>
    %cst_28 = arith.constant dense<0.000000e+00> : vector<288x128xf32>
    %32 = tpu.matmul %29, %31, %cst_28 {dimension_numbers = #tpu.dot_dimension_numbers<[1], [0], [0], [1], [0, 0, 1, 1], [], []>} : vector<288x4xf32>, vector<4x128xf32>, vector<288x128xf32> -> vector<288x128xf32>
    %33 = arith.addf %27, %32 : vector<288x128xf32>
    %c0_29 = arith.constant 0 : index
    %c20 = arith.constant 20 : index
    %c0_30 = arith.constant 0 : index
    %34 = vector.load %arg1[%c0_29, %c20, %c0_30] : memref<1x326x4xf32, #tpu.memory_space<vmem>>, vector<1x288x4xf32>
    %35 = vector.shape_cast %34 : vector<1x288x4xf32> to vector<288x4xf32>
    %c5 = arith.constant 5 : index
    %c0_31 = arith.constant 0 : index
    %c0_32 = arith.constant 0 : index
    %36 = vector.load %arg2[%c5, %c0_31, %c0_32] : memref<9x4x128xf32, #tpu.memory_space<vmem>>, vector<1x4x128xf32>
    %37 = vector.shape_cast %36 : vector<1x4x128xf32> to vector<4x128xf32>
    %cst_33 = arith.constant dense<0.000000e+00> : vector<288x128xf32>
    %38 = tpu.matmul %35, %37, %cst_33 {dimension_numbers = #tpu.dot_dimension_numbers<[1], [0], [0], [1], [0, 0, 1, 1], [], []>} : vector<288x4xf32>, vector<4x128xf32>, vector<288x128xf32> -> vector<288x128xf32>
    %39 = arith.addf %33, %38 : vector<288x128xf32>
    %c0_34 = arith.constant 0 : index
    %c36 = arith.constant 36 : index
    %c0_35 = arith.constant 0 : index
    %40 = vector.load %arg1[%c0_34, %c36, %c0_35] : memref<1x326x4xf32, #tpu.memory_space<vmem>>, vector<1x288x4xf32>
    %41 = vector.shape_cast %40 : vector<1x288x4xf32> to vector<288x4xf32>
    %c6 = arith.constant 6 : index
    %c0_36 = arith.constant 0 : index
    %c0_37 = arith.constant 0 : index
    %42 = vector.load %arg2[%c6, %c0_36, %c0_37] : memref<9x4x128xf32, #tpu.memory_space<vmem>>, vector<1x4x128xf32>
    %43 = vector.shape_cast %42 : vector<1x4x128xf32> to vector<4x128xf32>
    %cst_38 = arith.constant dense<0.000000e+00> : vector<288x128xf32>
    %44 = tpu.matmul %41, %43, %cst_38 {dimension_numbers = #tpu.dot_dimension_numbers<[1], [0], [0], [1], [0, 0, 1, 1], [], []>} : vector<288x4xf32>, vector<4x128xf32>, vector<288x128xf32> -> vector<288x128xf32>
    %45 = arith.addf %39, %44 : vector<288x128xf32>
    %c0_39 = arith.constant 0 : index
    %c37 = arith.constant 37 : index
    %c0_40 = arith.constant 0 : index
    %46 = vector.load %arg1[%c0_39, %c37, %c0_40] : memref<1x326x4xf32, #tpu.memory_space<vmem>>, vector<1x288x4xf32>
    %47 = vector.shape_cast %46 : vector<1x288x4xf32> to vector<288x4xf32>
    %c7 = arith.constant 7 : index
    %c0_41 = arith.constant 0 : index
    %c0_42 = arith.constant 0 : index
    %48 = vector.load %arg2[%c7, %c0_41, %c0_42] : memref<9x4x128xf32, #tpu.memory_space<vmem>>, vector<1x4x128xf32>
    %49 = vector.shape_cast %48 : vector<1x4x128xf32> to vector<4x128xf32>
    %cst_43 = arith.constant dense<0.000000e+00> : vector<288x128xf32>
    %50 = tpu.matmul %47, %49, %cst_43 {dimension_numbers = #tpu.dot_dimension_numbers<[1], [0], [0], [1], [0, 0, 1, 1], [], []>} : vector<288x4xf32>, vector<4x128xf32>, vector<288x128xf32> -> vector<288x128xf32>
    %51 = arith.addf %45, %50 : vector<288x128xf32>
    %c0_44 = arith.constant 0 : index
    %c38 = arith.constant 38 : index
    %c0_45 = arith.constant 0 : index
    %52 = vector.load %arg1[%c0_44, %c38, %c0_45] : memref<1x326x4xf32, #tpu.memory_space<vmem>>, vector<1x288x4xf32>
    %53 = vector.shape_cast %52 : vector<1x288x4xf32> to vector<288x4xf32>
    %c8 = arith.constant 8 : index
    %c0_46 = arith.constant 0 : index
    %c0_47 = arith.constant 0 : index
    %54 = vector.load %arg2[%c8, %c0_46, %c0_47] : memref<9x4x128xf32, #tpu.memory_space<vmem>>, vector<1x4x128xf32>
    %55 = vector.shape_cast %54 : vector<1x4x128xf32> to vector<4x128xf32>
    %cst_48 = arith.constant dense<0.000000e+00> : vector<288x128xf32>
    %56 = tpu.matmul %53, %55, %cst_48 {dimension_numbers = #tpu.dot_dimension_numbers<[1], [0], [0], [1], [0, 0, 1, 1], [], []>} : vector<288x4xf32>, vector<4x128xf32>, vector<288x128xf32> -> vector<288x128xf32>
    %57 = arith.addf %51, %56 : vector<288x128xf32>
    %c0_49 = arith.constant 0 : index
    %c0_50 = arith.constant 0 : index
    %58 = vector.load %arg6[%c0_49, %c0_50] : memref<288x128xf32, #tpu.memory_space<vmem>>, vector<288x128xf32>
    tpu.vector_store %arg6[%c0_49, %c0_50], %57 {strides = array<i32>} : memref<288x128xf32, #tpu.memory_space<vmem>>, vector<288x128xf32>,
    %cst_51 = arith.constant 0.000000e+00 : f32
    %59 = vector.broadcast %cst_51 : f32 to vector<1x128xf32>
    %cst_52 = arith.constant 0.000000e+00 : f32
    %60 = vector.broadcast %cst_52 : f32 to vector<1x128xf32>
    %c0_53 = arith.constant 0 : index
    %c0_54 = arith.constant 0 : index
    %61 = vector.load %arg6[%c0_53, %c0_54] : memref<288x128xf32, #tpu.memory_space<vmem>>, vector<16x128xf32>
    %cst_55 = arith.constant dense<0.000000e+00> : vector<128xf32>
    %62 = vector.multi_reduction <add>, %61, %cst_55 [0] : vector<16x128xf32> to vector<128xf32>
    %63 = vector.shape_cast %62 : vector<128xf32> to vector<1x128xf32>
    %64 = arith.addf %59, %63 : vector<1x128xf32>
    %65 = arith.mulf %61, %61 : vector<16x128xf32>
    %cst_56 = arith.constant dense<0.000000e+00> : vector<128xf32>
    %66 = vector.multi_reduction <add>, %65, %cst_56 [0] : vector<16x128xf32> to vector<128xf32>
    %67 = vector.shape_cast %66 : vector<128xf32> to vector<1x128xf32>
    %68 = arith.addf %60, %67 : vector<1x128xf32>
    %69 = vector.extract_strided_slice %61 {offsets = [0, 0], sizes = [16, 8], strides = [1, 1]} : vector<16x128xf32> to vector<16x8xf32>
    %70 = arith.index_cast %arg0 : i32 to index
    %c0_57 = arith.constant 0 : index
    %c0_58 = arith.constant 0 : index
    %c0_59 = arith.constant 0 : index
    %71 = vector.load %arg5[%70, %c0_57, %c0_58, %c0_59] : memref<2x16x16x8xf32, #tpu.memory_space<vmem>>, vector<1x1x16x8xf32>
    %72 = vector.shape_cast %71 : vector<1x1x16x8xf32> to vector<16x8xf32>
    %73 = vector.shape_cast %69 : vector<16x8xf32> to vector<1x1x16x8xf32>
    tpu.vector_store %arg5[%70, %c0_57, %c0_58, %c0_59], %73 {strides = array<i32>} : memref<2x16x16x8xf32, #tpu.memory_space<vmem>>, vector<1x1x16x8xf32>,
    %c18_60 = arith.constant 18 : index
    %c0_61 = arith.constant 0 : index
    %74 = vector.load %arg6[%c18_60, %c0_61] : memref<288x128xf32, #tpu.memory_space<vmem>>, vector<16x128xf32>
    %cst_62 = arith.constant dense<0.000000e+00> : vector<128xf32>
    %75 = vector.multi_reduction <add>, %74, %cst_62 [0] : vector<16x128xf32> to vector<128xf32>
    %76 = vector.shape_cast %75 : vector<128xf32> to vector<1x128xf32>
    %77 = arith.addf %64, %76 : vector<1x128xf32>
    %78 = arith.mulf %74, %74 : vector<16x128xf32>
    %cst_63 = arith.constant dense<0.000000e+00> : vector<128xf32>
    %79 = vector.multi_reduction <add>, %78, %cst_63 [0] : vector<16x128xf32> to vector<128xf32>
    %80 = vector.shape_cast %79 : vector<128xf32> to vector<1x128xf32>
    %81 = arith.addf %68, %80 : vector<1x128xf32>
    %82 = vector.extract_strided_slice %74 {offsets = [0, 0], sizes = [16, 8], strides = [1, 1]} : vector<16x128xf32> to vector<16x8xf32>
    %83 = arith.index_cast %arg0 : i32 to index
    %c1_64 = arith.constant 1 : index
    %c0_65 = arith.constant 0 : index
    %c0_66 = arith.constant 0 : index
    %84 = vector.load %arg5[%83, %c1_64, %c0_65, %c0_66] : memref<2x16x16x8xf32, #tpu.memory_space<vmem>>, vector<1x1x16x8xf32>
    %85 = vector.shape_cast %84 : vector<1x1x16x8xf32> to vector<16x8xf32>
    %86 = vector.shape_cast %82 : vector<16x8xf32> to vector<1x1x16x8xf32>
    tpu.vector_store %arg5[%83, %c1_64, %c0_65, %c0_66], %86 {strides = array<i32>} : memref<2x16x16x8xf32, #tpu.memory_space<vmem>>, vector<1x1x16x8xf32>,
    %c36_67 = arith.constant 36 : index
    %c0_68 = arith.constant 0 : index
    %87 = vector.load %arg6[%c36_67, %c0_68] : memref<288x128xf32, #tpu.memory_space<vmem>>, vector<16x128xf32>
    %cst_69 = arith.constant dense<0.000000e+00> : vector<128xf32>
    %88 = vector.multi_reduction <add>, %87, %cst_69 [0] : vector<16x128xf32> to vector<128xf32>
    %89 = vector.shape_cast %88 : vector<128xf32> to vector<1x128xf32>
    %90 = arith.addf %77, %89 : vector<1x128xf32>
    %91 = arith.mulf %87, %87 : vector<16x128xf32>
    %cst_70 = arith.constant dense<0.000000e+00> : vector<128xf32>
    %92 = vector.multi_reduction <add>, %91, %cst_70 [0] : vector<16x128xf32> to vector<128xf32>
    %93 = vector.shape_cast %92 : vector<128xf32> to vector<1x128xf32>
    %94 = arith.addf %81, %93 : vector<1x128xf32>
    %95 = vector.extract_strided_slice %87 {offsets = [0, 0], sizes = [16, 8], strides = [1, 1]} : vector<16x128xf32> to vector<16x8xf32>
    %96 = arith.index_cast %arg0 : i32 to index
    %c2_71 = arith.constant 2 : index
    %c0_72 = arith.constant 0 : index
    %c0_73 = arith.constant 0 : index
    %97 = vector.load %arg5[%96, %c2_71, %c0_72, %c0_73] : memref<2x16x16x8xf32, #tpu.memory_space<vmem>>, vector<1x1x16x8xf32>
    %98 = vector.shape_cast %97 : vector<1x1x16x8xf32> to vector<16x8xf32>
    %99 = vector.shape_cast %95 : vector<16x8xf32> to vector<1x1x16x8xf32>
    tpu.vector_store %arg5[%96, %c2_71, %c0_72, %c0_73], %99 {strides = array<i32>} : memref<2x16x16x8xf32, #tpu.memory_space<vmem>>, vector<1x1x16x8xf32>,
    %c54 = arith.constant 54 : index
    %c0_74 = arith.constant 0 : index
    %100 = vector.load %arg6[%c54, %c0_74] : memref<288x128xf32, #tpu.memory_space<vmem>>, vector<16x128xf32>
    %cst_75 = arith.constant dense<0.000000e+00> : vector<128xf32>
    %101 = vector.multi_reduction <add>, %100, %cst_75 [0] : vector<16x128xf32> to vector<128xf32>
    %102 = vector.shape_cast %101 : vector<128xf32> to vector<1x128xf32>
    %103 = arith.addf %90, %102 : vector<1x128xf32>
    %104 = arith.mulf %100, %100 : vector<16x128xf32>
    %cst_76 = arith.constant dense<0.000000e+00> : vector<128xf32>
    %105 = vector.multi_reduction <add>, %104, %cst_76 [0] : vector<16x128xf32> to vector<128xf32>
    %106 = vector.shape_cast %105 : vector<128xf32> to vector<1x128xf32>
    %107 = arith.addf %94, %106 : vector<1x128xf32>
    %108 = vector.extract_strided_slice %100 {offsets = [0, 0], sizes = [16, 8], strides = [1, 1]} : vector<16x128xf32> to vector<16x8xf32>
    %109 = arith.index_cast %arg0 : i32 to index
    %c3_77 = arith.constant 3 : index
    %c0_78 = arith.constant 0 : index
    %c0_79 = arith.constant 0 : index
    %110 = vector.load %arg5[%109, %c3_77, %c0_78, %c0_79] : memref<2x16x16x8xf32, #tpu.memory_space<vmem>>, vector<1x1x16x8xf32>
    %111 = vector.shape_cast %110 : vector<1x1x16x8xf32> to vector<16x8xf32>
    %112 = vector.shape_cast %108 : vector<16x8xf32> to vector<1x1x16x8xf32>
    tpu.vector_store %arg5[%109, %c3_77, %c0_78, %c0_79], %112 {strides = array<i32>} : memref<2x16x16x8xf32, #tpu.memory_space<vmem>>, vector<1x1x16x8xf32>,
    %c72 = arith.constant 72 : index
    %c0_80 = arith.constant 0 : index
    %113 = vector.load %arg6[%c72, %c0_80] : memref<288x128xf32, #tpu.memory_space<vmem>>, vector<16x128xf32>
    %cst_81 = arith.constant dense<0.000000e+00> : vector<128xf32>
    %114 = vector.multi_reduction <add>, %113, %cst_81 [0] : vector<16x128xf32> to vector<128xf32>
    %115 = vector.shape_cast %114 : vector<128xf32> to vector<1x128xf32>
    %116 = arith.addf %103, %115 : vector<1x128xf32>
    %117 = arith.mulf %113, %113 : vector<16x128xf32>
    %cst_82 = arith.constant dense<0.000000e+00> : vector<128xf32>
    %118 = vector.multi_reduction <add>, %117, %cst_82 [0] : vector<16x128xf32> to vector<128xf32>
    %119 = vector.shape_cast %118 : vector<128xf32> to vector<1x128xf32>
    %120 = arith.addf %107, %119 : vector<1x128xf32>
    %121 = vector.extract_strided_slice %113 {offsets = [0, 0], sizes = [16, 8], strides = [1, 1]} : vector<16x128xf32> to vector<16x8xf32>
    %122 = arith.index_cast %arg0 : i32 to index
    %c4_83 = arith.constant 4 : index
    %c0_84 = arith.constant 0 : index
    %c0_85 = arith.constant 0 : index
    %123 = vector.load %arg5[%122, %c4_83, %c0_84, %c0_85] : memref<2x16x16x8xf32, #tpu.memory_space<vmem>>, vector<1x1x16x8xf32>
    %124 = vector.shape_cast %123 : vector<1x1x16x8xf32> to vector<16x8xf32>
    %125 = vector.shape_cast %121 : vector<16x8xf32> to vector<1x1x16x8xf32>
    tpu.vector_store %arg5[%122, %c4_83, %c0_84, %c0_85], %125 {strides = array<i32>} : memref<2x16x16x8xf32, #tpu.memory_space<vmem>>, vector<1x1x16x8xf32>,
    %c90 = arith.constant 90 : index
    %c0_86 = arith.constant 0 : index
    %126 = vector.load %arg6[%c90, %c0_86] : memref<288x128xf32, #tpu.memory_space<vmem>>, vector<16x128xf32>
    %cst_87 = arith.constant dense<0.000000e+00> : vector<128xf32>
    %127 = vector.multi_reduction <add>, %126, %cst_87 [0] : vector<16x128xf32> to vector<128xf32>
    %128 = vector.shape_cast %127 : vector<128xf32> to vector<1x128xf32>
    %129 = arith.addf %116, %128 : vector<1x128xf32>
    %130 = arith.mulf %126, %126 : vector<16x128xf32>
    %cst_88 = arith.constant dense<0.000000e+00> : vector<128xf32>
    %131 = vector.multi_reduction <add>, %130, %cst_88 [0] : vector<16x128xf32> to vector<128xf32>
    %132 = vector.shape_cast %131 : vector<128xf32> to vector<1x128xf32>
    %133 = arith.addf %120, %132 : vector<1x128xf32>
    %134 = vector.extract_strided_slice %126 {offsets = [0, 0], sizes = [16, 8], strides = [1, 1]} : vector<16x128xf32> to vector<16x8xf32>
    %135 = arith.index_cast %arg0 : i32 to index
    %c5_89 = arith.constant 5 : index
    %c0_90 = arith.constant 0 : index
    %c0_91 = arith.constant 0 : index
    %136 = vector.load %arg5[%135, %c5_89, %c0_90, %c0_91] : memref<2x16x16x8xf32, #tpu.memory_space<vmem>>, vector<1x1x16x8xf32>
    %137 = vector.shape_cast %136 : vector<1x1x16x8xf32> to vector<16x8xf32>
    %138 = vector.shape_cast %134 : vector<16x8xf32> to vector<1x1x16x8xf32>
    tpu.vector_store %arg5[%135, %c5_89, %c0_90, %c0_91], %138 {strides = array<i32>} : memref<2x16x16x8xf32, #tpu.memory_space<vmem>>, vector<1x1x16x8xf32>,
    %c108 = arith.constant 108 : index
    %c0_92 = arith.constant 0 : index
    %139 = vector.load %arg6[%c108, %c0_92] : memref<288x128xf32, #tpu.memory_space<vmem>>, vector<16x128xf32>
    %cst_93 = arith.constant dense<0.000000e+00> : vector<128xf32>
    %140 = vector.multi_reduction <add>, %139, %cst_93 [0] : vector<16x128xf32> to vector<128xf32>
    %141 = vector.shape_cast %140 : vector<128xf32> to vector<1x128xf32>
    %142 = arith.addf %129, %141 : vector<1x128xf32>
    %143 = arith.mulf %139, %139 : vector<16x128xf32>
    %cst_94 = arith.constant dense<0.000000e+00> : vector<128xf32>
    %144 = vector.multi_reduction <add>, %143, %cst_94 [0] : vector<16x128xf32> to vector<128xf32>
    %145 = vector.shape_cast %144 : vector<128xf32> to vector<1x128xf32>
    %146 = arith.addf %133, %145 : vector<1x128xf32>
    %147 = vector.extract_strided_slice %139 {offsets = [0, 0], sizes = [16, 8], strides = [1, 1]} : vector<16x128xf32> to vector<16x8xf32>
    %148 = arith.index_cast %arg0 : i32 to index
    %c6_95 = arith.constant 6 : index
    %c0_96 = arith.constant 0 : index
    %c0_97 = arith.constant 0 : index
    %149 = vector.load %arg5[%148, %c6_95, %c0_96, %c0_97] : memref<2x16x16x8xf32, #tpu.memory_space<vmem>>, vector<1x1x16x8xf32>
    %150 = vector.shape_cast %149 : vector<1x1x16x8xf32> to vector<16x8xf32>
    %151 = vector.shape_cast %147 : vector<16x8xf32> to vector<1x1x16x8xf32>
    tpu.vector_store %arg5[%148, %c6_95, %c0_96, %c0_97], %151 {strides = array<i32>} : memref<2x16x16x8xf32, #tpu.memory_space<vmem>>, vector<1x1x16x8xf32>,
    %c126 = arith.constant 126 : index
    %c0_98 = arith.constant 0 : index
    %152 = vector.load %arg6[%c126, %c0_98] : memref<288x128xf32, #tpu.memory_space<vmem>>, vector<16x128xf32>
    %cst_99 = arith.constant dense<0.000000e+00> : vector<128xf32>
    %153 = vector.multi_reduction <add>, %152, %cst_99 [0] : vector<16x128xf32> to vector<128xf32>
    %154 = vector.shape_cast %153 : vector<128xf32> to vector<1x128xf32>
    %155 = arith.addf %142, %154 : vector<1x128xf32>
    %156 = arith.mulf %152, %152 : vector<16x128xf32>
    %cst_100 = arith.constant dense<0.000000e+00> : vector<128xf32>
    %157 = vector.multi_reduction <add>, %156, %cst_100 [0] : vector<16x128xf32> to vector<128xf32>
    %158 = vector.shape_cast %157 : vector<128xf32> to vector<1x128xf32>
    %159 = arith.addf %146, %158 : vector<1x128xf32>
    %160 = vector.extract_strided_slice %152 {offsets = [0, 0], sizes = [16, 8], strides = [1, 1]} : vector<16x128xf32> to vector<16x8xf32>
    %161 = arith.index_cast %arg0 : i32 to index
    %c7_101 = arith.constant 7 : index
    %c0_102 = arith.constant 0 : index
    %c0_103 = arith.constant 0 : index
    %162 = vector.load %arg5[%161, %c7_101, %c0_102, %c0_103] : memref<2x16x16x8xf32, #tpu.memory_space<vmem>>, vector<1x1x16x8xf32>
    %163 = vector.shape_cast %162 : vector<1x1x16x8xf32> to vector<16x8xf32>
    %164 = vector.shape_cast %160 : vector<16x8xf32> to vector<1x1x16x8xf32>
    tpu.vector_store %arg5[%161, %c7_101, %c0_102, %c0_103], %164 {strides = array<i32>} : memref<2x16x16x8xf32, #tpu.memory_space<vmem>>, vector<1x1x16x8xf32>,
    %c144 = arith.constant 144 : index
    %c0_104 = arith.constant 0 : index
    %165 = vector.load %arg6[%c144, %c0_104] : memref<288x128xf32, #tpu.memory_space<vmem>>, vector<16x128xf32>
    %cst_105 = arith.constant dense<0.000000e+00> : vector<128xf32>
    %166 = vector.multi_reduction <add>, %165, %cst_105 [0] : vector<16x128xf32> to vector<128xf32>
    %167 = vector.shape_cast %166 : vector<128xf32> to vector<1x128xf32>
    %168 = arith.addf %155, %167 : vector<1x128xf32>
    %169 = arith.mulf %165, %165 : vector<16x128xf32>
    %cst_106 = arith.constant dense<0.000000e+00> : vector<128xf32>
    %170 = vector.multi_reduction <add>, %169, %cst_106 [0] : vector<16x128xf32> to vector<128xf32>
    %171 = vector.shape_cast %170 : vector<128xf32> to vector<1x128xf32>
    %172 = arith.addf %159, %171 : vector<1x128xf32>
    %173 = vector.extract_strided_slice %165 {offsets = [0, 0], sizes = [16, 8], strides = [1, 1]} : vector<16x128xf32> to vector<16x8xf32>
    %174 = arith.index_cast %arg0 : i32 to index
    %c8_107 = arith.constant 8 : index
    %c0_108 = arith.constant 0 : index
    %c0_109 = arith.constant 0 : index
    %175 = vector.load %arg5[%174, %c8_107, %c0_108, %c0_109] : memref<2x16x16x8xf32, #tpu.memory_space<vmem>>, vector<1x1x16x8xf32>
    %176 = vector.shape_cast %175 : vector<1x1x16x8xf32> to vector<16x8xf32>
    %177 = vector.shape_cast %173 : vector<16x8xf32> to vector<1x1x16x8xf32>
    tpu.vector_store %arg5[%174, %c8_107, %c0_108, %c0_109], %177 {strides = array<i32>} : memref<2x16x16x8xf32, #tpu.memory_space<vmem>>, vector<1x1x16x8xf32>,
    %c162 = arith.constant 162 : index
    %c0_110 = arith.constant 0 : index
    %178 = vector.load %arg6[%c162, %c0_110] : memref<288x128xf32, #tpu.memory_space<vmem>>, vector<16x128xf32>
    %cst_111 = arith.constant dense<0.000000e+00> : vector<128xf32>
    %179 = vector.multi_reduction <add>, %178, %cst_111 [0] : vector<16x128xf32> to vector<128xf32>
    %180 = vector.shape_cast %179 : vector<128xf32> to vector<1x128xf32>
    %181 = arith.addf %168, %180 : vector<1x128xf32>
    %182 = arith.mulf %178, %178 : vector<16x128xf32>
    %cst_112 = arith.constant dense<0.000000e+00> : vector<128xf32>
    %183 = vector.multi_reduction <add>, %182, %cst_112 [0] : vector<16x128xf32> to vector<128xf32>
    %184 = vector.shape_cast %183 : vector<128xf32> to vector<1x128xf32>
    %185 = arith.addf %172, %184 : vector<1x128xf32>
    %186 = vector.extract_strided_slice %178 {offsets = [0, 0], sizes = [16, 8], strides = [1, 1]} : vector<16x128xf32> to vector<16x8xf32>
    %187 = arith.index_cast %arg0 : i32 to index
    %c9 = arith.constant 9 : index
    %c0_113 = arith.constant 0 : index
    %c0_114 = arith.constant 0 : index
    %188 = vector.load %arg5[%187, %c9, %c0_113, %c0_114] : memref<2x16x16x8xf32, #tpu.memory_space<vmem>>, vector<1x1x16x8xf32>
    %189 = vector.shape_cast %188 : vector<1x1x16x8xf32> to vector<16x8xf32>
    %190 = vector.shape_cast %186 : vector<16x8xf32> to vector<1x1x16x8xf32>
    tpu.vector_store %arg5[%187, %c9, %c0_113, %c0_114], %190 {strides = array<i32>} : memref<2x16x16x8xf32, #tpu.memory_space<vmem>>, vector<1x1x16x8xf32>,
    %c180 = arith.constant 180 : index
    %c0_115 = arith.constant 0 : index
    %191 = vector.load %arg6[%c180, %c0_115] : memref<288x128xf32, #tpu.memory_space<vmem>>, vector<16x128xf32>
    %cst_116 = arith.constant dense<0.000000e+00> : vector<128xf32>
    %192 = vector.multi_reduction <add>, %191, %cst_116 [0] : vector<16x128xf32> to vector<128xf32>
    %193 = vector.shape_cast %192 : vector<128xf32> to vector<1x128xf32>
    %194 = arith.addf %181, %193 : vector<1x128xf32>
    %195 = arith.mulf %191, %191 : vector<16x128xf32>
    %cst_117 = arith.constant dense<0.000000e+00> : vector<128xf32>
    %196 = vector.multi_reduction <add>, %195, %cst_117 [0] : vector<16x128xf32> to vector<128xf32>
    %197 = vector.shape_cast %196 : vector<128xf32> to vector<1x128xf32>
    %198 = arith.addf %185, %197 : vector<1x128xf32>
    %199 = vector.extract_strided_slice %191 {offsets = [0, 0], sizes = [16, 8], strides = [1, 1]} : vector<16x128xf32> to vector<16x8xf32>
    %200 = arith.index_cast %arg0 : i32 to index
    %c10 = arith.constant 10 : index
    %c0_118 = arith.constant 0 : index
    %c0_119 = arith.constant 0 : index
    %201 = vector.load %arg5[%200, %c10, %c0_118, %c0_119] : memref<2x16x16x8xf32, #tpu.memory_space<vmem>>, vector<1x1x16x8xf32>
    %202 = vector.shape_cast %201 : vector<1x1x16x8xf32> to vector<16x8xf32>
    %203 = vector.shape_cast %199 : vector<16x8xf32> to vector<1x1x16x8xf32>
    tpu.vector_store %arg5[%200, %c10, %c0_118, %c0_119], %203 {strides = array<i32>} : memref<2x16x16x8xf32, #tpu.memory_space<vmem>>, vector<1x1x16x8xf32>,
    %c198 = arith.constant 198 : index
    %c0_120 = arith.constant 0 : index
    %204 = vector.load %arg6[%c198, %c0_120] : memref<288x128xf32, #tpu.memory_space<vmem>>, vector<16x128xf32>
    %cst_121 = arith.constant dense<0.000000e+00> : vector<128xf32>
    %205 = vector.multi_reduction <add>, %204, %cst_121 [0] : vector<16x128xf32> to vector<128xf32>
    %206 = vector.shape_cast %205 : vector<128xf32> to vector<1x128xf32>
    %207 = arith.addf %194, %206 : vector<1x128xf32>
    %208 = arith.mulf %204, %204 : vector<16x128xf32>
    %cst_122 = arith.constant dense<0.000000e+00> : vector<128xf32>
    %209 = vector.multi_reduction <add>, %208, %cst_122 [0] : vector<16x128xf32> to vector<128xf32>
    %210 = vector.shape_cast %209 : vector<128xf32> to vector<1x128xf32>
    %211 = arith.addf %198, %210 : vector<1x128xf32>
    %212 = vector.extract_strided_slice %204 {offsets = [0, 0], sizes = [16, 8], strides = [1, 1]} : vector<16x128xf32> to vector<16x8xf32>
    %213 = arith.index_cast %arg0 : i32 to index
    %c11 = arith.constant 11 : index
    %c0_123 = arith.constant 0 : index
    %c0_124 = arith.constant 0 : index
    %214 = vector.load %arg5[%213, %c11, %c0_123, %c0_124] : memref<2x16x16x8xf32, #tpu.memory_space<vmem>>, vector<1x1x16x8xf32>
    %215 = vector.shape_cast %214 : vector<1x1x16x8xf32> to vector<16x8xf32>
    %216 = vector.shape_cast %212 : vector<16x8xf32> to vector<1x1x16x8xf32>
    tpu.vector_store %arg5[%213, %c11, %c0_123, %c0_124], %216 {strides = array<i32>} : memref<2x16x16x8xf32, #tpu.memory_space<vmem>>, vector<1x1x16x8xf32>,
    %c216 = arith.constant 216 : index
    %c0_125 = arith.constant 0 : index
    %217 = vector.load %arg6[%c216, %c0_125] : memref<288x128xf32, #tpu.memory_space<vmem>>, vector<16x128xf32>
    %cst_126 = arith.constant dense<0.000000e+00> : vector<128xf32>
    %218 = vector.multi_reduction <add>, %217, %cst_126 [0] : vector<16x128xf32> to vector<128xf32>
    %219 = vector.shape_cast %218 : vector<128xf32> to vector<1x128xf32>
    %220 = arith.addf %207, %219 : vector<1x128xf32>
    %221 = arith.mulf %217, %217 : vector<16x128xf32>
    %cst_127 = arith.constant dense<0.000000e+00> : vector<128xf32>
    %222 = vector.multi_reduction <add>, %221, %cst_127 [0] : vector<16x128xf32> to vector<128xf32>
    %223 = vector.shape_cast %222 : vector<128xf32> to vector<1x128xf32>
    %224 = arith.addf %211, %223 : vector<1x128xf32>
    %225 = vector.extract_strided_slice %217 {offsets = [0, 0], sizes = [16, 8], strides = [1, 1]} : vector<16x128xf32> to vector<16x8xf32>
    %226 = arith.index_cast %arg0 : i32 to index
    %c12 = arith.constant 12 : index
    %c0_128 = arith.constant 0 : index
    %c0_129 = arith.constant 0 : index
    %227 = vector.load %arg5[%226, %c12, %c0_128, %c0_129] : memref<2x16x16x8xf32, #tpu.memory_space<vmem>>, vector<1x1x16x8xf32>
    %228 = vector.shape_cast %227 : vector<1x1x16x8xf32> to vector<16x8xf32>
    %229 = vector.shape_cast %225 : vector<16x8xf32> to vector<1x1x16x8xf32>
    tpu.vector_store %arg5[%226, %c12, %c0_128, %c0_129], %229 {strides = array<i32>} : memref<2x16x16x8xf32, #tpu.memory_space<vmem>>, vector<1x1x16x8xf32>,
    %c234 = arith.constant 234 : index
    %c0_130 = arith.constant 0 : index
    %230 = vector.load %arg6[%c234, %c0_130] : memref<288x128xf32, #tpu.memory_space<vmem>>, vector<16x128xf32>
    %cst_131 = arith.constant dense<0.000000e+00> : vector<128xf32>
    %231 = vector.multi_reduction <add>, %230, %cst_131 [0] : vector<16x128xf32> to vector<128xf32>
    %232 = vector.shape_cast %231 : vector<128xf32> to vector<1x128xf32>
    %233 = arith.addf %220, %232 : vector<1x128xf32>
    %234 = arith.mulf %230, %230 : vector<16x128xf32>
    %cst_132 = arith.constant dense<0.000000e+00> : vector<128xf32>
    %235 = vector.multi_reduction <add>, %234, %cst_132 [0] : vector<16x128xf32> to vector<128xf32>
    %236 = vector.shape_cast %235 : vector<128xf32> to vector<1x128xf32>
    %237 = arith.addf %224, %236 : vector<1x128xf32>
    %238 = vector.extract_strided_slice %230 {offsets = [0, 0], sizes = [16, 8], strides = [1, 1]} : vector<16x128xf32> to vector<16x8xf32>
    %239 = arith.index_cast %arg0 : i32 to index
    %c13 = arith.constant 13 : index
    %c0_133 = arith.constant 0 : index
    %c0_134 = arith.constant 0 : index
    %240 = vector.load %arg5[%239, %c13, %c0_133, %c0_134] : memref<2x16x16x8xf32, #tpu.memory_space<vmem>>, vector<1x1x16x8xf32>
    %241 = vector.shape_cast %240 : vector<1x1x16x8xf32> to vector<16x8xf32>
    %242 = vector.shape_cast %238 : vector<16x8xf32> to vector<1x1x16x8xf32>
    tpu.vector_store %arg5[%239, %c13, %c0_133, %c0_134], %242 {strides = array<i32>} : memref<2x16x16x8xf32, #tpu.memory_space<vmem>>, vector<1x1x16x8xf32>,
    %c252 = arith.constant 252 : index
    %c0_135 = arith.constant 0 : index
    %243 = vector.load %arg6[%c252, %c0_135] : memref<288x128xf32, #tpu.memory_space<vmem>>, vector<16x128xf32>
    %cst_136 = arith.constant dense<0.000000e+00> : vector<128xf32>
    %244 = vector.multi_reduction <add>, %243, %cst_136 [0] : vector<16x128xf32> to vector<128xf32>
    %245 = vector.shape_cast %244 : vector<128xf32> to vector<1x128xf32>
    %246 = arith.addf %233, %245 : vector<1x128xf32>
    %247 = arith.mulf %243, %243 : vector<16x128xf32>
    %cst_137 = arith.constant dense<0.000000e+00> : vector<128xf32>
    %248 = vector.multi_reduction <add>, %247, %cst_137 [0] : vector<16x128xf32> to vector<128xf32>
    %249 = vector.shape_cast %248 : vector<128xf32> to vector<1x128xf32>
    %250 = arith.addf %237, %249 : vector<1x128xf32>
    %251 = vector.extract_strided_slice %243 {offsets = [0, 0], sizes = [16, 8], strides = [1, 1]} : vector<16x128xf32> to vector<16x8xf32>
    %252 = arith.index_cast %arg0 : i32 to index
    %c14 = arith.constant 14 : index
    %c0_138 = arith.constant 0 : index
    %c0_139 = arith.constant 0 : index
    %253 = vector.load %arg5[%252, %c14, %c0_138, %c0_139] : memref<2x16x16x8xf32, #tpu.memory_space<vmem>>, vector<1x1x16x8xf32>
    %254 = vector.shape_cast %253 : vector<1x1x16x8xf32> to vector<16x8xf32>
    %255 = vector.shape_cast %251 : vector<16x8xf32> to vector<1x1x16x8xf32>
    tpu.vector_store %arg5[%252, %c14, %c0_138, %c0_139], %255 {strides = array<i32>} : memref<2x16x16x8xf32, #tpu.memory_space<vmem>>, vector<1x1x16x8xf32>,
    %c270 = arith.constant 270 : index
    %c0_140 = arith.constant 0 : index
    %256 = vector.load %arg6[%c270, %c0_140] : memref<288x128xf32, #tpu.memory_space<vmem>>, vector<16x128xf32>
    %cst_141 = arith.constant dense<0.000000e+00> : vector<128xf32>
    %257 = vector.multi_reduction <add>, %256, %cst_141 [0] : vector<16x128xf32> to vector<128xf32>
    %258 = vector.shape_cast %257 : vector<128xf32> to vector<1x128xf32>
    %259 = arith.addf %246, %258 : vector<1x128xf32>
    %260 = arith.mulf %256, %256 : vector<16x128xf32>
    %cst_142 = arith.constant dense<0.000000e+00> : vector<128xf32>
    %261 = vector.multi_reduction <add>, %260, %cst_142 [0] : vector<16x128xf32> to vector<128xf32>
    %262 = vector.shape_cast %261 : vector<128xf32> to vector<1x128xf32>
    %263 = arith.addf %250, %262 : vector<1x128xf32>
    %264 = vector.extract_strided_slice %256 {offsets = [0, 0], sizes = [16, 8], strides = [1, 1]} : vector<16x128xf32> to vector<16x8xf32>
    %265 = arith.index_cast %arg0 : i32 to index
    %c15 = arith.constant 15 : index
    %c0_143 = arith.constant 0 : index
    %c0_144 = arith.constant 0 : index
    %266 = vector.load %arg5[%265, %c15, %c0_143, %c0_144] : memref<2x16x16x8xf32, #tpu.memory_space<vmem>>, vector<1x1x16x8xf32>
    %267 = vector.shape_cast %266 : vector<1x1x16x8xf32> to vector<16x8xf32>
    %268 = vector.shape_cast %264 : vector<16x8xf32> to vector<1x1x16x8xf32>
    tpu.vector_store %arg5[%265, %c15, %c0_143, %c0_144], %268 {strides = array<i32>} : memref<2x16x16x8xf32, #tpu.memory_space<vmem>>, vector<1x1x16x8xf32>,
    %c0_145 = arith.constant 0 : index
    %c0_146 = arith.constant 0 : index
    %269 = vector.load %arg7[%c0_145, %c0_146] : memref<1x128xf32, #tpu.memory_space<vmem>>, vector<1x128xf32>
    %270 = arith.addf %269, %259 : vector<1x128xf32>
    %c0_147 = arith.constant 0 : index
    %c0_148 = arith.constant 0 : index
    %271 = vector.load %arg7[%c0_147, %c0_148] : memref<1x128xf32, #tpu.memory_space<vmem>>, vector<1x128xf32>
    tpu.vector_store %arg7[%c0_147, %c0_148], %270 {strides = array<i32>} : memref<1x128xf32, #tpu.memory_space<vmem>>, vector<1x128xf32>,
    %c0_149 = arith.constant 0 : index
    %c0_150 = arith.constant 0 : index
    %272 = vector.load %arg8[%c0_149, %c0_150] : memref<1x128xf32, #tpu.memory_space<vmem>>, vector<1x128xf32>
    %273 = arith.addf %272, %263 : vector<1x128xf32>
    %c0_151 = arith.constant 0 : index
    %c0_152 = arith.constant 0 : index
    %274 = vector.load %arg8[%c0_151, %c0_152] : memref<1x128xf32, #tpu.memory_space<vmem>>, vector<1x128xf32>
    tpu.vector_store %arg8[%c0_151, %c0_152], %273 {strides = array<i32>} : memref<1x128xf32, #tpu.memory_space<vmem>>, vector<1x128xf32>,
    %c1_i32 = arith.constant 1 : i32
    %275 = arith.cmpi eq, %arg0, %c1_i32 : i32
    %276 = arith.extui %275 : i1 to i32
    %c0_i32_153 = arith.constant 0 : i32
    %277 = arith.cmpi ne, %276, %c0_i32_153 : i32
    scf.if %277 {
      %c0_154 = arith.constant 0 : index
      %c0_155 = arith.constant 0 : index
      %278 = vector.load %arg7[%c0_154, %c0_155] : memref<1x128xf32, #tpu.memory_space<vmem>>, vector<1x128xf32>
      %cst_156 = arith.constant 0.001953125 : f32
      %279 = vector.broadcast %cst_156 : f32 to vector<1x128xf32>
      %280 = arith.mulf %278, %279 : vector<1x128xf32>
      %c0_157 = arith.constant 0 : index
      %c0_158 = arith.constant 0 : index
      %281 = vector.load %arg8[%c0_157, %c0_158] : memref<1x128xf32, #tpu.memory_space<vmem>>, vector<1x128xf32>
      %cst_159 = arith.constant 0.001953125 : f32
      %282 = vector.broadcast %cst_159 : f32 to vector<1x128xf32>
      %283 = arith.mulf %281, %282 : vector<1x128xf32>
      %284 = arith.mulf %280, %280 : vector<1x128xf32>
      %285 = arith.subf %283, %284 : vector<1x128xf32>
      %c0_160 = arith.constant 0 : index
      %c0_161 = arith.constant 0 : index
      %286 = vector.load %arg3[%c0_160, %c0_161] : memref<1x128xf32, #tpu.memory_space<vmem>>, vector<1x128xf32>
      %cst_162 = arith.constant 9.99999974E-6 : f32
      %287 = vector.broadcast %cst_162 : f32 to vector<1x128xf32>
      %288 = arith.addf %285, %287 : vector<1x128xf32>
      %289 = math.rsqrt %288 : vector<1x128xf32>
      %290 = arith.mulf %286, %289 : vector<1x128xf32>
      %c0_163 = arith.constant 0 : index
      %c0_164 = arith.constant 0 : index
      %291 = vector.load %arg4[%c0_163, %c0_164] : memref<1x128xf32, #tpu.memory_space<vmem>>, vector<1x128xf32>
      %292 = arith.mulf %280, %290 : vector<1x128xf32>
      %293 = arith.subf %291, %292 : vector<1x128xf32>
      %c0_165 = arith.constant 0 : index
      %c0_166 = arith.constant 0 : index
      %c0_167 = arith.constant 0 : index
      %c0_168 = arith.constant 0 : index
      %294 = vector.load %arg5[%c0_165, %c0_166, %c0_167, %c0_168] : memref<2x16x16x8xf32, #tpu.memory_space<vmem>>, vector<2x16x16x8xf32>
      %295 = vector.extract_strided_slice %290 {offsets = [0, 0], sizes = [1, 8], strides = [1, 1]} : vector<1x128xf32> to vector<1x8xf32>
      %296 = vector.shape_cast %295 : vector<1x8xf32> to vector<1x1x1x8xf32>
      %297 = vector.broadcast %296 : vector<1x1x1x8xf32> to vector<2x16x16x8xf32>
      %298 = arith.mulf %294, %297 : vector<2x16x16x8xf32>
      %299 = vector.extract_strided_slice %293 {offsets = [0, 0], sizes = [1, 8], strides = [1, 1]} : vector<1x128xf32> to vector<1x8xf32>
      %300 = vector.shape_cast %299 : vector<1x8xf32> to vector<1x1x1x8xf32>
      %301 = vector.broadcast %300 : vector<1x1x1x8xf32> to vector<2x16x16x8xf32>
      %302 = arith.addf %298, %301 : vector<2x16x16x8xf32>
      %cst_169 = arith.constant 0.000000e+00 : f32
      %303 = vector.broadcast %cst_169 : f32 to vector<2x16x16x8xf32>
      %304 = arith.maximumf %302, %303 : vector<2x16x16x8xf32>
      %c0_170 = arith.constant 0 : index
      %c0_171 = arith.constant 0 : index
      %c0_172 = arith.constant 0 : index
      %c0_173 = arith.constant 0 : index
      %305 = vector.load %arg5[%c0_170, %c0_171, %c0_172, %c0_173] : memref<2x16x16x8xf32, #tpu.memory_space<vmem>>, vector<2x16x16x8xf32>
      tpu.vector_store %arg5[%c0_170, %c0_171, %c0_172, %c0_173], %304 {strides = array<i32>} : memref<2x16x16x8xf32, #tpu.memory_space<vmem>>, vector<2x16x16x8xf32>,
    } else {
    }
    return
  }
  func.func @transform_0(%arg0: i32) -> (i32, i32, i32) {
    %c0_i32 = arith.constant 0 : i32
    %c0_i32_0 = arith.constant 0 : i32
    %c0_i32_1 = arith.constant 0 : i32
    return %arg0, %c0_i32, %c0_i32_0 : i32, i32, i32
  }
  func.func @transform_1(%arg0: i32) -> (i32, i32, i32) {
    %c0_i32 = arith.constant 0 : i32
    %c0_i32_0 = arith.constant 0 : i32
    %c0_i32_1 = arith.constant 0 : i32
    %c0_i32_2 = arith.constant 0 : i32
    return %c0_i32, %c0_i32_0, %c0_i32_1 : i32, i32, i32
  }
  func.func @transform_2(%arg0: i32) -> (i32, i32) {
    %c0_i32 = arith.constant 0 : i32
    %c0_i32_0 = arith.constant 0 : i32
    %c0_i32_1 = arith.constant 0 : i32
    return %c0_i32, %c0_i32_0 : i32, i32
  }
  func.func @transform_3(%arg0: i32) -> (i32, i32) {
    %c0_i32 = arith.constant 0 : i32
    %c0_i32_0 = arith.constant 0 : i32
    %c0_i32_1 = arith.constant 0 : i32
    return %c0_i32, %c0_i32_0 : i32, i32
  }
  func.func @transform_4(%arg0: i32) -> (i32, i32, i32, i32) {
    %c0_i32 = arith.constant 0 : i32
    %c0_i32_0 = arith.constant 0 : i32
    %c0_i32_1 = arith.constant 0 : i32
    %c0_i32_2 = arith.constant 0 : i32
    %c0_i32_3 = arith.constant 0 : i32
    return %c0_i32, %c0_i32_0, %c0_i32_1, %c0_i32_2 : i32, i32, i32, i32
  }
}

</mosaic_0001>

<bundles_post_ra>
// kernel: tpu_custom_call.1
= control target key start
LH: loop header
LB: loop body
LE: loop exit
PB: predicated region body
PF: predicated region fallthrough
CT: control target
= control target key end

     0   :  { %s6408_s15 = smov 0   ;;  %s8052_s0 = inlined_call_operand.vmem [shape: f32[2,326,4], index: 0, kind: input, shape index: {}]   ;;  %s8053_s1 = inlined_call_operand.vmem [shape: f32[9,4,128], index: 1, kind: input, shape index: {}]   ;;  %s8054_s2 = inlined_call_operand.vmem [shape: f32[1,128], index: 2, kind: input, shape index: {}]   ;;  %s8055_s3 = inlined_call_operand.vmem [shape: f32[1,128], index: 3, kind: input, shape index: {}]   ;;  %s8056_s4 = inlined_call_operand.vmem [shape: f32[2,16,16,8], index: 4, kind: output, shape index: {}]  }
   0x1 LB: > { %s6414_s16 = sadd.s32 4294967295, %s6380_s15   ;;  %p4842_p0 = scmp.ge.s32.totalorder %s6380_s15, 1  ;;  %s6380_s15 = sphi %s6408_s15, %s14_s15  }
   0x2   : > { %p157_p1 = scmp.lt.s32.totalorder %s6380_s15, 3 }
   0x4   : > { %p158_p2 = pnand %p4842_p0, %p157_p1 }
   0x5   : > { %p178_p3 = scmp.lt.s32.totalorder (!%p158_p2), %s6414_s16, 1  ;;  %p4844_p4 = scmp.ne.s32.totalorder (!%p158_p2), %s6414_s16, 0 }
   0x6   : > { %161 = sbr.rel (%p158_p2) target bundleno = 681 (0x2a9), region = 36 }
   0xd   : > { %s179_s17 = scalar_select %p178_p3, %s6414_s16, 1 }
   0xe   : > { %186 = sbr.rel (%p4844_p4) target bundleno = 21 (0x15), region = 40  ;;  %v6382_v0 = vmov (!%p4844_p4), 0.0  }
   0xf   : > { %s6362_s18 = smul.u32 328, %s179_s17  ;;  %187 = vst [vmem:[#allocation3] sm:$0x1] (!%p4844_p4), %v6382_v0  ;;  %188 = vst [vmem:[#allocation4] sm:$0x1] (!%p4844_p4), %v6382_v0 }
  0x11   : > { %s6423_s21 = scalar_lea.vmem %s8052_s0, %s6362_s18 }
  0x15 PF: > { %v4845_v1 = vld [vmem:[%s8053_s1 + $0x4] sm:$0xf]  ;;  %vm373_vm0 = vcmask 1043456   ;;  %v6432_v2 = vld [vmem:[%s8053_s1 + $0x10] sm:$0xf]  ;;  %vm264_vm1 = vcmask 31744  }
  0x16   : > { %v226_v3 = vld [vmem:[%s6423_s21 + $0x1] sm:$0xff]  ;;  %5568 = vmatprep.subr.msk.mxu1 %vm373_vm0, %v4845_v1  ;;  %5792 = vmatprep.subr.msk.mxu0 %vm373_vm0, %v6432_v2  ;;  %v1838_v4 = vld [vmem:[%s6423_s21 + $0x13] sm:$0xff]  ;;  %v227_v5 = vld [vmem:[%s6423_s21 + $0x9] sm:$0xff]  ;;  %s5186_s14 = sshll.u32 %s6414_s16, 8  ;;  %vm4046_vm2 = vcmask 64512   ;;  %p5232_p5 = scmp.ne.s32.totalorder %s6414_s16, 1 }
  0x17   : > { %v225_v6 = vld [vmem:[%s8053_s1] sm:$0xf]  ;;  %5569 = vmatpush3.msk.msra.mxu1 %vm373_vm0, %v4845_v1  ;;  %5570 = vmatprep.mubr.msk.f32.mxu1 %vm264_vm1, %v226_v3  ;;  %v5034_v8 = vld [vmem:[%s8053_s1 + $0x14] sm:$0xf]  ;;  %v1841_v12 = vld [vmem:[%s6423_s21 + $0x2b] sm:$0xff]  ;;  %s7367_s19 = scalar_lea.vmem %s8056_s4, %s5186_s14 }
  0x18   : > { %v1839_v7 = vld [vmem:[%s6423_s21 + $0x1b] sm:$0xff]  ;;  %5793 = vmatpush3.msk.msra.mxu0 %vm373_vm0, %v6432_v2  ;;  %5794 = vmatprep.mubr.msk.f32.mxu0 %vm264_vm1, %v1838_v4  ;;  %v228_v9 = vld [vmem:[%s6423_s21 + $0x11] sm:$0xff]  ;;  %v1840_v10 = vld [vmem:[%s6423_s21 + $0x23] sm:$0xff] }
  0x19   : > { %5571 = vmatmul.mubr.msk.f32.vlgmr.msra.gmra.mrb[0].mxu1 %vm264_vm1, %v227_v5  ;;  %5624 = vmatprep.subr.msk.mxu1 %vm373_vm0, %v225_v6  ;;  %v229_v11 = vld [vmem:[%s6423_s21 + $0x19] sm:$0xff]  ;;  %v230_v13 = vld [vmem:[%s6423_s21 + $0x21] sm:$0xff]  ;;  %v231_v15 = vld [vmem:[%s6423_s21 + $0x29] sm:$0xff] }
  0x1a   : > { %5795 = vmatmul.mubr.msk.f32.vlgmr.msra.gmra.mrb[0].mxu0 %vm264_vm1, %v1839_v7  ;;  %5848 = vmatprep.subr.msk.mxu0 %vm373_vm0, %v5034_v8  ;;  %v1842_v14 = vld [vmem:[%s6423_s21 + $0x33] sm:$0xff]  ;;  %v1843_v16 = vld [vmem:[%s6423_s21 + $0x3b] sm:$0xff]  ;;  %v1844_v18 = vld [vmem:[%s6423_s21 + $0x43] sm:$0xff] }
  0x1b   : > { %5625 = vmatpush3.msk.msra.mxu1 %vm373_vm0, %v225_v6  ;;  %5849 = vmatpush3.msk.msra.mxu0 %vm373_vm0, %v5034_v8  ;;  %v232_v17 = vld [vmem:[%s6423_s21 + $0x31] sm:$0xff]  ;;  %v233_v19 = vld [vmem:[%s6423_s21 + $0x39] sm:$0xff]  ;;  %v234_v21 = vld [vmem:[%s6423_s21 + $0x41] sm:$0xff] }
  0x1c   : > { %5573 = vmatprep.mubr.msk.f32.mxu1 %vm264_vm1, %v228_v9  ;;  %5797 = vmatprep.mubr.msk.f32.mxu0 %vm264_vm1, %v1840_v10  ;;  %v1845_v20 = vld [vmem:[%s6423_s21 + $0x4b] sm:$0xff]  ;;  %v5072_v22 = vld [vmem:[%s8053_s1 + $0x18] sm:$0xf]  ;;  %v1848_v27 = vld [vmem:[%s6423_s21 + $0x63] sm:$0xff] }
  0x1d   : > { %5574 = vmatmul.mubr.msk.f32.gmra.mrb[2].mxu1 %vm264_vm1, %v229_v11  ;;  %v1846_v23 = vld [vmem:[%s6423_s21 + $0x53] sm:$0xff]  ;;  %5904 = vmatprep.subr.msk.mxu0 %vm373_vm0, %v5072_v22  ;;  %v235_v24 = vld [vmem:[%s6423_s21 + $0x49] sm:$0xff]  ;;  %v1847_v25 = vld [vmem:[%s6423_s21 + $0x5b] sm:$0xff] }
  0x1e   : > { %5798 = vmatmul.mubr.msk.f32.gmra.mrb[2].mxu0 %vm264_vm1, %v1841_v12  ;;  %5576 = vmatprep.mubr.msk.f32.mxu1 %vm264_vm1, %v230_v13  ;;  %v236_v26 = vld [vmem:[%s6423_s21 + $0x51] sm:$0xff]  ;;  %v237_v28 = vld [vmem:[%s6423_s21 + $0x59] sm:$0xff]  ;;  %v238_v30 = vld [vmem:[%s6423_s21 + $0x61] sm:$0xff] }
  0x1f   : > { %5800 = vmatprep.mubr.msk.f32.mxu0 %vm264_vm1, %v1842_v14  ;;  %v1849_v29 = vld [vmem:[%s6423_s21 + $0x6b] sm:$0xff]  ;;  %v1850_v31 = vld [vmem:[%s6423_s21 + $0x73] sm:$0xff]  ;;  %v1851_v33 = vld [vmem:[%s6423_s21 + $0x7b] sm:$0xff] }
  0x20   : > { %v239_v32 = vld [vmem:[%s6423_s21 + $0x69] sm:$0xff]  ;;  %v240_v34 = vld [vmem:[%s6423_s21 + $0x71] sm:$0xff]  ;;  %v241_v37 = vld [vmem:[%s6423_s21 + $0x79] sm:$0xff] }
  0x21   : > { %5577 = vmatmul.mubr.msk.f32.gmra.mrb[4].mxu1 %vm264_vm1, %v231_v15  ;;  %v6512_v35 = vld [vmem:[%s8053_s1 + $0x8] sm:$0xf]  ;;  %v1854_v40 = vld [vmem:[%s6423_s21 + $0x93] sm:$0xff]  ;;  %v1855_v42 = vld [vmem:[%s6423_s21 + $0x9b] sm:$0xff] }
  0x22   : > { %5801 = vmatmul.mubr.msk.f32.gmra.mrb[4].mxu0 %vm264_vm1, %v1843_v16  ;;  %5579 = vmatprep.mubr.msk.f32.mxu1 %vm264_vm1, %v232_v17  ;;  %v1852_v36 = vld [vmem:[%s6423_s21 + $0x83] sm:$0xff]  ;;  %v1853_v38 = vld [vmem:[%s6423_s21 + $0x8b] sm:$0xff]  ;;  %v2268_v44 = vld [vmem:[%s6423_s21 + $0x14] sm:$0xff] }
  0x23   : > { %5803 = vmatprep.mubr.msk.f32.mxu0 %vm264_vm1, %v1844_v18  ;;  %5680 = vmatprep.subr.msk.mxu1 %vm373_vm0, %v6512_v35  ;;  %v242_v39 = vld [vmem:[%s6423_s21 + $0x81] sm:$0xff]  ;;  %v243_v41 = vld [vmem:[%s6423_s21 + $0x89] sm:$0xff]  ;;  %v244_v43 = vld [vmem:[%s6423_s21 + $0x91] sm:$0xff] }
  0x24   : > { %v245_v45 = vld [vmem:[%s6423_s21 + $0x99] sm:$0xff]  ;;  %v246_v47 = vld [vmem:[%s6423_s21 + $0xa1] sm:$0xff]  ;;  %v247_v50 = vld [vmem:[%s6423_s21 + $0xa9] sm:$0xff] }
  0x25   : > { %5580 = vmatmul.mubr.msk.f32.gmra.mrb[6].mxu1 %vm264_vm1, %v233_v19  ;;  %v2269_v46 = vld [vmem:[%s6423_s21 + $0x1c] sm:$0xff]  ;;  %v6541_v48 = vld [vmem:[%s6423_s21 + $0x24] sm:$0xff]  ;;  %v6556_v51 = vld [vmem:[%s6423_s21 + $0x2c] sm:$0xff] }
  0x26   : > { %5804 = vmatmul.mubr.msk.f32.gmra.mrb[6].mxu0 %vm264_vm1, %v1845_v20  ;;  %5582 = vmatprep.mubr.msk.f32.mxu1 %vm264_vm1, %v234_v21  ;;  %v6547_v49 = vld [vmem:[%s8053_s1 + $0x1c] sm:$0xf]  ;;  %v248_v52 = vld [vmem:[%s6423_s21 + $0xb1] sm:$0xff]  ;;  %v250_v56 = vld [vmem:[%s6423_s21 + $0xc1] sm:$0xff] }
  0x27   : > { %5806 = vmatprep.mubr.msk.f32.mxu0 %vm264_vm1, %v1846_v23  ;;  %v6560_v53 = vld [vmem:[%s6423_s21 + $0x34] sm:$0xff]  ;;  %v6572_v55 = vld [vmem:[%s6423_s21 + $0x3c] sm:$0xff]  ;;  %v6576_v57 = vld [vmem:[%s6423_s21 + $0x44] sm:$0xff] }
  0x28   : > { %v249_v54 = vld [vmem:[%s6423_s21 + $0xb9] sm:$0xff]  ;;  %v251_v58 = vld [vmem:[%s6423_s21 + $0xc9] sm:$0xff]  ;;  %v252_v60 = vld [vmem:[%s6423_s21 + $0xd1] sm:$0xff] }
  0x29   : > { %5583 = vmatmul.mubr.msk.f32.gmra.mrb[8].mxu1 %vm264_vm1, %v235_v24  ;;  %v6586_v59 = vld [vmem:[%s6423_s21 + $0x4c] sm:$0xff]  ;;  %v6590_v61 = vld [vmem:[%s6423_s21 + $0x54] sm:$0xff]  ;;  %v6600_v63 = vld [vmem:[%s6423_s21 + $0x5c] sm:$0xff] }
  0x2a   : > { %5807 = vmatmul.mubr.msk.f32.gmra.mrb[8].mxu0 %vm264_vm1, %v1847_v25  ;;  %5585 = vmatprep.mubr.msk.f32.mxu1 %vm264_vm1, %v236_v26  ;;  %v253_v62 = vld [vmem:[%s6423_s21 + $0xd9] sm:$0xff]  ;;  %v254_v0 = vld [vmem:[%s6423_s21 + $0xe1] sm:$0xff]  ;;  %v255_v3 = vld [vmem:[%s6423_s21 + $0xe9] sm:$0xff] }
  0x2b   : > { %5809 = vmatprep.mubr.msk.f32.mxu0 %vm264_vm1, %v1848_v27  ;;  %v6604_v1 = vld [vmem:[%s6423_s21 + $0x64] sm:$0xff]  ;;  %v6614_v4 = vld [vmem:[%s6423_s21 + $0x6c] sm:$0xff]  ;;  %v6618_v6 = vld [vmem:[%s6423_s21 + $0x74] sm:$0xff] }
  0x2c   : > { %v256_v5 = vld [vmem:[%s6423_s21 + $0xf1] sm:$0xff]  ;;  %v257_v7 = vld [vmem:[%s6423_s21 + $0xf9] sm:$0xff]  ;;  %v258_v9 = vld [vmem:[%s6423_s21 + $0x101] sm:$0xff] }
  0x2d   : > { %5586 = vmatmul.mubr.msk.f32.gmra.mrb[10].mxu1 %vm264_vm1, %v237_v28  ;;  %v6628_v8 = vld [vmem:[%s6423_s21 + $0x7c] sm:$0xff]  ;;  %v6632_v10 = vld [vmem:[%s6423_s21 + $0x84] sm:$0xff]  ;;  %v6642_v12 = vld [vmem:[%s6423_s21 + $0x8c] sm:$0xff] }
  0x2e   : > { %5810 = vmatmul.mubr.msk.f32.gmra.mrb[10].mxu0 %vm264_vm1, %v1849_v29  ;;  %5588 = vmatprep.mubr.msk.f32.mxu1 %vm264_vm1, %v238_v30  ;;  %v259_v11 = vld [vmem:[%s6423_s21 + $0x109] sm:$0xff]  ;;  %v260_v13 = vld [vmem:[%s6423_s21 + $0x111] sm:$0xff]  ;;  %v261_v15 = vld [vmem:[%s6423_s21 + $0x119] sm:$0xff] }
  0x2f   : > { %5812 = vmatprep.mubr.msk.f32.mxu0 %vm264_vm1, %v1850_v31  ;;  %v6646_v14 = vld [vmem:[%s6423_s21 + $0x94] sm:$0xff]  ;;  %v6656_v16 = vld [vmem:[%s6423_s21 + $0x9c] sm:$0xff]  ;;  %v6660_v18 = vld [vmem:[%s6423_s21 + $0xa4] sm:$0xff] }
  0x30   : > { %v189_v17 = vld [vmem:[%s6423_s21] sm:$0xff]  ;;  %v190_v19 = vld [vmem:[%s6423_s21 + $0x8] sm:$0xff]  ;;  %v191_v21 = vld [vmem:[%s6423_s21 + $0x10] sm:$0xff] }
  0x31   : > { %5589 = vmatmul.mubr.msk.f32.gmra.mrb[12].mxu1 %vm264_vm1, %v239_v32  ;;  %v6670_v20 = vld [vmem:[%s6423_s21 + $0xac] sm:$0xff]  ;;  %v192_v24 = vld [vmem:[%s6423_s21 + $0x18] sm:$0xff]  ;;  %v193_v26 = vld [vmem:[%s6423_s21 + $0x20] sm:$0xff] }
  0x32   : > { %5813 = vmatmul.mubr.msk.f32.gmra.mrb[12].mxu0 %vm264_vm1, %v1851_v33  ;;  %5591 = vmatprep.mubr.msk.f32.mxu1 %vm264_vm1, %v240_v34  ;;  %v6680_v23 = vld [vmem:[%s8053_s1 + $0xc] sm:$0xf]  ;;  %v6691_v25 = vld [vmem:[%s6423_s21 + $0xbc] sm:$0xff]  ;;  %v6695_v27 = vld [vmem:[%s6423_s21 + $0xc4] sm:$0xff] }
  0x33   : > { %5815 = vmatprep.mubr.msk.f32.mxu0 %vm264_vm1, %v1852_v36  ;;  %v194_v28 = vld [vmem:[%s6423_s21 + $0x28] sm:$0xff]  ;;  %v195_v30 = vld [vmem:[%s6423_s21 + $0x30] sm:$0xff]  ;;  %v196_v32 = vld [vmem:[%s6423_s21 + $0x38] sm:$0xff] }
  0x34   : > { %v6707_v29 = vld [vmem:[%s6423_s21 + $0xcc] sm:$0xff]  ;;  %v6711_v31 = vld [vmem:[%s6423_s21 + $0xd4] sm:$0xff]  ;;  %v6721_v33 = vld [vmem:[%s6423_s21 + $0xdc] sm:$0xff] }
  0x35   : > { %5592 = vmatmul.mubr.msk.f32.gmra.mrb[14].mxu1 %vm264_vm1, %v241_v37  ;;  %v197_v34 = vld [vmem:[%s6423_s21 + $0x40] sm:$0xff]  ;;  %v198_v36 = vld [vmem:[%s6423_s21 + $0x48] sm:$0xff] }
  0x36   : > { %5816 = vmatmul.mubr.msk.f32.gmra.mrb[14].mxu0 %vm264_vm1, %v1853_v38  ;;  %5594 = vmatprep.mubr.msk.f32.mxu1 %vm264_vm1, %v242_v39  ;;  %v6735_v37 = vld [vmem:[%s6423_s21 + $0xec] sm:$0xff]  ;;  %v6739_v39 = vld [vmem:[%s6423_s21 + $0xf4] sm:$0xff] }
  0x37   : > { %5818 = vmatprep.mubr.msk.f32.mxu0 %vm264_vm1, %v1854_v40  ;;  %v199_v38 = vld [vmem:[%s6423_s21 + $0x50] sm:$0xff]  ;;  %v200_v40 = vld [vmem:[%s6423_s21 + $0x58] sm:$0xff] }
  0x39   : > { %5595 = vmatmul.mubr.msk.f32.gmra.mrb[16].mxu1 %vm264_vm1, %v243_v41  ;;  %v6749_v41 = vld [vmem:[%s6423_s21 + $0xfc] sm:$0xff] }
  0x3a   : > { %5819 = vmatmul.mubr.msk.f32.gmra.mrb[16].mxu0 %vm264_vm1, %v1855_v42  ;;  %5597 = vmatprep.mubr.msk.f32.mxu1 %vm264_vm1, %v244_v43  ;;  %v201_v42 = vld [vmem:[%s6423_s21 + $0x60] sm:$0xff] }
  0x3b   : > { %5850 = vmatprep.mubr.msk.f32.mxu0 %vm264_vm1, %v2268_v44  ;;  %v6753_v43 = vld [vmem:[%s6423_s21 + $0x104] sm:$0xff] }
  0x3c   : > { %v202_v44 = vld [vmem:[%s6423_s21 + $0x68] sm:$0xff] }
  0x3d   : > { %5598 = vmatmul.mubr.msk.f32.gmra.mrb[18].mxu1 %vm264_vm1, %v245_v45  ;;  %v6763_v45 = vld [vmem:[%s6423_s21 + $0x10c] sm:$0xff] }
  0x3e   : > { %5851 = vmatmul.mubr.msk.f32.vlgmr.msra.gmra.mrb[0].mxu0 %vm264_vm1, %v2269_v46  ;;  %5600 = vmatprep.mubr.msk.f32.mxu1 %vm264_vm1, %v246_v47  ;;  %v203_v46 = vld [vmem:[%s6423_s21 + $0x70] sm:$0xff] }
  0x3f   : > { %5905 = vmatpush3.msk.msra.mxu0 %vm373_vm0, %v5072_v22  ;;  %5853 = vmatprep.mubr.msk.f32.mxu0 %vm264_vm1, %v6541_v48  ;;  %v6674_v22 = vld [vmem:[%s6423_s21 + $0xb4] sm:$0xff] }
  0x40   : > { %5960 = vmatprep.subr.msk.mxu0 %vm373_vm0, %v6547_v49  ;;  %v6767_v47 = vld [vmem:[%s6423_s21 + $0x114] sm:$0xff] }
  0x41   : > { %5601 = vmatmul.mubr.msk.f32.gmra.mrb[20].mxu1 %vm264_vm1, %v247_v50  ;;  %v204_v50 = vld [vmem:[%s6423_s21 + $0x78] sm:$0xff] }
  0x42   : > { %5854 = vmatmul.mubr.msk.f32.gmra.mrb[2].mxu0 %vm264_vm1, %v6556_v51  ;;  %5603 = vmatprep.mubr.msk.f32.mxu1 %vm264_vm1, %v248_v52  ;;  %v6777_v52 = vld [vmem:[%s6423_s21 + $0x11c] sm:$0xff] }
  0x43   : > { %5856 = vmatprep.mubr.msk.f32.mxu0 %vm264_vm1, %v6560_v53 }
  0x45   : > { %5604 = vmatmul.mubr.msk.f32.gmra.mrb[22].mxu1 %vm264_vm1, %v249_v54  ;;  %v205_v54 = vld [vmem:[%s6423_s21 + $0x80] sm:$0xff] }
  0x46   : > { %5857 = vmatmul.mubr.msk.f32.gmra.mrb[4].mxu0 %vm264_vm1, %v6572_v55  ;;  %5606 = vmatprep.mubr.msk.f32.mxu1 %vm264_vm1, %v250_v56  ;;  %v6781_v56 = vld [vmem:[%s6423_s21 + $0x124] sm:$0xff] }
  0x47   : > { %5859 = vmatprep.mubr.msk.f32.mxu0 %vm264_vm1, %v6576_v57 }
  0x49   : > { %5607 = vmatmul.mubr.msk.f32.gmra.mrb[24].mxu1 %vm264_vm1, %v251_v58  ;;  %v206_v58 = vld [vmem:[%s6423_s21 + $0x88] sm:$0xff] }
  0x4a   : > { %5860 = vmatmul.mubr.msk.f32.gmra.mrb[6].mxu0 %vm264_vm1, %v6586_v59  ;;  %5609 = vmatprep.mubr.msk.f32.mxu1 %vm264_vm1, %v252_v60  ;;  %v6791_v60 = vld [vmem:[%s6423_s21 + $0x12c] sm:$0xff] }
  0x4b   : > { %5862 = vmatprep.mubr.msk.f32.mxu0 %vm264_vm1, %v6590_v61 }
  0x4d   : > { %5610 = vmatmul.mubr.msk.f32.gmra.mrb[26].mxu1 %vm264_vm1, %v253_v62  ;;  %v207_v62 = vld [vmem:[%s6423_s21 + $0x90] sm:$0xff] }
  0x4e   : > { %5863 = vmatmul.mubr.msk.f32.gmra.mrb[8].mxu0 %vm264_vm1, %v6600_v63  ;;  %5612 = vmatprep.mubr.msk.f32.mxu1 %vm264_vm1, %v254_v0  ;;  %v208_v0 = vld [vmem:[%s6423_s21 + $0x98] sm:$0xff] }
  0x4f   : > { %5865 = vmatprep.mubr.msk.f32.mxu0 %vm264_vm1, %v6604_v1 }
  0x51   : > { %5613 = vmatmul.mubr.msk.f32.gmra.mrb[28].mxu1 %vm264_vm1, %v255_v3  ;;  %v209_v3 = vld [vmem:[%s6423_s21 + $0xa0] sm:$0xff] }
  0x52   : > { %5866 = vmatmul.mubr.msk.f32.gmra.mrb[10].mxu0 %vm264_vm1, %v6614_v4  ;;  %5615 = vmatprep.mubr.msk.f32.mxu1 %vm264_vm1, %v256_v5  ;;  %v6806_v5 = vld [vmem:[%s8053_s1 + $0x20] sm:$0xf] }
  0x53   : > { %5868 = vmatprep.mubr.msk.f32.mxu0 %vm264_vm1, %v6618_v6 }
  0x55   : > { %5616 = vmatmul.mubr.msk.f32.gmra.mrb[30].mxu1 %vm264_vm1, %v257_v7  ;;  %v210_v7 = vld [vmem:[%s6423_s21 + $0xa8] sm:$0xff] }
  0x56   : > { %5869 = vmatmul.mubr.msk.f32.gmra.mrb[12].mxu0 %vm264_vm1, %v6628_v8  ;;  %5618 = vmatprep.mubr.msk.f32.mxu1 %vm264_vm1, %v258_v9  ;;  %v224_v9 = vld [vmem:[%s6423_s21 + $0x118] sm:$0xff] }
  0x57   : > { %5871 = vmatprep.mubr.msk.f32.mxu0 %vm264_vm1, %v6632_v10 }
  0x59   : > { %5619 = vmatmul.mubr.msk.f32.gmra.mrb[32].mxu1 %vm264_vm1, %v259_v11  ;;  %v979_v11 = vld [vmem:[%s6423_s21 + $0xa] sm:$0xff] }
  0x5a   : > { %5872 = vmatmul.mubr.msk.f32.gmra.mrb[14].mxu0 %vm264_vm1, %v6642_v12  ;;  %5621 = vmatprep.mubr.msk.f32.mxu1 %vm264_vm1, %v260_v13  ;;  %v6891_v13 = vld [vmem:[%s6423_s21 + $0x1a] sm:$0xff] }
  0x5b   : > { %5874 = vmatprep.mubr.msk.f32.mxu0 %vm264_vm1, %v6646_v14 }
  0x5d   : > { %5622 = vmatmul.mubr.msk.f32.gmra.mrb[34].mxu1 %vm264_vm1, %v261_v15  ;;  %v6909_v15 = vld [vmem:[%s6423_s21 + $0x2a] sm:$0xff] }
  0x5e   : > { %5875 = vmatmul.mubr.msk.f32.gmra.mrb[16].mxu0 %vm264_vm1, %v6656_v16  ;;  %5626 = vmatprep.mubr.msk.f32.mxu1 %vm264_vm1, %v189_v17  ;;  %v6923_v17 = vld [vmem:[%s6423_s21 + $0x3a] sm:$0xff] }
  0x5f   : > { %5877 = vmatprep.mubr.msk.f32.mxu0 %vm264_vm1, %v6660_v18 }
  0x61   : > { %5627 = vmatmul.mubr.msk.f32.vlgmr.msra.gmra.mrb[0].mxu1 %vm264_vm1, %v190_v19  ;;  %v6937_v19 = vld [vmem:[%s6423_s21 + $0x4a] sm:$0xff] }
  0x62   : > { %5878 = vmatmul.mubr.msk.f32.gmra.mrb[18].mxu0 %vm264_vm1, %v6670_v20  ;;  %5681 = vmatpush3.msk.msra.mxu1 %vm373_vm0, %v6512_v35  ;;  %v6725_v35 = vld [vmem:[%s6423_s21 + $0xe4] sm:$0xff] }
  0x63   : > { %5629 = vmatprep.mubr.msk.f32.mxu1 %vm264_vm1, %v191_v21  ;;  %5880 = vmatprep.mubr.msk.f32.mxu0 %vm264_vm1, %v6674_v22  ;;  %v6951_v21 = vld [vmem:[%s6423_s21 + $0x5a] sm:$0xff] }
  0x64   : > { %5736 = vmatprep.subr.msk.mxu1 %vm373_vm0, %v6680_v23 }
  0x65   : > { %5630 = vmatmul.mubr.msk.f32.gmra.mrb[2].mxu1 %vm264_vm1, %v192_v24  ;;  %v6970_v24 = vld [vmem:[%s6423_s21 + $0x72] sm:$0xff] }
  0x66   : > { %5881 = vmatmul.mubr.msk.f32.gmra.mrb[20].mxu0 %vm264_vm1, %v6691_v25  ;;  %5632 = vmatprep.mubr.msk.f32.mxu1 %vm264_vm1, %v193_v26  ;;  %v6984_v26 = vld [vmem:[%s6423_s21 + $0x82] sm:$0xff] }
  0x67   : > { %5883 = vmatprep.mubr.msk.f32.mxu0 %vm264_vm1, %v6695_v27 }
  0x69   : > { %5633 = vmatmul.mubr.msk.f32.gmra.mrb[4].mxu1 %vm264_vm1, %v194_v28  ;;  %v6994_v28 = vld [vmem:[%s6423_s21 + $0x8a] sm:$0xff] }
  0x6a   : > { %5884 = vmatmul.mubr.msk.f32.gmra.mrb[22].mxu0 %vm264_vm1, %v6707_v29  ;;  %5635 = vmatprep.mubr.msk.f32.mxu1 %vm264_vm1, %v195_v30  ;;  %v6999_v30 = vld [vmem:[%s6423_s21 + $0x92] sm:$0xff] }
  0x6b   : > { %5886 = vmatprep.mubr.msk.f32.mxu0 %vm264_vm1, %v6711_v31 }
  0x6d   : > { %5636 = vmatmul.mubr.msk.f32.gmra.mrb[6].mxu1 %vm264_vm1, %v196_v32  ;;  %v7008_v32 = vld [vmem:[%s6423_s21 + $0x9a] sm:$0xff] }
  0x6e   : > { %5887 = vmatmul.mubr.msk.f32.gmra.mrb[24].mxu0 %vm264_vm1, %v6721_v33  ;;  %5638 = vmatprep.mubr.msk.f32.mxu1 %vm264_vm1, %v197_v34  ;;  %v7013_v34 = vld [vmem:[%s6423_s21 + $0xa2] sm:$0xff] }
  0x6f   : > { %5889 = vmatprep.mubr.msk.f32.mxu0 %vm264_vm1, %v6725_v35 }
  0x71   : > { %5639 = vmatmul.mubr.msk.f32.gmra.mrb[8].mxu1 %vm264_vm1, %v198_v36  ;;  %v7022_v36 = vld [vmem:[%s6423_s21 + $0xaa] sm:$0xff] }
  0x72   : > { %5890 = vmatmul.mubr.msk.f32.gmra.mrb[26].mxu0 %vm264_vm1, %v6735_v37  ;;  %5641 = vmatprep.mubr.msk.f32.mxu1 %vm264_vm1, %v199_v38  ;;  %v7029_v38 = vld [vmem:[%s6423_s21 + $0xb2] sm:$0xff] }
  0x73   : > { %5892 = vmatprep.mubr.msk.f32.mxu0 %vm264_vm1, %v6739_v39 }
  0x75   : > { %5642 = vmatmul.mubr.msk.f32.gmra.mrb[10].mxu1 %vm264_vm1, %v200_v40  ;;  %v7038_v40 = vld [vmem:[%s6423_s21 + $0xba] sm:$0xff] }
  0x76   : > { %5893 = vmatmul.mubr.msk.f32.gmra.mrb[28].mxu0 %vm264_vm1, %v6749_v41  ;;  %5644 = vmatprep.mubr.msk.f32.mxu1 %vm264_vm1, %v201_v42  ;;  %v7043_v42 = vld [vmem:[%s6423_s21 + $0xc2] sm:$0xff] }
  0x77   : > { %5895 = vmatprep.mubr.msk.f32.mxu0 %vm264_vm1, %v6753_v43 }
  0x79   : > { %5645 = vmatmul.mubr.msk.f32.gmra.mrb[12].mxu1 %vm264_vm1, %v202_v44  ;;  %v7052_v44 = vld [vmem:[%s6423_s21 + $0xca] sm:$0xff] }
  0x7a   : > { %5896 = vmatmul.mubr.msk.f32.gmra.mrb[30].mxu0 %vm264_vm1, %v6763_v45  ;;  %5647 = vmatprep.mubr.msk.f32.mxu1 %vm264_vm1, %v203_v46  ;;  %v7057_v46 = vld [vmem:[%s6423_s21 + $0xd2] sm:$0xff] }
  0x7b   : > { %5898 = vmatprep.mubr.msk.f32.mxu0 %vm264_vm1, %v6767_v47 }
  0x7d   : > { %5648 = vmatmul.mubr.msk.f32.gmra.mrb[14].mxu1 %vm264_vm1, %v204_v50  ;;  %v7066_v50 = vld [vmem:[%s6423_s21 + $0xda] sm:$0xff] }
  0x7e   : > { %5899 = vmatmul.mubr.msk.f32.gmra.mrb[32].mxu0 %vm264_vm1, %v6777_v52  ;;  %5650 = vmatprep.mubr.msk.f32.mxu1 %vm264_vm1, %v205_v54  ;;  %v7071_v54 = vld [vmem:[%s6423_s21 + $0xe2] sm:$0xff] }
  0x7f   : > { %5901 = vmatprep.mubr.msk.f32.mxu0 %vm264_vm1, %v6781_v56 }
  0x81   : > { %5651 = vmatmul.mubr.msk.f32.gmra.mrb[16].mxu1 %vm264_vm1, %v206_v58  ;;  %v7080_v58 = vld [vmem:[%s6423_s21 + $0xea] sm:$0xff] }
  0x82   : > { %5902 = vmatmul.mubr.msk.f32.gmra.mrb[34].mxu0 %vm264_vm1, %v6791_v60  ;;  %5653 = vmatprep.mubr.msk.f32.mxu1 %vm264_vm1, %v207_v62  ;;  %v7085_v62 = vld [vmem:[%s6423_s21 + $0xf2] sm:$0xff] }
  0x83   : > { %5906 = vmatprep.mubr.msk.f32.mxu0 %vm264_vm1, %v6541_v48  ;;  %v211_v48 = vld [vmem:[%s6423_s21 + $0xb0] sm:$0xff] }
  0x85   : > { %5654 = vmatmul.mubr.msk.f32.gmra.mrb[18].mxu1 %vm264_vm1, %v208_v0  ;;  %v3140_v0 = vld [vmem:[%s6423_s21 + $0x85] sm:$0xff] }
  0x86   : > { %5907 = vmatmul.mubr.msk.f32.vlgmr.msra.gmra.mrb[0].mxu0 %vm264_vm1, %v6556_v51  ;;  %5656 = vmatprep.mubr.msk.f32.mxu1 %vm264_vm1, %v209_v3  ;;  %v212_v51 = vld [vmem:[%s6423_s21 + $0xb8] sm:$0xff] }
  0x87   : > { %5961 = vmatpush3.msk.msra.mxu0 %vm373_vm0, %v6547_v49  ;;  %5909 = vmatprep.mubr.msk.f32.mxu0 %vm264_vm1, %v6560_v53  ;;  %v213_v49 = vld [vmem:[%s6423_s21 + $0xc0] sm:$0xff]  ;;  %v214_v53 = vld [vmem:[%s6423_s21 + $0xc8] sm:$0xff] }
  0x88   : > { %6016 = vmatprep.subr.msk.mxu0 %vm373_vm0, %v6806_v5  ;;  %v7094_v3 = vld [vmem:[%s6423_s21 + $0xfa] sm:$0xff] }
  0x89   : > { %5657 = vmatmul.mubr.msk.f32.gmra.mrb[20].mxu1 %vm264_vm1, %v210_v7  ;;  %v7099_v7 = vld [vmem:[%s6423_s21 + $0x102] sm:$0xff] }
  0x8a   : > { %5910 = vmatmul.mubr.msk.f32.gmra.mrb[2].mxu0 %vm264_vm1, %v6572_v55  ;;  %5659 = vmatprep.mubr.msk.f32.mxu1 %vm264_vm1, %v211_v48  ;;  %v215_v55 = vld [vmem:[%s6423_s21 + $0xd0] sm:$0xff] }
  0x8b   : > { %5912 = vmatprep.mubr.msk.f32.mxu0 %vm264_vm1, %v6576_v57  ;;  %v216_v57 = vld [vmem:[%s6423_s21 + $0xd8] sm:$0xff] }
  0x8c   : > { %v3142_v48 = vld [vmem:[%s6423_s21 + $0x95] sm:$0xff] }
  0x8d   : > { %5660 = vmatmul.mubr.msk.f32.gmra.mrb[22].mxu1 %vm264_vm1, %v212_v51  ;;  %v7108_v51 = vld [vmem:[%s6423_s21 + $0x10a] sm:$0xff] }
  0x8e   : > { %5913 = vmatmul.mubr.msk.f32.gmra.mrb[4].mxu0 %vm264_vm1, %v6586_v59  ;;  %5662 = vmatprep.mubr.msk.f32.mxu1 %vm264_vm1, %v213_v49  ;;  %v217_v59 = vld [vmem:[%s6423_s21 + $0xe0] sm:$0xff] }
  0x8f   : > { %5915 = vmatprep.mubr.msk.f32.mxu0 %vm264_vm1, %v6590_v61  ;;  %v218_v61 = vld [vmem:[%s6423_s21 + $0xe8] sm:$0xff]  ;;  %v3143_v49 = vld [vmem:[%s6423_s21 + $0x9d] sm:$0xff] }
  0x91   : > { %5663 = vmatmul.mubr.msk.f32.gmra.mrb[24].mxu1 %vm264_vm1, %v214_v53  ;;  %v7113_v53 = vld [vmem:[%s6423_s21 + $0x112] sm:$0xff] }
  0x92   : > { %5916 = vmatmul.mubr.msk.f32.gmra.mrb[6].mxu0 %vm264_vm1, %v6600_v63  ;;  %5665 = vmatprep.mubr.msk.f32.mxu1 %vm264_vm1, %v215_v55  ;;  %v219_v63 = vld [vmem:[%s6423_s21 + $0xf0] sm:$0xff]  ;;  %v3144_v55 = vld [vmem:[%s6423_s21 + $0xa5] sm:$0xff] }
  0x93   : > { %5918 = vmatprep.mubr.msk.f32.mxu0 %vm264_vm1, %v6604_v1  ;;  %v220_v1 = vld [vmem:[%s6423_s21 + $0xf8] sm:$0xff] }
  0x95   : > { %5666 = vmatmul.mubr.msk.f32.gmra.mrb[26].mxu1 %vm264_vm1, %v216_v57  ;;  %v7122_v57 = vld [vmem:[%s6423_s21 + $0x11a] sm:$0xff] }
  0x96   : > { %5919 = vmatmul.mubr.msk.f32.gmra.mrb[8].mxu0 %vm264_vm1, %v6614_v4  ;;  %5668 = vmatprep.mubr.msk.f32.mxu1 %vm264_vm1, %v217_v59  ;;  %v221_v4 = vld [vmem:[%s6423_s21 + $0x100] sm:$0xff]  ;;  %v3145_v59 = vld [vmem:[%s6423_s21 + $0xad] sm:$0xff] }
  0x97   : > { %5921 = vmatprep.mubr.msk.f32.mxu0 %vm264_vm1, %v6618_v6  ;;  %v222_v6 = vld [vmem:[%s6423_s21 + $0x108] sm:$0xff] }
  0x99   : > { %5669 = vmatmul.mubr.msk.f32.gmra.mrb[28].mxu1 %vm264_vm1, %v218_v61  ;;  %v3146_v61 = vld [vmem:[%s6423_s21 + $0xb5] sm:$0xff] }
  0x9a   : > { %5922 = vmatmul.mubr.msk.f32.gmra.mrb[10].mxu0 %vm264_vm1, %v6628_v8  ;;  %5671 = vmatprep.mubr.msk.f32.mxu1 %vm264_vm1, %v219_v63  ;;  %v223_v8 = vld [vmem:[%s6423_s21 + $0x110] sm:$0xff]  ;;  %v3147_v63 = vld [vmem:[%s6423_s21 + $0xbd] sm:$0xff] }
  0x9b   : > { %5924 = vmatprep.mubr.msk.f32.mxu0 %vm264_vm1, %v6632_v10  ;;  %v978_v10 = vld [vmem:[%s6423_s21 + $0x2] sm:$0xff] }
  0x9d   : > { %5672 = vmatmul.mubr.msk.f32.gmra.mrb[30].mxu1 %vm264_vm1, %v220_v1  ;;  %v3148_v1 = vld [vmem:[%s6423_s21 + $0xc5] sm:$0xff] }
  0x9e   : > { %5925 = vmatmul.mubr.msk.f32.gmra.mrb[12].mxu0 %vm264_vm1, %v6642_v12  ;;  %5674 = vmatprep.mubr.msk.f32.mxu1 %vm264_vm1, %v221_v4  ;;  %v6883_v12 = vld [vmem:[%s6423_s21 + $0x12] sm:$0xff] }
  0x9f   : > { %5927 = vmatprep.mubr.msk.f32.mxu0 %vm264_vm1, %v6646_v14  ;;  %v6898_v14 = vld [vmem:[%s6423_s21 + $0x22] sm:$0xff]  ;;  %v3149_v4 = vld [vmem:[%s6423_s21 + $0xcd] sm:$0xff] }
  0xa1   : > { %5675 = vmatmul.mubr.msk.f32.gmra.mrb[32].mxu1 %vm264_vm1, %v222_v6  ;;  %v3150_v6 = vld [vmem:[%s6423_s21 + $0xd5] sm:$0xff] }
  0xa2   : > { %5928 = vmatmul.mubr.msk.f32.gmra.mrb[14].mxu0 %vm264_vm1, %v6656_v16  ;;  %5677 = vmatprep.mubr.msk.f32.mxu1 %vm264_vm1, %v223_v8  ;;  %v6914_v16 = vld [vmem:[%s6423_s21 + $0x32] sm:$0xff]  ;;  %v3152_v8 = vld [vmem:[%s6423_s21 + $0xe5] sm:$0xff] }
  0xa3   : > { %5930 = vmatprep.mubr.msk.f32.mxu0 %vm264_vm1, %v6660_v18  ;;  %v6928_v18 = vld [vmem:[%s6423_s21 + $0x42] sm:$0xff] }
  0xa5   : > { %5678 = vmatmul.mubr.msk.f32.gmra.mrb[34].mxu1 %vm264_vm1, %v224_v9  ;;  %v3153_v9 = vld [vmem:[%s6423_s21 + $0xed] sm:$0xff] }
  0xa6   : > { %5931 = vmatmul.mubr.msk.f32.gmra.mrb[16].mxu0 %vm264_vm1, %v6670_v20  ;;  %5682 = vmatprep.mubr.msk.f32.mxu1 %vm264_vm1, %v978_v10  ;;  %v6942_v20 = vld [vmem:[%s6423_s21 + $0x52] sm:$0xff] }
  0xa7   : > { %5933 = vmatprep.mubr.msk.f32.mxu0 %vm264_vm1, %v6674_v22  ;;  %v6956_v22 = vld [vmem:[%s6423_s21 + $0x62] sm:$0xff]  ;;  %v3154_v10 = vld [vmem:[%s6423_s21 + $0xf5] sm:$0xff] }
  0xa9   : > { %5683 = vmatmul.mubr.msk.f32.vlgmr.msra.gmra.mrb[0].mxu1 %vm264_vm1, %v979_v11  ;;  %v3155_v11 = vld [vmem:[%s6423_s21 + $0xfd] sm:$0xff] }
  0xaa   : > { %5934 = vmatmul.mubr.msk.f32.gmra.mrb[18].mxu0 %vm264_vm1, %v6691_v25  ;;  %5737 = vmatpush3.msk.msra.mxu1 %vm373_vm0, %v6680_v23  ;;  %v6965_v23 = vld [vmem:[%s6423_s21 + $0x6a] sm:$0xff]  ;;  %v6979_v25 = vld [vmem:[%s6423_s21 + $0x7a] sm:$0xff] }
  0xab   : > { %5685 = vmatprep.mubr.msk.f32.mxu1 %vm264_vm1, %v6883_v12  ;;  %5936 = vmatprep.mubr.msk.f32.mxu0 %vm264_vm1, %v6695_v27  ;;  %v2732_v27 = vld [vmem:[%s6423_s21 + $0x134] sm:$0xff] }
  0xac   : > { %6072 = vmatprep.subr.msk.mxu1 %vm373_vm0, %v6432_v2 }
  0xad   : > { %5686 = vmatmul.mubr.msk.f32.gmra.mrb[2].mxu1 %vm264_vm1, %v6891_v13 }
  0xae   : > { %5937 = vmatmul.mubr.msk.f32.gmra.mrb[20].mxu0 %vm264_vm1, %v6707_v29  ;;  %5688 = vmatprep.mubr.msk.f32.mxu1 %vm264_vm1, %v6898_v14  ;;  %v2733_v29 = vld [vmem:[%s6423_s21 + $0x13c] sm:$0xff] }
  0xaf   : > { %5939 = vmatprep.mubr.msk.f32.mxu0 %vm264_vm1, %v6711_v31  ;;  %v3128_v31 = vld [vmem:[%s6423_s21 + $0x25] sm:$0xff] }
  0xb1   : > { %5689 = vmatmul.mubr.msk.f32.gmra.mrb[4].mxu1 %vm264_vm1, %v6909_v15 }
  0xb2   : > { %5940 = vmatmul.mubr.msk.f32.gmra.mrb[22].mxu0 %vm264_vm1, %v6721_v33  ;;  %5691 = vmatprep.mubr.msk.f32.mxu1 %vm264_vm1, %v6914_v16  ;;  %v3129_v33 = vld [vmem:[%s6423_s21 + $0x2d] sm:$0xff] }
  0xb3   : > { %5942 = vmatprep.mubr.msk.f32.mxu0 %vm264_vm1, %v6725_v35  ;;  %v3130_v35 = vld [vmem:[%s6423_s21 + $0x35] sm:$0xff] }
  0xb5   : > { %5692 = vmatmul.mubr.msk.f32.gmra.mrb[6].mxu1 %vm264_vm1, %v6923_v17 }
  0xb6   : > { %5943 = vmatmul.mubr.msk.f32.gmra.mrb[24].mxu0 %vm264_vm1, %v6735_v37  ;;  %5694 = vmatprep.mubr.msk.f32.mxu1 %vm264_vm1, %v6928_v18  ;;  %v3131_v37 = vld [vmem:[%s6423_s21 + $0x3d] sm:$0xff] }
  0xb7   : > { %5945 = vmatprep.mubr.msk.f32.mxu0 %vm264_vm1, %v6739_v39  ;;  %v3132_v39 = vld [vmem:[%s6423_s21 + $0x45] sm:$0xff] }
  0xb9   : > { %5695 = vmatmul.mubr.msk.f32.gmra.mrb[8].mxu1 %vm264_vm1, %v6937_v19 }
  0xba   : > { %5946 = vmatmul.mubr.msk.f32.gmra.mrb[26].mxu0 %vm264_vm1, %v6749_v41  ;;  %5697 = vmatprep.mubr.msk.f32.mxu1 %vm264_vm1, %v6942_v20  ;;  %v3133_v41 = vld [vmem:[%s6423_s21 + $0x4d] sm:$0xff] }
  0xbb   : > { %5948 = vmatprep.mubr.msk.f32.mxu0 %vm264_vm1, %v6753_v43  ;;  %v3134_v43 = vld [vmem:[%s6423_s21 + $0x55] sm:$0xff] }
  0xbd   : > { %5698 = vmatmul.mubr.msk.f32.gmra.mrb[10].mxu1 %vm264_vm1, %v6951_v21 }
  0xbe   : > { %5949 = vmatmul.mubr.msk.f32.gmra.mrb[28].mxu0 %vm264_vm1, %v6763_v45  ;;  %5700 = vmatprep.mubr.msk.f32.mxu1 %vm264_vm1, %v6956_v22  ;;  %v3135_v45 = vld [vmem:[%s6423_s21 + $0x5d] sm:$0xff] }
  0xbf   : > { %5951 = vmatprep.mubr.msk.f32.mxu0 %vm264_vm1, %v6767_v47  ;;  %v3136_v47 = vld [vmem:[%s6423_s21 + $0x65] sm:$0xff] }
  0xc1   : > { %5701 = vmatmul.mubr.msk.f32.gmra.mrb[12].mxu1 %vm264_vm1, %v6965_v23 }
  0xc2   : > { %5952 = vmatmul.mubr.msk.f32.gmra.mrb[30].mxu0 %vm264_vm1, %v6777_v52  ;;  %5703 = vmatprep.mubr.msk.f32.mxu1 %vm264_vm1, %v6970_v24  ;;  %v3137_v52 = vld [vmem:[%s6423_s21 + $0x6d] sm:$0xff] }
  0xc3   : > { %5954 = vmatprep.mubr.msk.f32.mxu0 %vm264_vm1, %v6781_v56  ;;  %v3138_v56 = vld [vmem:[%s6423_s21 + $0x75] sm:$0xff] }
  0xc5   : > { %5704 = vmatmul.mubr.msk.f32.gmra.mrb[14].mxu1 %vm264_vm1, %v6979_v25 }
  0xc6   : > { %5955 = vmatmul.mubr.msk.f32.gmra.mrb[32].mxu0 %vm264_vm1, %v6791_v60  ;;  %5706 = vmatprep.mubr.msk.f32.mxu1 %vm264_vm1, %v6984_v26  ;;  %v3139_v60 = vld [vmem:[%s6423_s21 + $0x7d] sm:$0xff] }
  0xc7   : > { %5957 = vmatprep.mubr.msk.f32.mxu0 %vm264_vm1, %v2732_v27  ;;  %v3565_v27 = vld [vmem:[%s6423_s21 + $0x5e] sm:$0xff] }
  0xc9   : > { %5707 = vmatmul.mubr.msk.f32.gmra.mrb[16].mxu1 %vm264_vm1, %v6994_v28 }
  0xca   : > { %5958 = vmatmul.mubr.msk.f32.gmra.mrb[34].mxu0 %vm264_vm1, %v2733_v29  ;;  %5709 = vmatprep.mubr.msk.f32.mxu1 %vm264_vm1, %v6999_v30  ;;  %v3567_v29 = vld [vmem:[%s6423_s21 + $0x6e] sm:$0xff] }
  0xcb   : > { %5962 = vmatprep.mubr.msk.f32.mxu0 %vm264_vm1, %v3128_v31  ;;  %v3569_v31 = vld [vmem:[%s6423_s21 + $0x7e] sm:$0xff] }
  0xcd   : > { %5710 = vmatmul.mubr.msk.f32.gmra.mrb[18].mxu1 %vm264_vm1, %v7008_v32 }
  0xce   : > { %5963 = vmatmul.mubr.msk.f32.vlgmr.msra.gmra.mrb[0].mxu0 %vm264_vm1, %v3129_v33  ;;  %5712 = vmatprep.mubr.msk.f32.mxu1 %vm264_vm1, %v7013_v34  ;;  %v3571_v33 = vld [vmem:[%s6423_s21 + $0x8e] sm:$0xff] }
  0xcf   : > { %6017 = vmatpush3.msk.msra.mxu0 %vm373_vm0, %v6806_v5  ;;  %5965 = vmatprep.mubr.msk.f32.mxu0 %vm264_vm1, %v3130_v35  ;;  %v3141_v5 = vld [vmem:[%s6423_s21 + $0x8d] sm:$0xff]  ;;  %v3573_v35 = vld [vmem:[%s6423_s21 + $0x9e] sm:$0xff] }
  0xd1   : > { %5713 = vmatmul.mubr.msk.f32.gmra.mrb[20].mxu1 %vm264_vm1, %v7022_v36 }
  0xd2   : > { %5966 = vmatmul.mubr.msk.f32.gmra.mrb[2].mxu0 %vm264_vm1, %v3131_v37  ;;  %5715 = vmatprep.mubr.msk.f32.mxu1 %vm264_vm1, %v7029_v38  ;;  %v3574_v37 = vld [vmem:[%s6423_s21 + $0xa6] sm:$0xff] }
  0xd3   : > { %5968 = vmatprep.mubr.msk.f32.mxu0 %vm264_vm1, %v3132_v39  ;;  %v3575_v39 = vld [vmem:[%s6423_s21 + $0xae] sm:$0xff] }
  0xd5   : > { %5716 = vmatmul.mubr.msk.f32.gmra.mrb[22].mxu1 %vm264_vm1, %v7038_v40 }
  0xd6   : > { %5969 = vmatmul.mubr.msk.f32.gmra.mrb[4].mxu0 %vm264_vm1, %v3133_v41  ;;  %5718 = vmatprep.mubr.msk.f32.mxu1 %vm264_vm1, %v7043_v42  ;;  %v3576_v41 = vld [vmem:[%s6423_s21 + $0xb6] sm:$0xff] }
  0xd7   : > { %5971 = vmatprep.mubr.msk.f32.mxu0 %vm264_vm1, %v3134_v43  ;;  %v3577_v43 = vld [vmem:[%s6423_s21 + $0xbe] sm:$0xff] }
  0xd9   : > { %5719 = vmatmul.mubr.msk.f32.gmra.mrb[24].mxu1 %vm264_vm1, %v7052_v44 }
  0xda   : > { %5972 = vmatmul.mubr.msk.f32.gmra.mrb[6].mxu0 %vm264_vm1, %v3135_v45  ;;  %5721 = vmatprep.mubr.msk.f32.mxu1 %vm264_vm1, %v7057_v46  ;;  %v3578_v45 = vld [vmem:[%s6423_s21 + $0xc6] sm:$0xff] }
  0xdb   : > { %5974 = vmatprep.mubr.msk.f32.mxu0 %vm264_vm1, %v3136_v47  ;;  %v3579_v47 = vld [vmem:[%s6423_s21 + $0xce] sm:$0xff] }
  0xdd   : > { %5722 = vmatmul.mubr.msk.f32.gmra.mrb[26].mxu1 %vm264_vm1, %v7066_v50 }
  0xde   : > { %5975 = vmatmul.mubr.msk.f32.gmra.mrb[8].mxu0 %vm264_vm1, %v3137_v52  ;;  %5724 = vmatprep.mubr.msk.f32.mxu1 %vm264_vm1, %v7071_v54  ;;  %v3580_v52 = vld [vmem:[%s6423_s21 + $0xd6] sm:$0xff] }
  0xdf   : > { %5977 = vmatprep.mubr.msk.f32.mxu0 %vm264_vm1, %v3138_v56  ;;  %v3581_v56 = vld [vmem:[%s6423_s21 + $0xde] sm:$0xff] }
  0xe1   : > { %5725 = vmatmul.mubr.msk.f32.gmra.mrb[28].mxu1 %vm264_vm1, %v7080_v58 }
  0xe2   : > { %5978 = vmatmul.mubr.msk.f32.gmra.mrb[10].mxu0 %vm264_vm1, %v3139_v60  ;;  %5727 = vmatprep.mubr.msk.f32.mxu1 %vm264_vm1, %v7085_v62  ;;  %v3582_v60 = vld [vmem:[%s6423_s21 + $0xe6] sm:$0xff] }
  0xe3   : > { %5980 = vmatprep.mubr.msk.f32.mxu0 %vm264_vm1, %v3140_v0  ;;  %v3583_v0 = vld [vmem:[%s6423_s21 + $0xee] sm:$0xff] }
  0xe5   : > { %5728 = vmatmul.mubr.msk.f32.gmra.mrb[30].mxu1 %vm264_vm1, %v7094_v3 }
  0xe6   : > { %5981 = vmatmul.mubr.msk.f32.gmra.mrb[12].mxu0 %vm264_vm1, %v3141_v5  ;;  %5730 = vmatprep.mubr.msk.f32.mxu1 %vm264_vm1, %v7099_v7  ;;  %v3584_v5 = vld [vmem:[%s6423_s21 + $0xf6] sm:$0xff] }
  0xe7   : > { %5983 = vmatprep.mubr.msk.f32.mxu0 %vm264_vm1, %v3142_v48  ;;  %v3585_v48 = vld [vmem:[%s6423_s21 + $0xfe] sm:$0xff] }
  0xe9   : > { %5731 = vmatmul.mubr.msk.f32.gmra.mrb[32].mxu1 %vm264_vm1, %v7108_v51 }
  0xea   : > { %5984 = vmatmul.mubr.msk.f32.gmra.mrb[14].mxu0 %vm264_vm1, %v3143_v49  ;;  %5733 = vmatprep.mubr.msk.f32.mxu1 %vm264_vm1, %v7113_v53  ;;  %v3586_v49 = vld [vmem:[%s6423_s21 + $0x106] sm:$0xff] }
  0xeb   : > { %5986 = vmatprep.mubr.msk.f32.mxu0 %vm264_vm1, %v3144_v55  ;;  %v3587_v55 = vld [vmem:[%s6423_s21 + $0x10e] sm:$0xff] }
  0xed   : > { %5734 = vmatmul.mubr.msk.f32.gmra.mrb[34].mxu1 %vm264_vm1, %v7122_v57 }
  0xee   : > { %5987 = vmatmul.mubr.msk.f32.gmra.mrb[16].mxu0 %vm264_vm1, %v3145_v59  ;;  %5738 = vmatprep.mubr.msk.f32.mxu1 %vm264_vm1, %v6883_v12  ;;  %v3156_v12 = vld [vmem:[%s6423_s21 + $0x105] sm:$0xff]  ;;  %v3588_v59 = vld [vmem:[%s6423_s21 + $0x116] sm:$0xff] }
  0xef   : > { %5989 = vmatprep.mubr.msk.f32.mxu0 %vm264_vm1, %v3146_v61  ;;  %v1869_v61 = vld [vmem:[%s6423_s21 + $0x10b] sm:$0xff] }
  0xf1   : > { %5739 = vmatmul.mubr.msk.f32.vlgmr.msra.gmra.mrb[0].mxu1 %vm264_vm1, %v6891_v13  ;;  %v3157_v13 = vld [vmem:[%s6423_s21 + $0x10d] sm:$0xff] }
  0xf2   : > { %5990 = vmatmul.mubr.msk.f32.gmra.mrb[18].mxu0 %vm264_vm1, %v3147_v63  ;;  %6073 = vmatpush3.msk.msra.mxu1 %vm373_vm0, %v6432_v2  ;;  %v3151_v2 = vld [vmem:[%s6423_s21 + $0xdd] sm:$0xff] }
  0xf3   : > { %5741 = vmatprep.mubr.msk.f32.mxu1 %vm264_vm1, %v6898_v14  ;;  %5992 = vmatprep.mubr.msk.f32.mxu0 %vm264_vm1, %v3148_v1  ;;  %v3158_v14 = vld [vmem:[%s6423_s21 + $0x115] sm:$0xff]  ;;  %v3589_v63 = vld [vmem:[%s6423_s21 + $0x11e] sm:$0xff] }
  0xf4   : > { %v1870_v1 = vld [vmem:[%s6423_s21 + $0x113] sm:$0xff] }
  0xf5   : > { %5742 = vmatmul.mubr.msk.f32.gmra.mrb[2].mxu1 %vm264_vm1, %v6909_v15  ;;  %v3159_v15 = vld [vmem:[%s6423_s21 + $0x11d] sm:$0xff] }
  0xf6   : > { %5993 = vmatmul.mubr.msk.f32.gmra.mrb[20].mxu0 %vm264_vm1, %v3149_v4  ;;  %5744 = vmatprep.mubr.msk.f32.mxu1 %vm264_vm1, %v6914_v16  ;;  %v3160_v16 = vld [vmem:[%s6423_s21 + $0x125] sm:$0xff] }
  0xf7   : > { %5995 = vmatprep.mubr.msk.f32.mxu0 %vm264_vm1, %v3150_v6  ;;  %v3590_v4 = vld [vmem:[%s6423_s21 + $0x126] sm:$0xff]  ;;  %v1871_v6 = vld [vmem:[%s6423_s21 + $0x11b] sm:$0xff] }
  0xf9   : > { %5745 = vmatmul.mubr.msk.f32.gmra.mrb[4].mxu1 %vm264_vm1, %v6923_v17  ;;  %v3161_v17 = vld [vmem:[%s6423_s21 + $0x12d] sm:$0xff] }
  0xfa   : > { %5996 = vmatmul.mubr.msk.f32.gmra.mrb[22].mxu0 %vm264_vm1, %v3151_v2  ;;  %5747 = vmatprep.mubr.msk.f32.mxu1 %vm264_vm1, %v6928_v18  ;;  %v3162_v18 = vld [vmem:[%s6423_s21 + $0x135] sm:$0xff] }
  0xfb   : > { %5998 = vmatprep.mubr.msk.f32.mxu0 %vm264_vm1, %v3152_v8  ;;  %v3591_v2 = vld [vmem:[%s6423_s21 + $0x12e] sm:$0xff]  ;;  %v1872_v8 = vld [vmem:[%s6423_s21 + $0x123] sm:$0xff] }
  0xfd   : > { %5748 = vmatmul.mubr.msk.f32.gmra.mrb[6].mxu1 %vm264_vm1, %v6937_v19  ;;  %v3163_v19 = vld [vmem:[%s6423_s21 + $0x13d] sm:$0xff] }
  0xfe   : > { %5999 = vmatmul.mubr.msk.f32.gmra.mrb[24].mxu0 %vm264_vm1, %v3153_v9  ;;  %5750 = vmatprep.mubr.msk.f32.mxu1 %vm264_vm1, %v6942_v20  ;;  %v3558_v20 = vld [vmem:[%s6423_s21 + $0x26] sm:$0xff]  ;;  %v3592_v9 = vld [vmem:[%s6423_s21 + $0x136] sm:$0xff] }
  0xff   : > { %6001 = vmatprep.mubr.msk.f32.mxu0 %vm264_vm1, %v3154_v10  ;;  %v1873_v10 = vld [vmem:[%s6423_s21 + $0x12b] sm:$0xff] }
 0x101   : > { %5751 = vmatmul.mubr.msk.f32.gmra.mrb[8].mxu1 %vm264_vm1, %v6951_v21  ;;  %v3559_v21 = vld [vmem:[%s6423_s21 + $0x2e] sm:$0xff] }
 0x102   : > { %6002 = vmatmul.mubr.msk.f32.gmra.mrb[26].mxu0 %vm264_vm1, %v3155_v11  ;;  %5753 = vmatprep.mubr.msk.f32.mxu1 %vm264_vm1, %v6956_v22  ;;  %v3560_v22 = vld [vmem:[%s6423_s21 + $0x36] sm:$0xff]  ;;  %v3593_v11 = vld [vmem:[%s6423_s21 + $0x13e] sm:$0xff] }
 0x103   : > { %6004 = vmatprep.mubr.msk.f32.mxu0 %vm264_vm1, %v3156_v12 }
 0x105   : > { %5754 = vmatmul.mubr.msk.f32.gmra.mrb[10].mxu1 %vm264_vm1, %v6965_v23  ;;  %v3561_v23 = vld [vmem:[%s6423_s21 + $0x3e] sm:$0xff] }
 0x106   : > { %6005 = vmatmul.mubr.msk.f32.gmra.mrb[28].mxu0 %vm264_vm1, %v3157_v13  ;;  %5756 = vmatprep.mubr.msk.f32.mxu1 %vm264_vm1, %v6970_v24  ;;  %v3562_v24 = vld [vmem:[%s6423_s21 + $0x46] sm:$0xff] }
 0x107   : > { %6007 = vmatprep.mubr.msk.f32.mxu0 %vm264_vm1, %v3158_v14 }
 0x109   : > { %5757 = vmatmul.mubr.msk.f32.gmra.mrb[12].mxu1 %vm264_vm1, %v6979_v25  ;;  %v3563_v25 = vld [vmem:[%s6423_s21 + $0x4e] sm:$0xff] }
 0x10a   : > { %6008 = vmatmul.mubr.msk.f32.gmra.mrb[30].mxu0 %vm264_vm1, %v3159_v15  ;;  %5759 = vmatprep.mubr.msk.f32.mxu1 %vm264_vm1, %v6984_v26  ;;  %v3564_v26 = vld [vmem:[%s6423_s21 + $0x56] sm:$0xff] }
 0x10b   : > { %6010 = vmatprep.mubr.msk.f32.mxu0 %vm264_vm1, %v3160_v16 }
 0x10d   : > { %5760 = vmatmul.mubr.msk.f32.gmra.mrb[14].mxu1 %vm264_vm1, %v6994_v28  ;;  %v3566_v28 = vld [vmem:[%s6423_s21 + $0x66] sm:$0xff] }
 0x10e   : > { %6011 = vmatmul.mubr.msk.f32.gmra.mrb[32].mxu0 %vm264_vm1, %v3161_v17  ;;  %5762 = vmatprep.mubr.msk.f32.mxu1 %vm264_vm1, %v6999_v30  ;;  %v3568_v30 = vld [vmem:[%s6423_s21 + $0x76] sm:$0xff] }
 0x10f   : > { %6013 = vmatprep.mubr.msk.f32.mxu0 %vm264_vm1, %v3162_v18 }
 0x111   : > { %5763 = vmatmul.mubr.msk.f32.gmra.mrb[16].mxu1 %vm264_vm1, %v7008_v32  ;;  %v3570_v32 = vld [vmem:[%s6423_s21 + $0x86] sm:$0xff] }
 0x112   : > { %6014 = vmatmul.mubr.msk.f32.gmra.mrb[34].mxu0 %vm264_vm1, %v3163_v19  ;;  %5765 = vmatprep.mubr.msk.f32.mxu1 %vm264_vm1, %v7013_v34  ;;  %v3572_v34 = vld [vmem:[%s6423_s21 + $0x96] sm:$0xff] }
 0x113   : > { %6018 = vmatprep.mubr.msk.f32.mxu0 %vm264_vm1, %v3558_v20 }
 0x115   : > { %5766 = vmatmul.mubr.msk.f32.gmra.mrb[18].mxu1 %vm264_vm1, %v7022_v36  ;;  %v1442_v36 = vld [vmem:[%s6423_s21 + $0x122] sm:$0xff] }
 0x116   : > { %6019 = vmatmul.mubr.msk.f32.vlgmr.msra.gmra.mrb[0].mxu0 %vm264_vm1, %v3559_v21  ;;  %5768 = vmatprep.mubr.msk.f32.mxu1 %vm264_vm1, %v7029_v38  ;;  %v1443_v38 = vld [vmem:[%s6423_s21 + $0x12a] sm:$0xff] }
 0x117   : > { %6021 = vmatprep.mubr.msk.f32.mxu0 %vm264_vm1, %v3560_v22 }
 0x119   : > { %5769 = vmatmul.mubr.msk.f32.gmra.mrb[20].mxu1 %vm264_vm1, %v7038_v40  ;;  %v1856_v40 = vld [vmem:[%s6423_s21 + $0xa3] sm:$0xff] }
 0x11a   : > { %6022 = vmatmul.mubr.msk.f32.gmra.mrb[2].mxu0 %vm264_vm1, %v3561_v23  ;;  %5771 = vmatprep.mubr.msk.f32.mxu1 %vm264_vm1, %v7043_v42  ;;  %v1857_v42 = vld [vmem:[%s6423_s21 + $0xab] sm:$0xff] }
 0x11b   : > { %6024 = vmatprep.mubr.msk.f32.mxu0 %vm264_vm1, %v3562_v24 }
 0x11d   : > { %5772 = vmatmul.mubr.msk.f32.gmra.mrb[22].mxu1 %vm264_vm1, %v7052_v44  ;;  %v1858_v44 = vld [vmem:[%s6423_s21 + $0xb3] sm:$0xff] }
 0x11e   : > { %6025 = vmatmul.mubr.msk.f32.gmra.mrb[4].mxu0 %vm264_vm1, %v3563_v25  ;;  %5774 = vmatprep.mubr.msk.f32.mxu1 %vm264_vm1, %v7057_v46  ;;  %v1859_v46 = vld [vmem:[%s6423_s21 + $0xbb] sm:$0xff] }
 0x11f   : > { %6027 = vmatprep.mubr.msk.f32.mxu0 %vm264_vm1, %v3564_v26 }
 0x121   : > { %5775 = vmatmul.mubr.msk.f32.gmra.mrb[24].mxu1 %vm264_vm1, %v7066_v50  ;;  %v1860_v50 = vld [vmem:[%s6423_s21 + $0xc3] sm:$0xff] }
 0x122   : > { %6028 = vmatmul.mubr.msk.f32.gmra.mrb[6].mxu0 %vm264_vm1, %v3565_v27  ;;  %5777 = vmatprep.mubr.msk.f32.mxu1 %vm264_vm1, %v7071_v54  ;;  %v1861_v54 = vld [vmem:[%s6423_s21 + $0xcb] sm:$0xff] }
 0x123   : > { %6030 = vmatprep.mubr.msk.f32.mxu0 %vm264_vm1, %v3566_v28 }
 0x125   : > { %5778 = vmatmul.mubr.msk.f32.gmra.mrb[26].mxu1 %vm264_vm1, %v7080_v58  ;;  %v1862_v58 = vld [vmem:[%s6423_s21 + $0xd3] sm:$0xff] }
 0x126   : > { %6031 = vmatmul.mubr.msk.f32.gmra.mrb[8].mxu0 %vm264_vm1, %v3567_v29  ;;  %5780 = vmatprep.mubr.msk.f32.mxu1 %vm264_vm1, %v7085_v62  ;;  %v1863_v62 = vld [vmem:[%s6423_s21 + $0xdb] sm:$0xff] }
 0x127   : > { %6033 = vmatprep.mubr.msk.f32.mxu0 %vm264_vm1, %v3568_v30 }
 0x129   : > { %5781 = vmatmul.mubr.msk.f32.gmra.mrb[28].mxu1 %vm264_vm1, %v7094_v3  ;;  %v1864_v3 = vld [vmem:[%s6423_s21 + $0xe3] sm:$0xff] }
 0x12a   : > { %6034 = vmatmul.mubr.msk.f32.gmra.mrb[10].mxu0 %vm264_vm1, %v3569_v31  ;;  %5783 = vmatprep.mubr.msk.f32.mxu1 %vm264_vm1, %v7099_v7  ;;  %v1865_v7 = vld [vmem:[%s6423_s21 + $0xeb] sm:$0xff] }
 0x12b   : > { %6036 = vmatprep.mubr.msk.f32.mxu0 %vm264_vm1, %v3570_v32 }
 0x12d   : > { %5784 = vmatmul.mubr.msk.f32.gmra.mrb[30].mxu1 %vm264_vm1, %v7108_v51  ;;  %v1866_v51 = vld [vmem:[%s6423_s21 + $0xf3] sm:$0xff] }
 0x12e   : > { %6037 = vmatmul.mubr.msk.f32.gmra.mrb[12].mxu0 %vm264_vm1, %v3571_v33  ;;  %5786 = vmatprep.mubr.msk.f32.mxu1 %vm264_vm1, %v7113_v53  ;;  %v1867_v53 = vld [vmem:[%s6423_s21 + $0xfb] sm:$0xff] }
 0x12f   : > { %6039 = vmatprep.mubr.msk.f32.mxu0 %vm264_vm1, %v3572_v34 }
 0x131   : > { %5787 = vmatmul.mubr.msk.f32.gmra.mrb[32].mxu1 %vm264_vm1, %v7122_v57  ;;  %v1868_v57 = vld [vmem:[%s6423_s21 + $0x103] sm:$0xff] }
 0x132   : > { %6040 = vmatmul.mubr.msk.f32.gmra.mrb[14].mxu0 %vm264_vm1, %v3573_v35  ;;  %5789 = vmatprep.mubr.msk.f32.mxu1 %vm264_vm1, %v1442_v36 }
 0x133   : > { %6042 = vmatprep.mubr.msk.f32.mxu0 %vm264_vm1, %v3574_v37 }
 0x135   : > { %5790 = vmatmul.mubr.msk.f32.gmra.mrb[34].mxu1 %vm264_vm1, %v1443_v38 }
 0x136   : > { %6043 = vmatmul.mubr.msk.f32.gmra.mrb[16].mxu0 %vm264_vm1, %v3575_v39  ;;  %5821 = vmatprep.mubr.msk.f32.mxu1 %vm264_vm1, %v1856_v40 }
 0x137   : > { %6045 = vmatprep.mubr.msk.f32.mxu0 %vm264_vm1, %v3576_v41 }
 0x139   : > { %5822 = vmatmul.mubr.msk.f32.vlgmr.msra.gmra.mrb[18].mxu1 %vm264_vm1, %v1857_v42 }
 0x13a   : > { %6046 = vmatmul.mubr.msk.f32.gmra.mrb[18].mxu0 %vm264_vm1, %v3577_v43  ;;  %5824 = vmatprep.mubr.msk.f32.mxu1 %vm264_vm1, %v1858_v44 }
 0x13b   : > { %6048 = vmatprep.mubr.msk.f32.mxu0 %vm264_vm1, %v3578_v45 }
 0x13d   : > { %5825 = vmatmul.mubr.msk.f32.gmra.mrb[20].mxu1 %vm264_vm1, %v1859_v46 }
 0x13e   : > { %6049 = vmatmul.mubr.msk.f32.gmra.mrb[20].mxu0 %vm264_vm1, %v3579_v47  ;;  %5827 = vmatprep.mubr.msk.f32.mxu1 %vm264_vm1, %v1860_v50 }
 0x13f   : > { %6051 = vmatprep.mubr.msk.f32.mxu0 %vm264_vm1, %v3580_v52 }
 0x141   : > { %5828 = vmatmul.mubr.msk.f32.gmra.mrb[22].mxu1 %vm264_vm1, %v1861_v54 }
 0x142   : > { %6052 = vmatmul.mubr.msk.f32.gmra.mrb[22].mxu0 %vm264_vm1, %v3581_v56  ;;  %5830 = vmatprep.mubr.msk.f32.mxu1 %vm264_vm1, %v1862_v58 }
 0x143   : > { %6054 = vmatprep.mubr.msk.f32.mxu0 %vm264_vm1, %v3582_v60 }
 0x145   : > { %5831 = vmatmul.mubr.msk.f32.gmra.mrb[24].mxu1 %vm264_vm1, %v1863_v62 }
 0x146   : > { %6055 = vmatmul.mubr.msk.f32.gmra.mrb[24].mxu0 %vm264_vm1, %v3583_v0  ;;  %5833 = vmatprep.mubr.msk.f32.mxu1 %vm264_vm1, %v1864_v3 }
 0x147   : > { %6057 = vmatprep.mubr.msk.f32.mxu0 %vm264_vm1, %v3584_v5 }
 0x149   : > { %5834 = vmatmul.mubr.msk.f32.gmra.mrb[26].mxu1 %vm264_vm1, %v1865_v7 }
 0x14a   : > { %6058 = vmatmul.mubr.msk.f32.gmra.mrb[26].mxu0 %vm264_vm1, %v3585_v48  ;;  %5836 = vmatprep.mubr.msk.f32.mxu1 %vm264_vm1, %v1866_v51 }
 0x14b   : > { %6060 = vmatprep.mubr.msk.f32.mxu0 %vm264_vm1, %v3586_v49 }
 0x14d   : > { %5837 = vmatmul.mubr.msk.f32.gmra.mrb[28].mxu1 %vm264_vm1, %v1867_v53 }
 0x14e   : > { %6061 = vmatmul.mubr.msk.f32.gmra.mrb[28].mxu0 %vm264_vm1, %v3587_v55  ;;  %5839 = vmatprep.mubr.msk.f32.mxu1 %vm264_vm1, %v1868_v57 }
 0x14f   : > { %6063 = vmatprep.mubr.msk.f32.mxu0 %vm264_vm1, %v3588_v59 }
 0x151   : > { %5840 = vmatmul.mubr.msk.f32.gmra.mrb[30].mxu1 %vm264_vm1, %v1869_v61 }
 0x152   : > { %6064 = vmatmul.mubr.msk.f32.gmra.mrb[30].mxu0 %vm264_vm1, %v3589_v63  ;;  %5842 = vmatprep.mubr.msk.f32.mxu1 %vm264_vm1, %v1870_v1 }
 0x153   : > { %6066 = vmatprep.mubr.msk.f32.mxu0 %vm264_vm1, %v3590_v4 }
 0x155   : > { %5843 = vmatmul.mubr.msk.f32.gmra.mrb[32].mxu1 %vm264_vm1, %v1871_v6 }
 0x156   : > { %6067 = vmatmul.mubr.msk.f32.gmra.mrb[32].mxu0 %vm264_vm1, %v3591_v2  ;;  %5845 = vmatprep.mubr.msk.f32.mxu1 %vm264_vm1, %v1872_v8 }
 0x157   : > { %6069 = vmatprep.mubr.msk.f32.mxu0 %vm264_vm1, %v3592_v9 }
 0x159   : > { %5846 = vmatmul.mubr.msk.f32.gmra.mrb[34].mxu1 %vm264_vm1, %v1873_v10 }
 0x15a   : > { %6070 = vmatmul.mubr.msk.f32.gmra.mrb[34].mxu0 %vm264_vm1, %v3593_v11 }
 0x1c4   : > { %v5740_v12 = vpop.f32.mrb[0].mxu1 }
 0x1c5   : > { %v1623_v13 = vpop.f32.mrb[1].mxu1 }
 0x1c8   : > { %v5743_v14 = vpop.f32.mrb[2].mxu1 }
 0x1c9   : > { %v1633_v15 = vpop.f32.mrb[3].mxu1 }
 0x1cc   : > { %v5746_v16 = vpop.f32.mrb[4].mxu1 }
 0x1cd   : > { %v1643_v17 = vpop.f32.mrb[5].mxu1 }
 0x1d0   : > { %v5749_v18 = vpop.f32.mrb[6].mxu1 }
 0x1d1   : > { %v1653_v19 = vpop.f32.mrb[7].mxu1 }
 0x1d4   : > { %v5752_v20 = vpop.f32.mrb[8].mxu1 }
 0x1d5   : > { %v1663_v21 = vpop.f32.mrb[9].mxu1 }
 0x1d8   : > { %v7347_v22 = vpop.f32.mrb[10].mxu1 }
 0x1d9   : > { %v7349_v23 = vpop.f32.mrb[11].mxu1 }
 0x1dc   : > { %v7351_v24 = vpop.f32.mrb[12].mxu1 }
 0x1dd   : > { %v7353_v25 = vpop.f32.mrb[13].mxu1 }
 0x1e0   : > { %v7355_v26 = vpop.f32.mrb[14].mxu1 }
 0x1e1   : > { %v7357_v27 = vpop.f32.mrb[15].mxu1 }
 0x1e4   : > { %v7359_v28 = vpop.f32.mrb[16].mxu1 }
 0x1e5   : > { %v7361_v29 = vpop.f32.mrb[17].mxu1 }
 0x1e9   : > { %v6020_v30 = vpop.f32.mrb[0].mxu0 }
 0x1ea   : > { %v6074_v31 = vadd.f32 %v6020_v30, %v5740_v12  ;;  %v3773_v32 = vpop.f32.mrb[1].mxu0 }
 0x1eb   : > { %v6075_v33 = vadd.f32 %v3773_v32, %v1623_v13 }
 0x1ec   : > { %v4035_v34 = vmul.f32 %v6074_v31, %v6074_v31  ;;  %4048 = vst.msk [vmem:[%s7367_s19 + $0x8] sm:$0xff] %vm4046_vm2, %v6074_v31 }
 0x1ed   : > { %v4026_v35 = vadd.f32 %v6075_v33, %v6074_v31  ;;  %v4034_v36 = vmul.f32 %v6075_v33, %v6075_v33  ;;  %4047 = vst.msk [vmem:[%s7367_s19] sm:$0xff] %vm4046_vm2, %v6075_v33  ;;  %v6023_v37 = vpop.f32.mrb[2].mxu0 }
 0x1ee   : > { %v6076_v38 = vadd.f32 %v6023_v37, %v5743_v14  ;;  %v3783_v39 = vpop.f32.mrb[3].mxu0 }
 0x1ef   : > { %v4027_v40 = vrot.slane %v4026_v35, 4  ;;  %v4036_v41 = vadd.f32 %v4035_v34, %v4034_v36  ;;  %v6077_v42 = vadd.f32 %v3783_v39, %v1633_v15 }
 0x1f0   : > { %3991 = vst [vmem:[#allocation2 + $0x18] sm:$0xff] %v6076_v38 }
 0x1f1   : > { %v4028_v43 = vadd.f32 %v4027_v40, %v4026_v35  ;;  %v4037_v44 = vrot.slane %v4036_v41, 4  ;;  %3990 = vst [vmem:[#allocation2 + $0x10] sm:$0xff] %v6077_v42  ;;  %v6026_v45 = vpop.f32.mrb[4].mxu0 }
 0x1f2   : > { %v6078_v46 = vadd.f32 %v6026_v45, %v5746_v16  ;;  %v3793_v47 = vpop.f32.mrb[5].mxu0 }
 0x1f3   : > { %v4038_v50 = vadd.f32 %v4037_v44, %v4036_v41  ;;  %v6079_v52 = vadd.f32 %v3793_v47, %v1643_v17  ;;  %v4029_v54 = vrot.slane %v4028_v43, 2 }
 0x1f4   : > { %3993 = vst [vmem:[#allocation2 + $0x28] sm:$0xff] %v6078_v46 }
 0x1f5   : > { %v4039_v56 = vrot.slane %v4038_v50, 2  ;;  %3992 = vst [vmem:[#allocation2 + $0x20] sm:$0xff] %v6079_v52  ;;  %v6029_v58 = vpop.f32.mrb[6].mxu0  ;;  %v4030_v3 = vadd.f32 %v4029_v54, %v4028_v43 }
 0x1f6   : > { %v6080_v60 = vadd.f32 %v6029_v58, %v5749_v18  ;;  %v3803_v62 = vpop.f32.mrb[7].mxu0 }
 0x1f7   : > { %v6081_v0 = vadd.f32 %v3803_v62, %v1653_v19  ;;  %v4040_v5 = vadd.f32 %v4039_v56, %v4038_v50  ;;  %v4031_v55 = vrot.slane %v4030_v3, 1 }
 0x1f8   : > { %v4049_v7 = vld [vmem:[#allocation2 + $0x12] sm:$0xff]  ;;  %3995 = vst [vmem:[#allocation2 + $0x38] sm:$0xff] %v6080_v60 }
 0x1f9   : > { %5188 = vst.msk [vmem:[%s7367_s19 + $0x10] sm:$0xff] %vm4046_vm2, %v4049_v7  ;;  %3994 = vst [vmem:[#allocation2 + $0x30] sm:$0xff] %v6081_v0  ;;  %v6032_v48 = vpop.f32.mrb[8].mxu0  ;;  %v4041_v57 = vrot.slane %v4040_v5, 1  ;;  %v4059_v63 = vmul.f32 %v4049_v7, %v4049_v7  ;;  %v4032_v12 = vadd.f32 %v4031_v55, %v4030_v3 }
 0x1fa   : > { %v6082_v51 = vadd.f32 %v6032_v48, %v5752_v20  ;;  %v3813_v49 = vpop.f32.mrb[9].mxu0 }
 0x1fb   : > { %v6083_v53 = vadd.f32 %v3813_v49, %v1663_v21  ;;  %v7383_v13 = vadd.f32 %v4041_v57, %v4040_v5 }
 0x1fc   : > { %v4050_v59 = vld [vmem:[#allocation2 + $0x1a] sm:$0xff]  ;;  %v4073_v61 = vld [vmem:[#allocation2 + $0x24] sm:$0xff]  ;;  %5197 = vst.msk [vmem:[%s7367_s19 + $0x40] sm:$0xff] %vm4046_vm2, %v6082_v51 }
 0x1fd   : > { %v4051_v1 = vadd.f32 %v4050_v59, %v4049_v7  ;;  %v4060_v4 = vmul.f32 %v4050_v59, %v4050_v59  ;;  %5189 = vst.msk [vmem:[%s7367_s19 + $0x18] sm:$0xff] %vm4046_vm2, %v4050_v59  ;;  %5191 = vst.msk [vmem:[%s7367_s19 + $0x20] sm:$0xff] %vm4046_vm2, %v4073_v61  ;;  %v6035_v6 = vpop.f32.mrb[10].mxu0  ;;  %v4083_v14 = vmul.f32 %v4073_v61, %v4073_v61 }
 0x1fe   : > { %3996 = vst [vmem:[#allocation2 + $0x40] sm:$0xff] %v6083_v53  ;;  %v6084_v2 = vadd.f32 %v6035_v6, %v7347_v22  ;;  %v3823_v8 = vpop.f32.mrb[11].mxu0  ;;  %v4131_v22 = vmul.f32 %v6082_v51, %v6082_v51 }
 0x1ff   : > { %v4052_v9 = vrot.slane %v4051_v1, 4  ;;  %v4061_v10 = vadd.f32 %v4060_v4, %v4059_v63  ;;  %v6085_v11 = vadd.f32 %v3823_v8, %v7349_v23 }
 0x200   : > { %v4074_v15 = vld [vmem:[#allocation2 + $0x2c] sm:$0xff]  ;;  %v4097_v16 = vld [vmem:[#allocation2 + $0x36] sm:$0xff]  ;;  %3999 = vst [vmem:[#allocation2 + $0x58] sm:$0xff] %v6084_v2 }
 0x201   : > { %v4053_v17 = vadd.f32 %v4052_v9, %v4051_v1  ;;  %v4062_v18 = vrot.slane %v4061_v10, 4  ;;  %v4075_v19 = vadd.f32 %v4074_v15, %v4073_v61  ;;  %v4084_v20 = vmul.f32 %v4074_v15, %v4074_v15  ;;  %5192 = vst.msk [vmem:[%s7367_s19 + $0x28] sm:$0xff] %vm4046_vm2, %v4074_v15  ;;  %5194 = vst.msk [vmem:[%s7367_s19 + $0x30] sm:$0xff] %vm4046_vm2, %v4097_v16  ;;  %v6038_v21 = vpop.f32.mrb[12].mxu0 }
 0x202   : > { %5198 = vst.msk [vmem:[%s7367_s19 + $0x48] sm:$0xff] %vm4046_vm2, %v6085_v11  ;;  %v4123_v23 = vadd.f32 %v6085_v11, %v6082_v51  ;;  %v4132_v30 = vmul.f32 %v6085_v11, %v6085_v11  ;;  %v6086_v31 = vadd.f32 %v6038_v21, %v7351_v24  ;;  %v3833_v32 = vpop.f32.mrb[13].mxu0  ;;  %v4107_v37 = vmul.f32 %v4097_v16, %v4097_v16 }
 0x203   : > { %v4054_v33 = vrot.slane %v4053_v17, 2  ;;  %v4063_v34 = vadd.f32 %v4062_v18, %v4061_v10  ;;  %v4076_v35 = vrot.slane %v4075_v19, 4  ;;  %v4085_v36 = vadd.f32 %v4084_v20, %v4083_v14 }
 0x204   : > { %v4124_v39 = vrot.slane %v4123_v23, 4  ;;  %v4133_v40 = vadd.f32 %v4132_v30, %v4131_v22  ;;  %4001 = vst [vmem:[#allocation2 + $0x68] sm:$0xff] %v6086_v31  ;;  %v6087_v41 = vadd.f32 %v3833_v32, %v7353_v25 }
 0x205   : > { %v4098_v38 = vld [vmem:[#allocation2 + $0x3e] sm:$0xff]  ;;  %v4055_v42 = vadd.f32 %v4054_v33, %v4053_v17  ;;  %v4064_v43 = vrot.slane %v4063_v34, 2  ;;  %v4077_v44 = vadd.f32 %v4076_v35, %v4075_v19  ;;  %v4086_v45 = vrot.slane %v4085_v36, 4  ;;  %v6041_v24 = vpop.f32.mrb[14].mxu0 }
 0x206   : > { %5195 = vst.msk [vmem:[%s7367_s19 + $0x38] sm:$0xff] %vm4046_vm2, %v4098_v38  ;;  %v4099_v46 = vadd.f32 %v4098_v38, %v4097_v16  ;;  %v4108_v47 = vmul.f32 %v4098_v38, %v4098_v38  ;;  %v4125_v50 = vadd.f32 %v4124_v39, %v4123_v23  ;;  %v4134_v52 = vrot.slane %v4133_v40, 4  ;;  %4000 = vst [vmem:[#allocation2 + $0x60] sm:$0xff] %v6087_v41  ;;  %v3843_v54 = vpop.f32.mrb[15].mxu0 }
 0x207   : > { %v4056_v56 = vrot.slane %v4055_v42, 1  ;;  %v4065_v58 = vadd.f32 %v4064_v43, %v4063_v34  ;;  %v4078_v60 = vrot.slane %v4077_v44, 2  ;;  %v4087_v62 = vadd.f32 %v4086_v45, %v4085_v36 }
 0x208   : > { %v4100_v0 = vrot.slane %v4099_v46, 4  ;;  %v4109_v3 = vadd.f32 %v4108_v47, %v4107_v37  ;;  %v4126_v25 = vrot.slane %v4125_v50, 2  ;;  %v4135_v5 = vadd.f32 %v4134_v52, %v4133_v40 }
 0x209   : > { %v4057_v7 = vadd.f32 %v4056_v56, %v4055_v42  ;;  %v4066_v48 = vrot.slane %v4065_v58, 1  ;;  %v4079_v51 = vadd.f32 %v4078_v60, %v4077_v44  ;;  %v4088_v49 = vrot.slane %v4087_v62, 2  ;;  %v6044_v53 = vpop.f32.mrb[16].mxu0 }
 0x20a   : > { %v4101_v55 = vadd.f32 %v4100_v0, %v4099_v46  ;;  %v4110_v57 = vrot.slane %v4109_v3, 4  ;;  %v4127_v59 = vadd.f32 %v4126_v25, %v4125_v50  ;;  %v4136_v61 = vrot.slane %v4135_v5, 2  ;;  %v3853_v63 = vpop.f32.mrb[17].mxu0 }
 0x20b   : > { %v4058_v1 = vadd.f32 %v4057_v7, %v4032_v12  ;;  %v4067_v4 = vadd.f32 %v4066_v48, %v4065_v58  ;;  %v4080_v6 = vrot.slane %v4079_v51, 1  ;;  %v4089_v2 = vadd.f32 %v4088_v49, %v4087_v62 }
 0x20c   : > { %v4102_v8 = vrot.slane %v4101_v55, 2  ;;  %v4111_v9 = vadd.f32 %v4110_v57, %v4109_v3  ;;  %v4128_v10 = vrot.slane %v4127_v59, 1  ;;  %v4137_v11 = vadd.f32 %v4136_v61, %v4135_v5  ;;  %v5823_v14 = vpop.f32.mrb[18].mxu1 }
 0x20d   : > { %v4068_v15 = vadd.f32 %v4067_v4, %v7383_v13  ;;  %v4081_v16 = vadd.f32 %v4080_v6, %v4079_v51  ;;  %v4090_v17 = vrot.slane %v4089_v2, 1  ;;  %v4145_v18 = vld [vmem:[#allocation2 + $0x5a] sm:$0xff]  ;;  %v4146_v19 = vld [vmem:[#allocation2 + $0x62] sm:$0xff]  ;;  %v6088_v20 = vadd.f32 %v6041_v24, %v7355_v26  ;;  %v6047_v21 = vpop.f32.mrb[18].mxu0  ;;  %v2143_v12 = vpop.f32.mrb[19].mxu1 }
 0x20e   : > { %v4103_v22 = vadd.f32 %v4102_v8, %v4101_v55  ;;  %v4112_v23 = vrot.slane %v4111_v9, 2  ;;  %v4129_v30 = vadd.f32 %v4128_v10, %v4127_v59  ;;  %v4138_v31 = vrot.slane %v4137_v11, 1  ;;  %5200 = vst.msk [vmem:[%s7367_s19 + $0x50] sm:$0xff] %vm4046_vm2, %v4145_v18  ;;  %5201 = vst.msk [vmem:[%s7367_s19 + $0x58] sm:$0xff] %vm4046_vm2, %v4146_v19  ;;  %v3863_v32 = vpop.f32.mrb[19].mxu0 }
 0x20f   : > { %v4082_v33 = vadd.f32 %v4081_v16, %v4058_v1  ;;  %v4091_v34 = vadd.f32 %v4090_v17, %v4089_v2  ;;  %v4147_v13 = vadd.f32 %v4146_v19, %v4145_v18  ;;  %v4155_v35 = vmul.f32 %v4145_v18, %v4145_v18  ;;  %4003 = vst [vmem:[#allocation2 + $0x78] sm:$0xff] %v6088_v20 }
 0x210   : > { %v4104_v36 = vrot.slane %v4103_v22, 1  ;;  %v4113_v37 = vadd.f32 %v4112_v23, %v4111_v9  ;;  %v4139_v38 = vadd.f32 %v4138_v31, %v4137_v11  ;;  %v4156_v26 = vmul.f32 %v4146_v19, %v4146_v19  ;;  %v5826_v39 = vpop.f32.mrb[20].mxu1 }
 0x211   : > { %v4092_v40 = vadd.f32 %v4091_v34, %v4068_v15  ;;  %v4148_v41 = vrot.slane %v4147_v13, 4  ;;  %v6089_v42 = vadd.f32 %v3843_v54, %v7357_v27  ;;  %v6090_v43 = vadd.f32 %v6044_v53, %v7359_v28  ;;  %v6050_v44 = vpop.f32.mrb[20].mxu0  ;;  %v2153_v45 = vpop.f32.mrb[21].mxu1 }
 0x212   : > { %v4105_v24 = vadd.f32 %v4104_v36, %v4103_v22  ;;  %v4114_v46 = vrot.slane %v4113_v37, 1  ;;  %v4157_v47 = vadd.f32 %v4156_v26, %v4155_v35  ;;  %v6091_v50 = vadd.f32 %v3853_v63, %v7361_v29  ;;  %v3873_v52 = vpop.f32.mrb[21].mxu0 }
 0x213   : > { %v4149_v56 = vadd.f32 %v4148_v41, %v4147_v13  ;;  %4002 = vst [vmem:[#allocation2 + $0x70] sm:$0xff] %v6089_v42  ;;  %4005 = vst [vmem:[#allocation2 + $0x88] sm:$0xff] %v6090_v43  ;;  %v6092_v58 = vadd.f32 %v6047_v21, %v5823_v14  ;;  %v6093_v60 = vadd.f32 %v3863_v32, %v2143_v12 }
 0x214   : > { %v6094_v62 = vadd.f32 %v6050_v44, %v5826_v39  ;;  %v4106_v0 = vadd.f32 %v4105_v24, %v4082_v33  ;;  %v4115_v27 = vadd.f32 %v4114_v46, %v4113_v37  ;;  %v4158_v54 = vrot.slane %v4157_v47, 4  ;;  %4004 = vst [vmem:[#allocation2 + $0x80] sm:$0xff] %v6091_v50  ;;  %v5829_v3 = vpop.f32.mrb[22].mxu1 }
 0x215   : > { %v6095_v28 = vadd.f32 %v3873_v52, %v2153_v45  ;;  %v4150_v25 = vrot.slane %v4149_v56, 2  ;;  %v4228_v5 = vmul.f32 %v6092_v58, %v6092_v58  ;;  %5210 = vst.msk [vmem:[%s7367_s19 + $0x88] sm:$0xff] %vm4046_vm2, %v6092_v58  ;;  %v4219_v29 = vadd.f32 %v6093_v60, %v6092_v58  ;;  %5209 = vst.msk [vmem:[%s7367_s19 + $0x80] sm:$0xff] %vm4046_vm2, %v6093_v60  ;;  %v6053_v48 = vpop.f32.mrb[22].mxu0  ;;  %v2163_v51 = vpop.f32.mrb[23].mxu1 }
 0x216   : > { %v4227_v7 = vmul.f32 %v6093_v60, %v6093_v60  ;;  %4009 = vst [vmem:[#allocation2 + $0xa8] sm:$0xff] %v6094_v62  ;;  %v4116_v49 = vadd.f32 %v4115_v27, %v4092_v40  ;;  %v7408_v53 = vadd.f32 %v4129_v30, %v4106_v0  ;;  %v4159_v55 = vadd.f32 %v4158_v54, %v4157_v47  ;;  %v3883_v59 = vpop.f32.mrb[23].mxu0 }
 0x217   : > { %4008 = vst [vmem:[#allocation2 + $0xa0] sm:$0xff] %v6095_v28  ;;  %v6096_v57 = vadd.f32 %v6053_v48, %v5829_v3  ;;  %v4151_v61 = vadd.f32 %v4150_v25, %v4149_v56  ;;  %v4220_v63 = vrot.slane %v4219_v29, 4  ;;  %v6097_v4 = vadd.f32 %v3883_v59, %v2163_v51 }
 0x218   : > { %v4229_v1 = vadd.f32 %v4228_v5, %v4227_v7  ;;  %v7410_v6 = vadd.f32 %v4139_v38, %v4116_v49  ;;  %v4160_v2 = vrot.slane %v4159_v55, 2  ;;  %v5832_v8 = vpop.f32.mrb[24].mxu1 }
 0x219   : > { %4011 = vst [vmem:[#allocation2 + $0xb8] sm:$0xff] %v6096_v57  ;;  %v4221_v9 = vadd.f32 %v4220_v63, %v4219_v29  ;;  %4010 = vst [vmem:[#allocation2 + $0xb0] sm:$0xff] %v6097_v4  ;;  %v6056_v10 = vpop.f32.mrb[24].mxu0  ;;  %v7412_v11 = vpop.f32.mrb[25].mxu1  ;;  %v4152_v20 = vrot.slane %v4151_v61, 1 }
 0x21a   : > { %v4161_v14 = vadd.f32 %v4160_v2, %v4159_v55  ;;  %v4169_v15 = vld [vmem:[#allocation2 + $0x6c] sm:$0xff]  ;;  %v4170_v16 = vld [vmem:[#allocation2 + $0x74] sm:$0xff]  ;;  %v4230_v17 = vrot.slane %v4229_v1, 4  ;;  %v6098_v18 = vadd.f32 %v6056_v10, %v5832_v8  ;;  %v7414_v19 = vpop.f32.mrb[25].mxu0 }
 0x21b   : > { %v4171_v21 = vadd.f32 %v4170_v16, %v4169_v15  ;;  %v4179_v12 = vmul.f32 %v4169_v15, %v4169_v15  ;;  %v4180_v22 = vmul.f32 %v4170_v16, %v4170_v16  ;;  %5203 = vst.msk [vmem:[%s7367_s19 + $0x60] sm:$0xff] %vm4046_vm2, %v4169_v15  ;;  %5204 = vst.msk [vmem:[%s7367_s19 + $0x68] sm:$0xff] %vm4046_vm2, %v4170_v16  ;;  %v4193_v23 = vld [vmem:[#allocation2 + $0x7e] sm:$0xff]  ;;  %v4194_v30 = vld [vmem:[#allocation2 + $0x86] sm:$0xff]  ;;  %v4222_v37 = vrot.slane %v4221_v9, 2 }
 0x21c   : > { %v4162_v31 = vrot.slane %v4161_v14, 1  ;;  %v4195_v32 = vadd.f32 %v4194_v30, %v4193_v23  ;;  %v4203_v33 = vmul.f32 %v4193_v23, %v4193_v23  ;;  %v4204_v34 = vmul.f32 %v4194_v30, %v4194_v30  ;;  %5206 = vst.msk [vmem:[%s7367_s19 + $0x70] sm:$0xff] %vm4046_vm2, %v4193_v23  ;;  %5207 = vst.msk [vmem:[%s7367_s19 + $0x78] sm:$0xff] %vm4046_vm2, %v4194_v30  ;;  %v5835_v13 = vpop.f32.mrb[26].mxu1 }
 0x21d   : > { %4013 = vst [vmem:[#allocation2 + $0xc8] sm:$0xff] %v6098_v18  ;;  %v4172_v35 = vrot.slane %v4171_v21, 4  ;;  %v4181_v36 = vadd.f32 %v4180_v22, %v4179_v12  ;;  %v6059_v26 = vpop.f32.mrb[26].mxu0  ;;  %v2183_v39 = vpop.f32.mrb[27].mxu1  ;;  %v4231_v42 = vadd.f32 %v4230_v17, %v4229_v1  ;;  %v4153_v44 = vadd.f32 %v4152_v20, %v4151_v61 }
 0x21e   : > { %v4241_v38 = vld [vmem:[#allocation2 + $0xa2] sm:$0xff]  ;;  %v4196_v40 = vrot.slane %v4195_v32, 4  ;;  %v4205_v41 = vadd.f32 %v4204_v34, %v4203_v33  ;;  %v3903_v43 = vpop.f32.mrb[27].mxu0  ;;  %v4163_v46 = vadd.f32 %v4162_v31, %v4161_v14  ;;  %v4223_v52 = vadd.f32 %v4222_v37, %v4221_v9 }
 0x21f   : > { %5212 = vst.msk [vmem:[%s7367_s19 + $0x90] sm:$0xff] %vm4046_vm2, %v4241_v38  ;;  %v4173_v45 = vadd.f32 %v4172_v35, %v4171_v21  ;;  %v4182_v24 = vrot.slane %v4181_v36, 4  ;;  %v4232_v27 = vrot.slane %v4231_v42, 2  ;;  %v4251_v29 = vmul.f32 %v4241_v38, %v4241_v38 }
 0x220   : > { %v4197_v47 = vadd.f32 %v4196_v40, %v4195_v32  ;;  %v4206_v50 = vrot.slane %v4205_v41, 4  ;;  %v4242_v56 = vld [vmem:[#allocation2 + $0xaa] sm:$0xff]  ;;  %v7426_v58 = vld [vmem:[#allocation2 + $0xb4] sm:$0xff]  ;;  %v5838_v60 = vpop.f32.mrb[28].mxu1  ;;  %v4154_v51 = vadd.f32 %v4153_v44, %v7408_v53  ;;  %v4164_v59 = vadd.f32 %v4163_v46, %v7410_v6 }
 0x221   : > { %v4174_v62 = vrot.slane %v4173_v45, 2  ;;  %v4183_v0 = vadd.f32 %v4182_v24, %v4181_v36  ;;  %v4243_v54 = vadd.f32 %v4242_v56, %v4241_v38  ;;  %5213 = vst.msk [vmem:[%s7367_s19 + $0x98] sm:$0xff] %vm4046_vm2, %v4242_v56  ;;  %5215 = vst.msk [vmem:[%s7367_s19 + $0xa0] sm:$0xff] %vm4046_vm2, %v7426_v58  ;;  %v6062_v28 = vpop.f32.mrb[28].mxu0  ;;  %v2193_v3 = vpop.f32.mrb[29].mxu1  ;;  %v4252_v7 = vmul.f32 %v4242_v56, %v4242_v56 }
 0x222   : > { %v4198_v25 = vrot.slane %v4197_v47, 2  ;;  %v4207_v5 = vadd.f32 %v4206_v50, %v4205_v41  ;;  %v3913_v48 = vpop.f32.mrb[29].mxu0  ;;  %v4233_v9 = vadd.f32 %v4232_v27, %v4231_v42  ;;  %v4224_v18 = vrot.slane %v4223_v52, 1 }
 0x223   : > { %v4175_v49 = vadd.f32 %v4174_v62, %v4173_v45  ;;  %v4184_v55 = vrot.slane %v4183_v0, 2  ;;  %v4244_v57 = vrot.slane %v4243_v54, 4  ;;  %v4253_v1 = vadd.f32 %v4252_v7, %v4251_v29 }
 0x224   : > { %v4199_v61 = vadd.f32 %v4198_v25, %v4197_v47  ;;  %v4208_v63 = vrot.slane %v4207_v5, 2  ;;  %v5841_v4 = vpop.f32.mrb[30].mxu1  ;;  %v6099_v6 = vadd.f32 %v7414_v19, %v7412_v11  ;;  %v6100_v32 = vadd.f32 %v6059_v26, %v5835_v13 }
 0x225   : > { %v4176_v2 = vrot.slane %v4175_v49, 1  ;;  %v4185_v8 = vadd.f32 %v4184_v55, %v4183_v0  ;;  %v4245_v10 = vadd.f32 %v4244_v57, %v4243_v54  ;;  %v6065_v14 = vpop.f32.mrb[30].mxu0  ;;  %v2203_v15 = vpop.f32.mrb[31].mxu1  ;;  %v4254_v20 = vrot.slane %v4253_v1, 4 }
 0x226   : > { %v4200_v16 = vrot.slane %v4199_v61, 1  ;;  %v4209_v17 = vadd.f32 %v4208_v63, %v4207_v5  ;;  %v3923_v53 = vpop.f32.mrb[31].mxu0  ;;  %v4234_v36 = vrot.slane %v4233_v9, 1  ;;  %4012 = vst [vmem:[#allocation2 + $0xc0] sm:$0xff] %v6099_v6  ;;  %v6101_v37 = vadd.f32 %v3903_v43, %v2183_v39  ;;  %5221 = vst.msk [vmem:[%s7367_s19 + $0xc0] sm:$0xff] %vm4046_vm2, %v6100_v32 }
 0x227   : > { %v4177_v21 = vadd.f32 %v4176_v2, %v4175_v49  ;;  %v4186_v12 = vrot.slane %v4185_v8, 1  ;;  %v4246_v22 = vrot.slane %v4245_v10, 2  ;;  %v4255_v31 = vadd.f32 %v4254_v20, %v4253_v1 }
 0x228   : > { %v4201_v23 = vadd.f32 %v4200_v16, %v4199_v61  ;;  %v4210_v30 = vrot.slane %v4209_v17, 1  ;;  %v5844_v33 = vpop.f32.mrb[32].mxu1  ;;  %v4225_v42 = vadd.f32 %v4224_v18, %v4223_v52  ;;  %v6102_v45 = vadd.f32 %v6062_v28, %v5838_v60  ;;  %4014 = vst [vmem:[#allocation2 + $0xd0] sm:$0xff] %v6101_v37 }
 0x229   : > { %v4178_v34 = vadd.f32 %v4177_v21, %v4154_v51  ;;  %v4187_v35 = vadd.f32 %v4186_v12, %v4185_v8  ;;  %v6068_v38 = vpop.f32.mrb[32].mxu0  ;;  %v2213_v40 = vpop.f32.mrb[33].mxu1  ;;  %v4256_v44 = vrot.slane %v4255_v31, 2  ;;  %v4247_v46 = vadd.f32 %v4246_v22, %v4245_v10 }
 0x22a   : > { %v4211_v41 = vadd.f32 %v4210_v30, %v4209_v17  ;;  %v3933_v11 = vpop.f32.mrb[33].mxu0  ;;  %v6103_v13 = vadd.f32 %v3913_v48, %v2193_v3  ;;  %4017 = vst [vmem:[#allocation2 + $0xe8] sm:$0xff] %v6102_v45  ;;  %v6104_v47 = vadd.f32 %v6065_v14, %v5841_v4  ;;  %v6105_v50 = vadd.f32 %v3923_v53, %v2203_v15 }
 0x22b   : > { %v4188_v19 = vadd.f32 %v4187_v35, %v4164_v59  ;;  %v4202_v24 = vadd.f32 %v4201_v23, %v4178_v34  ;;  %v4257_v26 = vadd.f32 %v4256_v44, %v4255_v31  ;;  %v6106_v39 = vadd.f32 %v6068_v38, %v5844_v33 }
 0x22c   : > { %v5847_v43 = vpop.f32.mrb[34].mxu1  ;;  %v4235_v52 = vadd.f32 %v4234_v36, %v4233_v9  ;;  %v4315_v0 = vadd.f32 %v6103_v13, %v6100_v32  ;;  %5222 = vst.msk [vmem:[%s7367_s19 + $0xc8] sm:$0xff] %vm4046_vm2, %v6103_v13  ;;  %v4323_v54 = vmul.f32 %v6100_v32, %v6100_v32  ;;  %v4324_v28 = vmul.f32 %v6103_v13, %v6103_v13 }
 0x22d   : > { %v4212_v56 = vadd.f32 %v4211_v41, %v4188_v19  ;;  %v4226_v62 = vadd.f32 %v4225_v42, %v4202_v24  ;;  %v6071_v60 = vpop.f32.mrb[34].mxu0  ;;  %v2223_v27 = vpop.f32.mrb[35].mxu1  ;;  %4019 = vst [vmem:[#allocation2 + $0xf8] sm:$0xff] %v6104_v47  ;;  %4018 = vst [vmem:[#allocation2 + $0xf0] sm:$0xff] %v6105_v50  ;;  %v6107_v3 = vadd.f32 %v3933_v11, %v2213_v40  ;;  %v4248_v51 = vrot.slane %v4247_v46, 1  ;;  %v4266_v55 = vld [vmem:[#allocation2 + $0xbc] sm:$0xff] }
 0x22e   : > { %4021 = vst [vmem:[#allocation2 + $0x108] sm:$0xff] %v6106_v39  ;;  %v6108_v25 = vadd.f32 %v6071_v60, %v5847_v43  ;;  %v3943_v5 = vpop.f32.mrb[35].mxu0  ;;  %v4316_v7 = vrot.slane %v4315_v0, 4  ;;  %v4258_v49 = vrot.slane %v4257_v26, 1  ;;  %v4289_v57 = vld [vmem:[#allocation2 + $0xc6] sm:$0xff]  ;;  %v4325_v59 = vadd.f32 %v4324_v28, %v4323_v54  ;;  %5216 = vst.msk [vmem:[%s7367_s19 + $0xa8] sm:$0xff] %vm4046_vm2, %v4266_v55 }
 0x22f   : > { %v4236_v29 = vadd.f32 %v4235_v52, %v4212_v56  ;;  %v6109_v48 = vadd.f32 %v3943_v5, %v2223_v27  ;;  %4020 = vst [vmem:[#allocation2 + $0x100] sm:$0xff] %v6107_v3  ;;  %v4275_v61 = vmul.f32 %v7426_v58, %v7426_v58  ;;  %v4267_v63 = vadd.f32 %v4266_v55, %v7426_v58  ;;  %v4290_v8 = vld [vmem:[#allocation2 + $0xce] sm:$0xff] }
 0x230   : > { %4023 = vst [vmem:[#allocation2 + $0x118] sm:$0xff] %v6108_v25  ;;  %v4276_v1 = vmul.f32 %v4266_v55, %v4266_v55  ;;  %5218 = vst.msk [vmem:[%s7367_s19 + $0xb0] sm:$0xff] %vm4046_vm2, %v4289_v57  ;;  %v4317_v4 = vadd.f32 %v4316_v7, %v4315_v0  ;;  %v4299_v2 = vmul.f32 %v4289_v57, %v4289_v57  ;;  %v4326_v9 = vrot.slane %v4325_v59, 4 }
 0x231   : > { %4022 = vst [vmem:[#allocation2 + $0x110] sm:$0xff] %v6109_v48  ;;  %v4268_v10 = vrot.slane %v4267_v63, 4  ;;  %v4291_v15 = vadd.f32 %v4290_v8, %v4289_v57  ;;  %v4300_v16 = vmul.f32 %v4290_v8, %v4290_v8  ;;  %5219 = vst.msk [vmem:[%s7367_s19 + $0xb8] sm:$0xff] %vm4046_vm2, %v4290_v8  ;;  %v4249_v17 = vadd.f32 %v4248_v51, %v4247_v46 }
 0x232   : > { %v4277_v14 = vadd.f32 %v4276_v1, %v4275_v61  ;;  %v4259_v58 = vadd.f32 %v4258_v49, %v4257_v26  ;;  %v4318_v18 = vrot.slane %v4317_v4, 2  ;;  %v4327_v20 = vadd.f32 %v4326_v9, %v4325_v59 }
 0x233   : > { %v4269_v53 = vadd.f32 %v4268_v10, %v4267_v63  ;;  %v4292_v12 = vrot.slane %v4291_v15, 4  ;;  %v4301_v22 = vadd.f32 %v4300_v16, %v4299_v2  ;;  %v4250_v41 = vadd.f32 %v4249_v17, %v4226_v62 }
 0x234   : > { %v4278_v21 = vrot.slane %v4277_v14, 4  ;;  %v4337_v6 = vld [vmem:[#allocation2 + $0xea] sm:$0xff]  ;;  %v4338_v23 = vld [vmem:[#allocation2 + $0xf2] sm:$0xff]  ;;  %v4319_v30 = vadd.f32 %v4318_v18, %v4317_v4  ;;  %v4328_v31 = vrot.slane %v4327_v20, 2  ;;  %v4260_v47 = vadd.f32 %v4259_v58, %v4236_v29 }
 0x235   : > { %v4339_v32 = vadd.f32 %v4338_v23, %v4337_v6  ;;  %v4347_v33 = vmul.f32 %v4337_v6, %v4337_v6  ;;  %5224 = vst.msk [vmem:[%s7367_s19 + $0xd0] sm:$0xff] %vm4046_vm2, %v4337_v6  ;;  %5225 = vst.msk [vmem:[%s7367_s19 + $0xd8] sm:$0xff] %vm4046_vm2, %v4338_v23  ;;  %v4270_v34 = vrot.slane %v4269_v53, 2  ;;  %v4293_v36 = vadd.f32 %v4292_v12, %v4291_v15 }
 0x236   : > { %v4279_v35 = vadd.f32 %v4278_v21, %v4277_v14  ;;  %v4302_v37 = vrot.slane %v4301_v22, 4  ;;  %v4361_v38 = vld [vmem:[#allocation2 + $0xfc] sm:$0xff]  ;;  %v4362_v40 = vld [vmem:[#allocation2 + $0x104] sm:$0xff]  ;;  %v4329_v42 = vadd.f32 %v4328_v31, %v4327_v20  ;;  %v4348_v45 = vmul.f32 %v4338_v23, %v4338_v23 }
 0x237   : > { %v4340_v44 = vrot.slane %v4339_v32, 4  ;;  %5227 = vst.msk [vmem:[%s7367_s19 + $0xe0] sm:$0xff] %vm4046_vm2, %v4361_v38  ;;  %5228 = vst.msk [vmem:[%s7367_s19 + $0xe8] sm:$0xff] %vm4046_vm2, %v4362_v40  ;;  %v4271_v24 = vadd.f32 %v4270_v34, %v4269_v53  ;;  %v4294_v13 = vrot.slane %v4293_v36, 2  ;;  %v4320_v50 = vrot.slane %v4319_v30, 1 }
 0x238   : > { %v4385_v11 = vld [vmem:[#allocation2 + $0x10e] sm:$0xff]  ;;  %v4386_v19 = vld [vmem:[#allocation2 + $0x116] sm:$0xff]  ;;  %v4280_v46 = vrot.slane %v4279_v35, 2  ;;  %v4303_v26 = vadd.f32 %v4302_v37, %v4301_v22  ;;  %v4349_v43 = vadd.f32 %v4348_v45, %v4347_v33  ;;  %v4330_v60 = vrot.slane %v4329_v42, 1 }
 0x239   : > { %5230 = vst.msk [vmem:[%s7367_s19 + $0xf0] sm:$0xff] %vm4046_vm2, %v4385_v11  ;;  %5231 = vst.msk [vmem:[%s7367_s19 + $0xf8] sm:$0xff] %vm4046_vm2, %v4386_v19  ;;  %v4341_v39 = vadd.f32 %v4340_v44, %v4339_v32  ;;  %v4272_v56 = vrot.slane %v4271_v24, 1  ;;  %v4295_v52 = vadd.f32 %v4294_v13, %v4293_v36  ;;  %v4363_v28 = vadd.f32 %v4362_v40, %v4361_v38 }
 0x23a   : > { %v4281_v62 = vadd.f32 %v4280_v46, %v4279_v35  ;;  %v4304_v0 = vrot.slane %v4303_v26, 2  ;;  %v4350_v54 = vrot.slane %v4349_v43, 4  ;;  %v4371_v55 = vmul.f32 %v4361_v38, %v4361_v38 }
 0x23b   : > { %v4342_v27 = vrot.slane %v4341_v39, 2  ;;  %v4273_v3 = vadd.f32 %v4272_v56, %v4271_v24  ;;  %v4296_v5 = vrot.slane %v4295_v52, 1  ;;  %v4364_v49 = vrot.slane %v4363_v28, 4 }
 0x23c   : > { %v4282_v25 = vrot.slane %v4281_v62, 1  ;;  %v4305_v7 = vadd.f32 %v4304_v0, %v4303_v26  ;;  %v4351_v51 = vadd.f32 %v4350_v54, %v4349_v43  ;;  %v4321_v63 = vadd.f32 %v4320_v50, %v4319_v30  ;;  %v4409_v43 = vld [vmem:[#allocation3] sm:$0x1]  ;;  %v4412_v54 = vld [vmem:[#allocation4] sm:$0x1] }
 0x23d   : > { %v4343_v48 = vadd.f32 %v4342_v27, %v4341_v39  ;;  %v4274_v29 = vadd.f32 %v4273_v3, %v4250_v41  ;;  %v4297_v59 = vadd.f32 %v4296_v5, %v4295_v52  ;;  %v4365_v4 = vadd.f32 %v4364_v49, %v4363_v28 }
 0x23e   : > { %v4283_v57 = vadd.f32 %v4282_v25, %v4281_v62  ;;  %v4306_v61 = vrot.slane %v4305_v7, 1  ;;  %v4352_v1 = vrot.slane %v4351_v51, 2  ;;  %v4372_v2 = vmul.f32 %v4362_v40, %v4362_v40 }
 0x23f   : > { %v4298_v9 = vadd.f32 %v4297_v59, %v4274_v29  ;;  %v4387_v14 = vadd.f32 %v4386_v19, %v4385_v11  ;;  %v4331_v15 = vadd.f32 %v4330_v60, %v4329_v42  ;;  %v4344_v16 = vrot.slane %v4343_v48, 1  ;;  %v4425_v59 = vld [vmem:[%s8054_s2] sm:$0x1] (!%p5232_p5) }
 0x240   : > { %v4284_v8 = vadd.f32 %v4283_v57, %v4260_v47  ;;  %v4307_v10 = vadd.f32 %v4306_v61, %v4305_v7  ;;  %v4366_v17 = vrot.slane %v4365_v4, 2  ;;  %v4373_v58 = vadd.f32 %v4372_v2, %v4371_v55  ;;  %v4432_v2 = vld [vmem:[%s8056_s4] sm:$0xff] (!%p5232_p5) }
 0x241   : > { %v4322_v20 = vadd.f32 %v4321_v63, %v4298_v9  ;;  %v4388_v53 = vrot.slane %v4387_v14, 4  ;;  %v4395_v21 = vmul.f32 %v4385_v11, %v4385_v11  ;;  %v4353_v12 = vadd.f32 %v4352_v1, %v4351_v51  ;;  %v4434_v9 = vld [vmem:[%s8056_s4 + $0x10] sm:$0xff] (!%p5232_p5) }
 0x242   : > { %v4308_v18 = vadd.f32 %v4307_v10, %v4284_v8  ;;  %v4367_v22 = vadd.f32 %v4366_v17, %v4365_v4  ;;  %v4374_v6 = vrot.slane %v4373_v58, 4  ;;  %v4396_v23 = vmul.f32 %v4386_v19, %v4386_v19  ;;  %v4429_v4 = vld [vmem:[%s8055_s3] sm:$0x1] (!%p5232_p5)  ;;  %v4433_v8 = vld [vmem:[%s8056_s4 + $0x8] sm:$0xff] (!%p5232_p5)  ;;  %v4435_v10 = vld [vmem:[%s8056_s4 + $0x18] sm:$0xff] (!%p5232_p5) }
 0x243   : > { %v4389_v31 = vadd.f32 %v4388_v53, %v4387_v14  ;;  %v4345_v35 = vadd.f32 %v4344_v16, %v4343_v48  ;;  %v4354_v37 = vrot.slane %v4353_v12, 1  ;;  %v4497_v29 = vlaneseq (!%p5232_p5)  ;;  %v4436_v14 = vld [vmem:[%s8056_s4 + $0x20] sm:$0xff] (!%p5232_p5)  ;;  %v4437_v17 = vld [vmem:[%s8056_s4 + $0x28] sm:$0xff] (!%p5232_p5) }
 0x244   : > { %v4332_v30 = vadd.f32 %v4331_v15, %v4308_v18  ;;  %v4368_v32 = vrot.slane %v4367_v22, 1  ;;  %v4375_v33 = vadd.f32 %v4374_v6, %v4373_v58  ;;  %v4397_v34 = vadd.f32 %v4396_v23, %v4395_v21  ;;  %v4438_v58 = vld [vmem:[%s8056_s4 + $0x30] sm:$0xff] (!%p5232_p5)  ;;  %v4439_v18 = vld [vmem:[%s8056_s4 + $0x38] sm:$0xff] (!%p5232_p5)  ;;  %v4441_v53 = vld [vmem:[%s8056_s4 + $0x48] sm:$0xff] (!%p5232_p5) }
 0x245   : > { %v4390_v36 = vrot.slane %v4389_v31, 2  ;;  %v4346_v24 = vadd.f32 %v4345_v35, %v4322_v20  ;;  %v4355_v46 = vadd.f32 %v4354_v37, %v4353_v12  ;;  %v4498_v57 = vshrl.u32 (!%p5232_p5), %v4497_v29, 7  ;;  %v4440_v20 = vld [vmem:[%s8056_s4 + $0x40] sm:$0xff] (!%p5232_p5)  ;;  %v4442_v21 = vld [vmem:[%s8056_s4 + $0x50] sm:$0xff] (!%p5232_p5) }
 0x246   : > { %v4376_v38 = vrot.slane %v4375_v33, 2  ;;  %v4398_v40 = vrot.slane %v4397_v34, 4  ;;  %v4369_v41 = vadd.f32 %v4368_v32, %v4367_v22  ;;  %v4445_v32 = vld [vmem:[%s8056_s4 + $0x68] sm:$0xff] (!%p5232_p5) }
 0x247   : > { %v4391_v42 = vadd.f32 %v4390_v36, %v4389_v31  ;;  %v4356_v62 = vadd.f32 %v4355_v46, %v4332_v30  ;;  %v4499_v61 = vsub.s32 (!%p5232_p5), 0, %v4498_v57  ;;  %v4443_v30 = vld [vmem:[%s8056_s4 + $0x58] sm:$0xff] (!%p5232_p5)  ;;  %v4444_v31 = vld [vmem:[%s8056_s4 + $0x60] sm:$0xff] (!%p5232_p5) }
 0x248   : > { %v4377_v44 = vadd.f32 %v4376_v38, %v4375_v33  ;;  %v4399_v45 = vadd.f32 %v4398_v40, %v4397_v34  ;;  %v4370_v19 = vadd.f32 %v4369_v41, %v4346_v24 }
 0x249   : > { %v4392_v11 = vrot.slane %v4391_v42, 1 }
 0x24a   : > { %v4378_v13 = vrot.slane %v4377_v44, 1  ;;  %v4400_v26 = vrot.slane %v4399_v45, 2 }
 0x24b   : > { %v4393_v47 = vadd.f32 %v4392_v11, %v4391_v42 }
 0x24c   : > { %v4379_v50 = vadd.f32 %v4378_v13, %v4377_v44  ;;  %v4401_v39 = vadd.f32 %v4400_v26, %v4399_v45 }
 0x24d   : > { %v4394_v56 = vadd.f32 %v4393_v47, %v4370_v19 }
 0x24e   : > { %v4402_v52 = vrot.slane %v4401_v39, 1  ;;  %v4380_v60 = vadd.f32 %v4379_v50, %v4356_v62 }
 0x24f   : > { %v4410_v0 = vadd.f32 %v4409_v43, %v4394_v56 }
 0x250   : > { %v4403_v27 = vadd.f32 %v4402_v52, %v4401_v39  ;;  %4418 = sbr.rel (%p5232_p5) target bundleno = 681 (0x2a9), region = 44 }
 0x251   : > { %4411 = vst [vmem:[#allocation3] sm:$0x1] %v4410_v0  ;;  %v4446_v0 = vld [vmem:[%s8056_s4 + $0x70] sm:$0xff] (!%p5232_p5) }
 0x252   : > { %v4404_v28 = vadd.f32 %v4403_v27, %v4380_v60  ;;  %v4447_v60 = vld [vmem:[%s8056_s4 + $0x78] sm:$0xff] (!%p5232_p5) }
 0x254   : > { %v4413_v3 = vadd.f32 %v4412_v54, %v4404_v28 }
 0x256   : > { %4414 = vst [vmem:[#allocation4] sm:$0x1] %v4413_v3 }
 0x258   : > { %v4419_v25 = vld [vmem:[#allocation3] sm:$0x1] }
 0x259   : > { %v4420_v7 = vmul.f32 0.001953125, %v4419_v25 }
 0x25b   : > { %v4423_v51 = vmul.f32 %v4420_v7, %v4420_v7 }
 0x25d   : > { %v4421_v5 = vld [vmem:[#allocation4] sm:$0x1] }
 0x25e   : > { %v4422_v48 = vmul.f32 0.001953125, %v4421_v5 }
 0x260   : > { %v4424_v49 = vsub.f32 %v4422_v48, %v4423_v51  ;;  %v4448_v51 = vld [vmem:[%s8056_s4 + $0x80] sm:$0xff] }
 0x262   : > { %v4426_v55 = vadd.f32 1e-05, %v4424_v49 }
 0x264   : > { %6372 = vrsqrt.f32 %v4426_v55 }
 0x26e   : > { %v6373_v63 = vpop.eup %6372 }
 0x26f   : > { %v4428_v1 = vmul.f32 %v6373_v63, %v4425_v59  ;;  %v4449_v59 = vld [vmem:[%s8056_s4 + $0x88] sm:$0xff]  ;;  %v4451_v63 = vld [vmem:[%s8056_s4 + $0x98] sm:$0xff] }
 0x271   : > { %v4430_v15 = vmul.f32 %v4428_v1, %v4420_v7  ;;  %v7484_v16 = vrot.slane %v4428_v1, %v4499_v61 }
 0x273   : > { %v4431_v12 = vsub.f32 %v4429_v4, %v4430_v15  ;;  %v4502_v22 = vmul.f32 %v7484_v16, %v4432_v2  ;;  %v4503_v6 = vmul.f32 %v7484_v16, %v4433_v8  ;;  %v4504_v23 = vmul.f32 %v7484_v16, %v4434_v9  ;;  %v4452_v9 = vld [vmem:[%s8056_s4 + $0xa0] sm:$0xff] }
 0x274   : > { %v4505_v33 = vmul.f32 %v7484_v16, %v4435_v10  ;;  %v4506_v34 = vmul.f32 %v7484_v16, %v4436_v14  ;;  %v4507_v35 = vmul.f32 %v7484_v16, %v4437_v17  ;;  %v4508_v36 = vmul.f32 %v7484_v16, %v4438_v58  ;;  %v4453_v10 = vld [vmem:[%s8056_s4 + $0xa8] sm:$0xff] }
 0x275   : > { %v7520_v37 = vrot.slane %v4431_v12, %v4499_v61  ;;  %v4509_v38 = vmul.f32 %v7484_v16, %v4439_v18  ;;  %v4510_v40 = vmul.f32 %v7484_v16, %v4440_v20  ;;  %v4511_v41 = vmul.f32 %v7484_v16, %v4441_v53  ;;  %v4450_v61 = vld [vmem:[%s8056_s4 + $0x90] sm:$0xff] }
 0x276   : > { %v4512_v42 = vmul.f32 %v7484_v16, %v4442_v21  ;;  %v4513_v44 = vmul.f32 %v7484_v16, %v4443_v30  ;;  %v4514_v45 = vmul.f32 %v7484_v16, %v4444_v31  ;;  %v4515_v24 = vmul.f32 %v7484_v16, %v4445_v32  ;;  %v4454_v12 = vld [vmem:[%s8056_s4 + $0xb0] sm:$0xff] }
 0x277   : > { %v4572_v11 = vadd.f32 %v7520_v37, %v4502_v22  ;;  %v4573_v46 = vadd.f32 %v7520_v37, %v4503_v6  ;;  %v4574_v13 = vadd.f32 %v7520_v37, %v4504_v23  ;;  %v4575_v26 = vadd.f32 %v7520_v37, %v4505_v33  ;;  %v4455_v22 = vld [vmem:[%s8056_s4 + $0xb8] sm:$0xff] }
 0x278   : > { %v4576_v19 = vadd.f32 %v7520_v37, %v4506_v34  ;;  %v4577_v47 = vadd.f32 %v7520_v37, %v4507_v35  ;;  %v4578_v50 = vadd.f32 %v7520_v37, %v4508_v36  ;;  %v4579_v39 = vadd.f32 %v7520_v37, %v4509_v38  ;;  %v4456_v36 = vld [vmem:[%s8056_s4 + $0xc0] sm:$0xff] }
 0x279   : > { %v4636_v43 = vmax.f32 %v4572_v11, 0.0  ;;  %v4637_v56 = vmax.f32 %v4573_v46, 0.0  ;;  %v4638_v62 = vmax.f32 %v4574_v13, 0.0  ;;  %v4639_v52 = vmax.f32 %v4575_v26, 0.0 }
 0x27a   : > { %v4640_v27 = vmax.f32 %v4576_v19, 0.0  ;;  %v4641_v54 = vmax.f32 %v4577_v47, 0.0  ;;  %v4642_v28 = vmax.f32 %v4578_v50, 0.0  ;;  %v4643_v3 = vmax.f32 %v4579_v39, 0.0  ;;  %v4460_v19 = vld [vmem:[%s8056_s4 + $0xe0] sm:$0xff]  ;;  %v4461_v47 = vld [vmem:[%s8056_s4 + $0xe8] sm:$0xff] }
 0x27b   : > { %4700 = vst.msk [vmem:[%s8056_s4] sm:$0xff] %vm4046_vm2, %v4636_v43  ;;  %4701 = vst.msk [vmem:[%s8056_s4 + $0x8] sm:$0xff] %vm4046_vm2, %v4637_v56  ;;  %v4580_v25 = vadd.f32 %v7520_v37, %v4510_v40  ;;  %v4581_v5 = vadd.f32 %v7520_v37, %v4511_v41  ;;  %v4582_v7 = vadd.f32 %v7520_v37, %v4512_v42 }
 0x27c   : > { %4702 = vst.msk [vmem:[%s8056_s4 + $0x10] sm:$0xff] %vm4046_vm2, %v4638_v62  ;;  %4703 = vst.msk [vmem:[%s8056_s4 + $0x18] sm:$0xff] %vm4046_vm2, %v4639_v52  ;;  %v4583_v48 = vadd.f32 %v7520_v37, %v4513_v44  ;;  %v4584_v49 = vadd.f32 %v7520_v37, %v4514_v45  ;;  %v4585_v55 = vadd.f32 %v7520_v37, %v4515_v24  ;;  %v4457_v44 = vld [vmem:[%s8056_s4 + $0xc8] sm:$0xff]  ;;  %v4458_v45 = vld [vmem:[%s8056_s4 + $0xd0] sm:$0xff] }
 0x27d   : > { %4704 = vst.msk [vmem:[%s8056_s4 + $0x20] sm:$0xff] %vm4046_vm2, %v4640_v27  ;;  %4705 = vst.msk [vmem:[%s8056_s4 + $0x28] sm:$0xff] %vm4046_vm2, %v4641_v54  ;;  %v4516_v29 = vmul.f32 %v7484_v16, %v4446_v0  ;;  %v4517_v57 = vmul.f32 %v7484_v16, %v4447_v60  ;;  %v4644_v1 = vmax.f32 %v4580_v25, 0.0  ;;  %v4645_v4 = vmax.f32 %v4581_v5, 0.0  ;;  %v4459_v24 = vld [vmem:[%s8056_s4 + $0xd8] sm:$0xff]  ;;  %v4462_v27 = vld [vmem:[%s8056_s4 + $0xf0] sm:$0xff] }
 0x27e   : > { %4706 = vst.msk [vmem:[%s8056_s4 + $0x30] sm:$0xff] %vm4046_vm2, %v4642_v28  ;;  %4707 = vst.msk [vmem:[%s8056_s4 + $0x38] sm:$0xff] %vm4046_vm2, %v4643_v3  ;;  %v4646_v2 = vmax.f32 %v4582_v7, 0.0  ;;  %v4647_v8 = vmax.f32 %v4583_v48, 0.0  ;;  %v4648_v14 = vmax.f32 %v4584_v49, 0.0  ;;  %v4649_v15 = vmax.f32 %v4585_v55, 0.0 }
 0x27f   : > { %v4586_v17 = vadd.f32 %v7520_v37, %v4516_v29  ;;  %v4587_v58 = vadd.f32 %v7520_v37, %v4517_v57  ;;  %4708 = vst.msk [vmem:[%s8056_s4 + $0x40] sm:$0xff] %vm4046_vm2, %v4644_v1  ;;  %4709 = vst.msk [vmem:[%s8056_s4 + $0x48] sm:$0xff] %vm4046_vm2, %v4645_v4  ;;  %v4518_v18 = vmul.f32 %v7484_v16, %v4448_v51  ;;  %v4463_v54 = vld [vmem:[%s8056_s4 + $0xf8] sm:$0xff]  ;;  %v4464_v55 = vld [vmem:[%s8056_s4 + $0x100] sm:$0xff] }
 0x280   : > { %4710 = vst.msk [vmem:[%s8056_s4 + $0x50] sm:$0xff] %vm4046_vm2, %v4646_v2  ;;  %4711 = vst.msk [vmem:[%s8056_s4 + $0x58] sm:$0xff] %vm4046_vm2, %v4647_v8  ;;  %v4519_v20 = vmul.f32 %v7484_v16, %v4449_v59  ;;  %v4520_v53 = vmul.f32 %v7484_v16, %v4450_v61  ;;  %v4521_v21 = vmul.f32 %v7484_v16, %v4451_v63  ;;  %v4465_v63 = vld [vmem:[%s8056_s4 + $0x108] sm:$0xff]  ;;  %v4466_v1 = vld [vmem:[%s8056_s4 + $0x110] sm:$0xff] }
 0x281   : > { %4712 = vst.msk [vmem:[%s8056_s4 + $0x60] sm:$0xff] %vm4046_vm2, %v4648_v14  ;;  %4713 = vst.msk [vmem:[%s8056_s4 + $0x68] sm:$0xff] %vm4046_vm2, %v4649_v15  ;;  %v4650_v6 = vmax.f32 %v4586_v17, 0.0  ;;  %v4651_v23 = vmax.f32 %v4587_v58, 0.0  ;;  %v4522_v30 = vmul.f32 %v7484_v16, %v4452_v9  ;;  %v4523_v31 = vmul.f32 %v7484_v16, %v4453_v10  ;;  %v4467_v4 = vld [vmem:[%s8056_s4 + $0x118] sm:$0xff]  ;;  %v4468_v14 = vld [vmem:[%s8056_s4 + $0x120] sm:$0xff] }
 0x282   : > { %v4588_v32 = vadd.f32 %v7520_v37, %v4518_v18  ;;  %v4589_v33 = vadd.f32 %v7520_v37, %v4519_v20  ;;  %v4590_v34 = vadd.f32 %v7520_v37, %v4520_v53  ;;  %v4591_v35 = vadd.f32 %v7520_v37, %v4521_v21  ;;  %v4469_v15 = vld [vmem:[%s8056_s4 + $0x128] sm:$0xff] }
 0x283   : > { %4714 = vst.msk [vmem:[%s8056_s4 + $0x70] sm:$0xff] %vm4046_vm2, %v4650_v6  ;;  %4715 = vst.msk [vmem:[%s8056_s4 + $0x78] sm:$0xff] %vm4046_vm2, %v4651_v23  ;;  %v4592_v38 = vadd.f32 %v7520_v37, %v4522_v30  ;;  %v4593_v40 = vadd.f32 %v7520_v37, %v4523_v31  ;;  %v4524_v41 = vmul.f32 %v7484_v16, %v4454_v12  ;;  %v4470_v6 = vld [vmem:[%s8056_s4 + $0x130] sm:$0xff]  ;;  %v4471_v23 = vld [vmem:[%s8056_s4 + $0x138] sm:$0xff] }
 0x284   : > { %v4525_v42 = vmul.f32 %v7484_v16, %v4455_v22  ;;  %v4652_v11 = vmax.f32 %v4588_v32, 0.0  ;;  %v4653_v46 = vmax.f32 %v4589_v33, 0.0  ;;  %v4654_v13 = vmax.f32 %v4590_v34, 0.0 }
 0x285   : > { %v4655_v26 = vmax.f32 %v4591_v35, 0.0  ;;  %v4656_v50 = vmax.f32 %v4592_v38, 0.0  ;;  %v4657_v39 = vmax.f32 %v4593_v40, 0.0  ;;  %v4594_v43 = vadd.f32 %v7520_v37, %v4524_v41  ;;  %v4472_v40 = vld [vmem:[%s8056_s4 + $0x140] sm:$0xff] }
 0x286   : > { %v4595_v56 = vadd.f32 %v7520_v37, %v4525_v42  ;;  %4716 = vst.msk [vmem:[%s8056_s4 + $0x80] sm:$0xff] %vm4046_vm2, %v4652_v11  ;;  %4717 = vst.msk [vmem:[%s8056_s4 + $0x88] sm:$0xff] %vm4046_vm2, %v4653_v46  ;;  %v4526_v62 = vmul.f32 %v7484_v16, %v4456_v36  ;;  %v4527_v52 = vmul.f32 %v7484_v16, %v4457_v44  ;;  %v4474_v11 = vld [vmem:[%s8056_s4 + $0x150] sm:$0xff]  ;;  %v4475_v46 = vld [vmem:[%s8056_s4 + $0x158] sm:$0xff] }
 0x287   : > { %4718 = vst.msk [vmem:[%s8056_s4 + $0x90] sm:$0xff] %vm4046_vm2, %v4654_v13  ;;  %4719 = vst.msk [vmem:[%s8056_s4 + $0x98] sm:$0xff] %vm4046_vm2, %v4655_v26  ;;  %v4528_v0 = vmul.f32 %v7484_v16, %v4458_v45  ;;  %v4529_v60 = vmul.f32 %v7484_v16, %v4459_v24  ;;  %v4658_v28 = vmax.f32 %v4594_v43, 0.0  ;;  %v4530_v25 = vmul.f32 %v7484_v16, %v4460_v19  ;;  %v4473_v24 = vld [vmem:[%s8056_s4 + $0x148] sm:$0xff] }
 0x288   : > { %4720 = vst.msk [vmem:[%s8056_s4 + $0xa0] sm:$0xff] %vm4046_vm2, %v4656_v50  ;;  %4721 = vst.msk [vmem:[%s8056_s4 + $0xa8] sm:$0xff] %vm4046_vm2, %v4657_v39  ;;  %v4659_v3 = vmax.f32 %v4595_v56, 0.0  ;;  %v4531_v5 = vmul.f32 %v7484_v16, %v4461_v47  ;;  %v4596_v7 = vadd.f32 %v7520_v37, %v4526_v62  ;;  %v4597_v48 = vadd.f32 %v7520_v37, %v4527_v52  ;;  %v4476_v50 = vld [vmem:[%s8056_s4 + $0x160] sm:$0xff]  ;;  %v4477_v39 = vld [vmem:[%s8056_s4 + $0x168] sm:$0xff] }
 0x289   : > { %v4598_v51 = vadd.f32 %v7520_v37, %v4528_v0  ;;  %v4599_v49 = vadd.f32 %v7520_v37, %v4529_v60  ;;  %4722 = vst.msk [vmem:[%s8056_s4 + $0xb0] sm:$0xff] %vm4046_vm2, %v4658_v28  ;;  %v4600_v29 = vadd.f32 %v7520_v37, %v4530_v25  ;;  %v4532_v59 = vmul.f32 %v7484_v16, %v4462_v27  ;;  %v4478_v28 = vld [vmem:[%s8056_s4 + $0x170] sm:$0xff] }
 0x28a   : > { %4723 = vst.msk [vmem:[%s8056_s4 + $0xb8] sm:$0xff] %vm4046_vm2, %v4659_v3  ;;  %v4601_v57 = vadd.f32 %v7520_v37, %v4531_v5  ;;  %v4533_v61 = vmul.f32 %v7484_v16, %v4463_v54  ;;  %v4660_v2 = vmax.f32 %v4596_v7, 0.0  ;;  %v4661_v8 = vmax.f32 %v4597_v48, 0.0  ;;  %v4479_v3 = vld [vmem:[%s8056_s4 + $0x178] sm:$0xff] }
 0x28b   : > { %v4662_v9 = vmax.f32 %v4598_v51, 0.0  ;;  %v4663_v10 = vmax.f32 %v4599_v49, 0.0  ;;  %v4664_v17 = vmax.f32 %v4600_v29, 0.0  ;;  %v4602_v18 = vadd.f32 %v7520_v37, %v4532_v59 }
 0x28c   : > { %v4665_v58 = vmax.f32 %v4601_v57, 0.0  ;;  %v4603_v20 = vadd.f32 %v7520_v37, %v4533_v61  ;;  %4724 = vst.msk [vmem:[%s8056_s4 + $0xc0] sm:$0xff] %vm4046_vm2, %v4660_v2  ;;  %4725 = vst.msk [vmem:[%s8056_s4 + $0xc8] sm:$0xff] %vm4046_vm2, %v4661_v8  ;;  %v4534_v53 = vmul.f32 %v7484_v16, %v4464_v55  ;;  %v4535_v21 = vmul.f32 %v7484_v16, %v4465_v63  ;;  %v4480_v57 = vld [vmem:[%s8056_s4 + $0x180] sm:$0xff]  ;;  %v4482_v2 = vld [vmem:[%s8056_s4 + $0x190] sm:$0xff] }
 0x28d   : > { %4726 = vst.msk [vmem:[%s8056_s4 + $0xd0] sm:$0xff] %vm4046_vm2, %v4662_v9  ;;  %4727 = vst.msk [vmem:[%s8056_s4 + $0xd8] sm:$0xff] %vm4046_vm2, %v4663_v10  ;;  %v4536_v12 = vmul.f32 %v7484_v16, %v4466_v1  ;;  %v4537_v22 = vmul.f32 %v7484_v16, %v4467_v4  ;;  %v4666_v30 = vmax.f32 %v4602_v18, 0.0  ;;  %v4538_v32 = vmul.f32 %v7484_v16, %v4468_v14  ;;  %v4481_v4 = vld [vmem:[%s8056_s4 + $0x188] sm:$0xff]  ;;  %v4483_v8 = vld [vmem:[%s8056_s4 + $0x198] sm:$0xff] }
 0x28e   : > { %4728 = vst.msk [vmem:[%s8056_s4 + $0xe0] sm:$0xff] %vm4046_vm2, %v4664_v17  ;;  %4729 = vst.msk [vmem:[%s8056_s4 + $0xe8] sm:$0xff] %vm4046_vm2, %v4665_v58  ;;  %v4667_v31 = vmax.f32 %v4603_v20, 0.0  ;;  %v4539_v33 = vmul.f32 %v7484_v16, %v4469_v15  ;;  %v4604_v34 = vadd.f32 %v7520_v37, %v4534_v53  ;;  %v4605_v35 = vadd.f32 %v7520_v37, %v4535_v21  ;;  %v4484_v17 = vld [vmem:[%s8056_s4 + $0x1a0] sm:$0xff]  ;;  %v4485_v58 = vld [vmem:[%s8056_s4 + $0x1a8] sm:$0xff] }
 0x28f   : > { %v4606_v36 = vadd.f32 %v7520_v37, %v4536_v12  ;;  %v4607_v38 = vadd.f32 %v7520_v37, %v4537_v22  ;;  %4730 = vst.msk [vmem:[%s8056_s4 + $0xf0] sm:$0xff] %vm4046_vm2, %v4666_v30  ;;  %v4608_v41 = vadd.f32 %v7520_v37, %v4538_v32  ;;  %v4540_v44 = vmul.f32 %v7484_v16, %v4470_v6  ;;  %v4486_v30 = vld [vmem:[%s8056_s4 + $0x1b0] sm:$0xff] }
 0x290   : > { %4731 = vst.msk [vmem:[%s8056_s4 + $0xf8] sm:$0xff] %vm4046_vm2, %v4667_v31  ;;  %v4609_v42 = vadd.f32 %v7520_v37, %v4539_v33  ;;  %v4541_v45 = vmul.f32 %v7484_v16, %v4471_v23  ;;  %v4668_v13 = vmax.f32 %v4604_v34, 0.0  ;;  %v4669_v26 = vmax.f32 %v4605_v35, 0.0  ;;  %v4487_v31 = vld [vmem:[%s8056_s4 + $0x1b8] sm:$0xff] }
 0x291   : > { %v4670_v19 = vmax.f32 %v4606_v36, 0.0  ;;  %v4671_v47 = vmax.f32 %v4607_v38, 0.0  ;;  %v4672_v43 = vmax.f32 %v4608_v41, 0.0  ;;  %v4610_v62 = vadd.f32 %v7520_v37, %v4540_v44 }
 0x292   : > { %v4673_v56 = vmax.f32 %v4609_v42, 0.0  ;;  %v4611_v52 = vadd.f32 %v7520_v37, %v4541_v45  ;;  %4732 = vst.msk [vmem:[%s8056_s4 + $0x100] sm:$0xff] %vm4046_vm2, %v4668_v13  ;;  %4733 = vst.msk [vmem:[%s8056_s4 + $0x108] sm:$0xff] %vm4046_vm2, %v4669_v26  ;;  %v4542_v0 = vmul.f32 %v7484_v16, %v4472_v40  ;;  %v4543_v60 = vmul.f32 %v7484_v16, %v4473_v24  ;;  %v4488_v42 = vld [vmem:[%s8056_s4 + $0x1c0] sm:$0xff]  ;;  %v4490_v13 = vld [vmem:[%s8056_s4 + $0x1d0] sm:$0xff] }
 0x293   : > { %4734 = vst.msk [vmem:[%s8056_s4 + $0x110] sm:$0xff] %vm4046_vm2, %v4670_v19  ;;  %4735 = vst.msk [vmem:[%s8056_s4 + $0x118] sm:$0xff] %vm4046_vm2, %v4671_v47  ;;  %v4544_v27 = vmul.f32 %v7484_v16, %v4474_v11  ;;  %v4545_v54 = vmul.f32 %v7484_v16, %v4475_v46  ;;  %v4674_v25 = vmax.f32 %v4610_v62, 0.0  ;;  %v4546_v7 = vmul.f32 %v7484_v16, %v4476_v50  ;;  %v4489_v46 = vld [vmem:[%s8056_s4 + $0x1c8] sm:$0xff]  ;;  %v4491_v26 = vld [vmem:[%s8056_s4 + $0x1d8] sm:$0xff] }
 0x294   : > { %4736 = vst.msk [vmem:[%s8056_s4 + $0x120] sm:$0xff] %vm4046_vm2, %v4672_v43  ;;  %4737 = vst.msk [vmem:[%s8056_s4 + $0x128] sm:$0xff] %vm4046_vm2, %v4673_v56  ;;  %v4675_v5 = vmax.f32 %v4611_v52, 0.0  ;;  %v4547_v48 = vmul.f32 %v7484_v16, %v4477_v39  ;;  %v4612_v51 = vadd.f32 %v7520_v37, %v4542_v0  ;;  %v4613_v49 = vadd.f32 %v7520_v37, %v4543_v60  ;;  %v4492_v43 = vld [vmem:[%s8056_s4 + $0x1e0] sm:$0xff]  ;;  %v4493_v56 = vld [vmem:[%s8056_s4 + $0x1e8] sm:$0xff] }
 0x295   : > { %v4614_v55 = vadd.f32 %v7520_v37, %v4544_v27  ;;  %v4615_v29 = vadd.f32 %v7520_v37, %v4545_v54  ;;  %4738 = vst.msk [vmem:[%s8056_s4 + $0x130] sm:$0xff] %vm4046_vm2, %v4674_v25  ;;  %v4616_v59 = vadd.f32 %v7520_v37, %v4546_v7  ;;  %v4548_v63 = vmul.f32 %v7484_v16, %v4478_v28  ;;  %v4494_v25 = vld [vmem:[%s8056_s4 + $0x1f0] sm:$0xff] }
 0x296   : > { %4739 = vst.msk [vmem:[%s8056_s4 + $0x138] sm:$0xff] %vm4046_vm2, %v4675_v5  ;;  %v4617_v61 = vadd.f32 %v7520_v37, %v4547_v48  ;;  %v4549_v1 = vmul.f32 %v7484_v16, %v4479_v3  ;;  %v4676_v9 = vmax.f32 %v4612_v51, 0.0  ;;  %v4677_v10 = vmax.f32 %v4613_v49, 0.0  ;;  %v4495_v5 = vld [vmem:[%s8056_s4 + $0x1f8] sm:$0xff] }
 0x297   : > { %v4678_v14 = vmax.f32 %v4614_v55, 0.0  ;;  %v4679_v15 = vmax.f32 %v4615_v29, 0.0  ;;  %v4680_v18 = vmax.f32 %v4616_v59, 0.0  ;;  %v4618_v53 = vadd.f32 %v7520_v37, %v4548_v63 }
 0x298   : > { %v4681_v20 = vmax.f32 %v4617_v61, 0.0  ;;  %v4619_v21 = vadd.f32 %v7520_v37, %v4549_v1  ;;  %4740 = vst.msk [vmem:[%s8056_s4 + $0x140] sm:$0xff] %vm4046_vm2, %v4676_v9  ;;  %4741 = vst.msk [vmem:[%s8056_s4 + $0x148] sm:$0xff] %vm4046_vm2, %v4677_v10  ;;  %v4550_v12 = vmul.f32 %v7484_v16, %v4480_v57  ;;  %v4551_v22 = vmul.f32 %v7484_v16, %v4481_v4 }
 0x299   : > { %4742 = vst.msk [vmem:[%s8056_s4 + $0x150] sm:$0xff] %vm4046_vm2, %v4678_v14  ;;  %4743 = vst.msk [vmem:[%s8056_s4 + $0x158] sm:$0xff] %vm4046_vm2, %v4679_v15  ;;  %v4552_v6 = vmul.f32 %v7484_v16, %v4482_v2  ;;  %v4553_v23 = vmul.f32 %v7484_v16, %v4483_v8  ;;  %v4682_v32 = vmax.f32 %v4618_v53, 0.0  ;;  %v4554_v34 = vmul.f32 %v7484_v16, %v4484_v17 }
 0x29a   : > { %4744 = vst.msk [vmem:[%s8056_s4 + $0x160] sm:$0xff] %vm4046_vm2, %v4680_v18  ;;  %4745 = vst.msk [vmem:[%s8056_s4 + $0x168] sm:$0xff] %vm4046_vm2, %v4681_v20  ;;  %v4683_v33 = vmax.f32 %v4619_v21, 0.0  ;;  %v4555_v35 = vmul.f32 %v7484_v16, %v4485_v58  ;;  %v4620_v36 = vadd.f32 %v7520_v37, %v4550_v12  ;;  %v4621_v38 = vadd.f32 %v7520_v37, %v4551_v22 }
 0x29b   : > { %v4622_v40 = vadd.f32 %v7520_v37, %v4552_v6  ;;  %v4623_v41 = vadd.f32 %v7520_v37, %v4553_v23  ;;  %4746 = vst.msk [vmem:[%s8056_s4 + $0x170] sm:$0xff] %vm4046_vm2, %v4682_v32  ;;  %v4624_v44 = vadd.f32 %v7520_v37, %v4554_v34  ;;  %v4556_v24 = vmul.f32 %v7484_v16, %v4486_v30 }
 0x29c   : > { %4747 = vst.msk [vmem:[%s8056_s4 + $0x178] sm:$0xff] %vm4046_vm2, %v4683_v33  ;;  %v4625_v45 = vadd.f32 %v7520_v37, %v4555_v35  ;;  %v4557_v11 = vmul.f32 %v7484_v16, %v4487_v31  ;;  %v4684_v19 = vmax.f32 %v4620_v36, 0.0  ;;  %v4685_v47 = vmax.f32 %v4621_v38, 0.0 }
 0x29d   : > { %v4686_v50 = vmax.f32 %v4622_v40, 0.0  ;;  %v4687_v39 = vmax.f32 %v4623_v41, 0.0  ;;  %v4688_v62 = vmax.f32 %v4624_v44, 0.0  ;;  %v4626_v0 = vadd.f32 %v7520_v37, %v4556_v24 }
 0x29e   : > { %v4689_v52 = vmax.f32 %v4625_v45, 0.0  ;;  %v4627_v60 = vadd.f32 %v7520_v37, %v4557_v11  ;;  %4748 = vst.msk [vmem:[%s8056_s4 + $0x180] sm:$0xff] %vm4046_vm2, %v4684_v19  ;;  %4749 = vst.msk [vmem:[%s8056_s4 + $0x188] sm:$0xff] %vm4046_vm2, %v4685_v47  ;;  %v4558_v27 = vmul.f32 %v7484_v16, %v4488_v42  ;;  %v4559_v54 = vmul.f32 %v7484_v16, %v4489_v46 }
 0x29f   : > { %4750 = vst.msk [vmem:[%s8056_s4 + $0x190] sm:$0xff] %vm4046_vm2, %v4686_v50  ;;  %4751 = vst.msk [vmem:[%s8056_s4 + $0x198] sm:$0xff] %vm4046_vm2, %v4687_v39  ;;  %v4560_v28 = vmul.f32 %v7484_v16, %v4490_v13  ;;  %v4561_v3 = vmul.f32 %v7484_v16, %v4491_v26  ;;  %v4690_v7 = vmax.f32 %v4626_v0, 0.0  ;;  %v4562_v51 = vmul.f32 %v7484_v16, %v4492_v43 }
 0x2a0   : > { %4752 = vst.msk [vmem:[%s8056_s4 + $0x1a0] sm:$0xff] %vm4046_vm2, %v4688_v62  ;;  %4753 = vst.msk [vmem:[%s8056_s4 + $0x1a8] sm:$0xff] %vm4046_vm2, %v4689_v52  ;;  %v4691_v48 = vmax.f32 %v4627_v60, 0.0  ;;  %v4563_v49 = vmul.f32 %v7484_v16, %v4493_v56  ;;  %v4628_v55 = vadd.f32 %v7520_v37, %v4558_v27  ;;  %v4629_v29 = vadd.f32 %v7520_v37, %v4559_v54 }
 0x2a1   : > { %v4630_v57 = vadd.f32 %v7520_v37, %v4560_v28  ;;  %v4631_v59 = vadd.f32 %v7520_v37, %v4561_v3  ;;  %4754 = vst.msk [vmem:[%s8056_s4 + $0x1b0] sm:$0xff] %vm4046_vm2, %v4690_v7  ;;  %v4632_v61 = vadd.f32 %v7520_v37, %v4562_v51  ;;  %v4564_v1 = vmul.f32 %v7484_v16, %v4494_v25 }
 0x2a2   : > { %4755 = vst.msk [vmem:[%s8056_s4 + $0x1b8] sm:$0xff] %vm4046_vm2, %v4691_v48  ;;  %v4633_v63 = vadd.f32 %v7520_v37, %v4563_v49  ;;  %v4565_v4 = vmul.f32 %v7484_v16, %v4495_v5  ;;  %v4692_v2 = vmax.f32 %v4628_v55, 0.0  ;;  %v4693_v8 = vmax.f32 %v4629_v29, 0.0 }
 0x2a3   : > { %v4694_v9 = vmax.f32 %v4630_v57, 0.0  ;;  %v4695_v10 = vmax.f32 %v4631_v59, 0.0  ;;  %v4696_v14 = vmax.f32 %v4632_v61, 0.0  ;;  %v4634_v17 = vadd.f32 %v7520_v37, %v4564_v1 }
 0x2a4   : > { %v4697_v15 = vmax.f32 %v4633_v63, 0.0  ;;  %v4635_v58 = vadd.f32 %v7520_v37, %v4565_v4  ;;  %4756 = vst.msk [vmem:[%s8056_s4 + $0x1c0] sm:$0xff] %vm4046_vm2, %v4692_v2  ;;  %4757 = vst.msk [vmem:[%s8056_s4 + $0x1c8] sm:$0xff] %vm4046_vm2, %v4693_v8 }
 0x2a5   : > { %4758 = vst.msk [vmem:[%s8056_s4 + $0x1d0] sm:$0xff] %vm4046_vm2, %v4694_v9  ;;  %4759 = vst.msk [vmem:[%s8056_s4 + $0x1d8] sm:$0xff] %vm4046_vm2, %v4695_v10  ;;  %v4698_v16 = vmax.f32 %v4634_v17, 0.0 }
 0x2a6   : > { %4760 = vst.msk [vmem:[%s8056_s4 + $0x1e0] sm:$0xff] %vm4046_vm2, %v4696_v14  ;;  %4761 = vst.msk [vmem:[%s8056_s4 + $0x1e8] sm:$0xff] %vm4046_vm2, %v4697_v15  ;;  %v4699_v37 = vmax.f32 %v4635_v58, 0.0 }
 0x2a7   : > { %4762 = vst.msk [vmem:[%s8056_s4 + $0x1f0] sm:$0xff] %vm4046_vm2, %v4698_v16 }
 0x2a8   : > { %4763 = vst.msk [vmem:[%s8056_s4 + $0x1f8] sm:$0xff] %vm4046_vm2, %v4699_v37 }
 0x2a9 PF: > { %s14_s15 = sadd.s32 1, %s6380_s15  }
 0x2aa   : > { %p11_p6 = scmp.ge.s32.totalorder %s14_s15, 4  }
 0x2ac   :  { %13 = sbr.rel (!%p11_p6) target bundleno = 1 (0x1), region = 94 }

</bundles_post_ra>
